<compile_context>
chip_gen: v6e
topology: v6e:2x2x1
jax: 0.10.0
libtpu: 0.0.40
codegen_flags: <defaults>
</compile_context>

<pallas_src>
import numpy as np
import jax
import jax.numpy as jnp
from jax.experimental import pallas as pl
from jax.experimental.pallas import tpu as pltpu


def _round_up(n, m):
    return ((n + m - 1) // m) * m


def _refmm(a, b):
    # Exact-f32 matmul for the pure-JAX reference and offline weight fusion.
    return jnp.dot(a, b, precision=jax.lax.Precision.HIGHEST)


# ----------------------------------------------------------------------------
# Pallas kernel: encoder LSTM, par_dense MLP, recursive decoder LSTM + Linear.
# ----------------------------------------------------------------------------
def make_seq2seq_kernel(seq_len, target_len, batch, input_size, output_size,
                        hidden_size, num_layers, layout, blay):
    H = hidden_size
    H4 = 4 * H
    L = num_layers
    B = batch

    def kernel(x_ref, pars_ref, wm_ref, wb_ref, out_ref):
        def mat(name):
            off, r, c = layout[name]
            return wm_ref[pl.ds(off, r), pl.ds(0, c)]          # bf16 (r, c)

        def bias(name):
            row, n = blay[name]
            return wb_ref[pl.ds(row, 1), pl.ds(0, n)]          # f32 (1, n)

        def mm(a, w):
            # Single-pass MXU matmul: bf16 operands, f32 accumulation.
            return jax.lax.dot_general(
                a.astype(jnp.bfloat16), w,
                (((1,), (0,)), ((), ())),
                preferred_element_type=jnp.float32)

        def lstm_cell(gates_scaled, c_prev):
            # g-gate columns were pre-scaled by 2 offline, so ONE sigmoid over
            # the full (B, 4H) vreg gives i/f/o directly and tanh(g) via
            # tanh(x) = 2*sigmoid(2x) - 1.  Second sigmoid recovers tanh(c).
            sig = jax.nn.sigmoid(gates_scaled)
            i = sig[:, 0 * H:1 * H]
            f = sig[:, 1 * H:2 * H]
            o = sig[:, 3 * H:4 * H]
            g = 2.0 * sig[:, 2 * H:3 * H] - 1.0
            c_new = f * c_prev + i * g
            tanh_c = 2.0 * jax.nn.sigmoid(2.0 * c_new) - 1.0
            return o * tanh_c, c_new

        # ------------- encoder -------------------------------------------------
        enc_w = [mat(f"enc{l}") for l in range(L)]             # stacked [Wih;Whh]^T
        enc_b = [bias(f"enc{l}") for l in range(L)]
        h = [jnp.zeros((B, H), jnp.float32) for _ in range(L)]
        c = [jnp.zeros((B, H), jnp.float32) for _ in range(L)]

        for t in range(seq_len):               # fully unrolled (static trip count)
            inp = x_ref[t]                                     # (B, input_size)
            for l in range(L):
                lhs = jnp.concatenate([inp, h[l]], axis=-1)    # (B, in_l + H)
                gates = mm(lhs, enc_w[l]) + enc_b[l]           # one MXU push/cell
                h[l], c[l] = lstm_cell(gates, c[l])
                inp = h[l]

        # ------------- par_dense MLP: Linear -> LeakyReLU -> Linear ------------
        p = pars_ref[...]                                      # (B, par_size)
        p1 = mm(p, mat("pw1")) + bias("pb1")
        p1 = jnp.where(p1 >= 0, p1, 0.01 * p1)                 # LeakyReLU(0.01)
        par_out = mm(p1, mat("pw2")) + bias("pb2")             # (B, par_out_dim)

        # Constant decoder-layer-0 gate contribution of the par features + bias
        # (replaces torch.cat((decoder_input, par_dense_out), -1)).
        par_gate = mm(par_out, mat("wdp")) + bias("dec0")      # (B, 4H)
        gate_const = par_gate + bias("bfused")                 # for steps t >= 1

        # ------------- recursive decoder ---------------------------------------
        dec_w = [mat(f"dec{l}") for l in range(1, L)]
        dec_b = [bias(f"dec{l}") for l in range(1, L)]
        wcomb = mat("wcomb")                                   # (2H, 4H + out)
        blin = bias("blin")                                    # (1, out)

        x_last = x_ref[seq_len - 1]                            # x[-1], (B, I)
        # First-step layer-0 gates: [x_last, h0] @ [Wx; Whh] + par contribution.
        g0 = mm(jnp.concatenate([x_last, h[0]], axis=-1),
                mat("dec0_first")) + par_gate

        outs = []
        for t in range(target_len):            # fully unrolled
            h[0], c[0] = lstm_cell(g0, c[0])
            inp = h[0]
            for li, l in enumerate(range(1, L)):
                lhs = jnp.concatenate([inp, h[l]], axis=-1)    # (B, 2H)
                gates = mm(lhs, dec_w[li]) + dec_b[li]
                h[l], c[l] = lstm_cell(gates, c[l])
                inp = h[l]
            # One fused matmul produces BOTH this step's output (via wlin) and
            # the next step's layer-0 gates (output Linear fused offline with
            # the decoder input projection -> wfused, plus Whh for h0).
            comb = mm(jnp.concatenate([inp, h[0]], axis=-1), wcomb)  # (B, 4H+out)
            outs.append(comb[:, H4:H4 + output_size] + blin)
            if t + 1 < target_len:
                g0 = comb[:, :H4] + gate_const

        # Single store of all decoder outputs (no per-step masked stores).
        out_ref[...] = jnp.concatenate(outs, axis=0)           # (target_len*B, out)

    return kernel


# ----------------------------------------------------------------------------
# Parameter init (deterministic, PyTorch-convention shapes).
# ----------------------------------------------------------------------------
def init_params(key, input_size, output_size, hidden_size, num_layers, par_size):
    H = hidden_size
    par_out_dim = H // 4

    def uniform(k, shape, bound):
        return jax.random.uniform(k, shape, jnp.float32, -bound, bound)

    keys = iter(jax.random.split(key, 64))
    kH = 1.0 / np.sqrt(H)

    def lstm_layer(in_dim):
        return dict(
            W_ih=uniform(next(keys), (4 * H, in_dim), kH),
            W_hh=uniform(next(keys), (4 * H, H), kH),
            b_ih=uniform(next(keys), (4 * H,), kH),
            b_hh=uniform(next(keys), (4 * H,), kH),
        )

    enc = [lstm_layer(input_size if l == 0 else H) for l in range(num_layers)]
    dec = [lstm_layer(input_size + par_out_dim if l == 0 else H)
           for l in range(num_layers)]
    klin = 1.0 / np.sqrt(H)
    lin_W = uniform(next(keys), (output_size, H), klin)
    lin_b = uniform(next(keys), (output_size,), klin)
    k1 = 1.0 / np.sqrt(par_size)
    pd_W1 = uniform(next(keys), (H // 2, par_size), k1)
    pd_b1 = uniform(next(keys), (H // 2,), k1)
    k2 = 1.0 / np.sqrt(H // 2)
    pd_W2 = uniform(next(keys), (par_out_dim, H // 2), k2)
    pd_b2 = uniform(next(keys), (par_out_dim,), k2)
    return dict(enc=enc, dec=dec, lin_W=lin_W, lin_b=lin_b,
                pd_W1=pd_W1, pd_b1=pd_b1, pd_W2=pd_W2, pd_b2=pd_b2)


# ----------------------------------------------------------------------------
# Offline packing: one bf16 matrix blob + one f32 bias blob + static layouts.
# All gate-producing weights/biases have their g-columns pre-scaled by 2 so the
# kernel needs a single sigmoid per cell (exact power-of-two transform).
# ----------------------------------------------------------------------------
def _pack_params(params, input_size, output_size):
    H = params["enc"][0]["W_hh"].shape[1]
    H4 = 4 * H
    hp = jax.lax.Precision.HIGHEST

    gs_np = np.ones((H4,), np.float32)
    gs_np[2 * H:3 * H] = 2.0
    gs = jnp.asarray(gs_np)

    def gscale(a):                      # last dim == 4H
        return a * gs

    def stack_ih_hh(p):
        return jnp.concatenate([p["W_ih"].T, p["W_hh"].T], axis=0)

    mats = []                           # (name, (rows, cols) array)
    for l, p in enumerate(params["enc"]):
        mats.append((f"enc{l}", gscale(stack_ih_hh(p))))          # (in_l+H, 4H)

    d0 = params["dec"][0]
    wd = d0["W_ih"].T                                             # (I+par_out, 4H)
    wdx_t = wd[:input_size]                                       # x part
    wdp_t = wd[input_size:]                                       # par part
    whh_d0_t = d0["W_hh"].T
    mats.append(("dec0_first",
                 gscale(jnp.concatenate([wdx_t, whh_d0_t], axis=0))))
    for l, p in enumerate(params["dec"][1:], start=1):
        mats.append((f"dec{l}", gscale(stack_ih_hh(p))))
    mats.append(("wdp", gscale(wdp_t)))                           # (par_out, 4H)

    wlin_t = params["lin_W"].T                                    # (H, out)
    blin = params["lin_b"]                                        # (out,)
    # Output Linear fused offline with the next-step decoder input projection:
    #   next_gates_x = out @ wdx = h_top @ (wlin @ wdx) + blin @ wdx
    wfused = gscale(_refmm(wlin_t, wdx_t))                        # (H, 4H)
    bfused = gscale(_refmm(blin, wdx_t))                          # (4H,)
    wcomb_top = jnp.concatenate([wfused, wlin_t], axis=1)         # (H, 4H+out)
    wcomb_bot = jnp.concatenate(
        [gscale(whh_d0_t), jnp.zeros((H, output_size), jnp.float32)], axis=1)
    mats.append(("wcomb", jnp.concatenate([wcomb_top, wcomb_bot], axis=0)))

    mats.append(("pw1", params["pd_W1"].T))                       # (par_size, H/2)
    mats.append(("pw2", params["pd_W2"].T))                       # (H/2, par_out)

    lanes = _round_up(H4 + output_size, 128)
    layout = {}
    padded = []
    row_off = 0
    for name, a in mats:
        r, cdim = a.shape
        layout[name] = (row_off, r, cdim)
        rp = _round_up(r, 16)                                     # bf16 sublane pack
        pa = jnp.zeros((rp, lanes), jnp.float32).at[:r, :cdim].set(a)
        padded.append(pa)
        row_off += rp
    wm = jnp.concatenate(padded, axis=0).astype(jnp.bfloat16)

    # ---- f32 bias blob -------------------------------------------------------
    blanes = _round_up(max(H4, 128), 128)
    b_rows = []
    blay = {}

    def add_bias(name, v):
        blay[name] = (len(b_rows), int(v.shape[0]))
        b_rows.append(jnp.zeros((blanes,), jnp.float32).at[:v.shape[0]].set(v))

    for l, p in enumerate(params["enc"]):
        add_bias(f"enc{l}", gscale(p["b_ih"] + p["b_hh"]))
    add_bias("dec0", gscale(d0["b_ih"] + d0["b_hh"]))
    for l, p in enumerate(params["dec"][1:], start=1):
        add_bias(f"dec{l}", gscale(p["b_ih"] + p["b_hh"]))
    add_bias("bfused", bfused)
    add_bias("blin", blin)
    add_bias("pb1", params["pd_b1"])
    add_bias("pb2", params["pd_b2"])
    wb = jnp.stack(b_rows, axis=0)

    return wm, wb, layout, blay


def lstm_seq2seq_forward(x, pars, params, target_len):
    seq_len, batch, input_size = x.shape
    hidden_size = params["enc"][0]["W_hh"].shape[1]
    num_layers = len(params["enc"])
    output_size = params["lin_W"].shape[0]
    # Recursive decoding feeds outputs back as the next decoder input.
    assert output_size == input_size, "lstm_seq2seq requires output_size == input_size"

    wm, wb, layout, blay = _pack_params(params, input_size, output_size)
    kernel = make_seq2seq_kernel(seq_len, target_len, batch, input_size,
                                 output_size, hidden_size, num_layers,
                                 layout, blay)
    out2d = pl.pallas_call(
        kernel,
        out_shape=jax.ShapeDtypeStruct((target_len * batch, output_size),
                                       jnp.float32),
        in_specs=[pl.BlockSpec(memory_space=pltpu.MemorySpace.VMEM)] * 4,
        out_specs=pl.BlockSpec(memory_space=pltpu.MemorySpace.VMEM),
    )(x, pars[-1], wm, wb)
    return out2d.reshape(target_len, batch, output_size)


# ----------------------------------------------------------------------------
# Pure-JAX reference (mirrors PyTorch nn.LSTM / forward semantics, exact f32).
# ----------------------------------------------------------------------------
def _ref_cell(inp, h, c, p):
    H = h.shape[-1]
    gates = (_refmm(inp, p["W_ih"].T) + p["b_ih"]
             + _refmm(h, p["W_hh"].T) + p["b_hh"])
    i = jax.nn.sigmoid(gates[:, :H])
    f = jax.nn.sigmoid(gates[:, H:2 * H])
    g = jnp.tanh(gates[:, 2 * H:3 * H])
    o = jax.nn.sigmoid(gates[:, 3 * H:])
    c_new = f * c + i * g
    h_new = o * jnp.tanh(c_new)
    return h_new, c_new


def reference_forward(x, pars, params, target_len):
    seq_len, batch, _ = x.shape
    L = len(params["enc"])
    H = params["enc"][0]["W_hh"].shape[1]
    h = [jnp.zeros((batch, H), jnp.float32) for _ in range(L)]
    c = [jnp.zeros((batch, H), jnp.float32) for _ in range(L)]
    for t in range(seq_len):
        inp = x[t]
        for l in range(L):
            h[l], c[l] = _ref_cell(inp, h[l], c[l], params["enc"][l])
            inp = h[l]
    p1 = _refmm(pars[-1], params["pd_W1"].T) + params["pd_b1"]
    p1 = jnp.where(p1 >= 0, p1, 0.01 * p1)
    par_out = _refmm(p1, params["pd_W2"].T) + params["pd_b2"]
    dec_in = jnp.concatenate([x[-1], par_out], axis=-1)
    outs = []
    for _ in range(target_len):
        inp = dec_in
        for l in range(L):
            h[l], c[l] = _ref_cell(inp, h[l], c[l], params["dec"][l])
            inp = h[l]
        out = _refmm(inp, params["lin_W"].T) + params["lin_b"]
        outs.append(out)
        dec_in = jnp.concatenate([out, par_out], axis=-1)
    return jnp.stack(outs)


if __name__ == "__main__":
    # output_size == input_size, as required by `outputs[t] = decoder_output`
    input_size = 4
    output_size = 4
    hidden_size = 32
    num_layers = 2
    par_size = 3
    seq_len = 8
    batch = 2
    target_len = 6

    key = jax.random.PRNGKey(0)
    kx, kp, kw = jax.random.split(key, 3)
    x = jax.random.normal(kx, (seq_len, batch, input_size), jnp.float32)
    pars = jax.random.normal(kp, (seq_len, batch, par_size), jnp.float32)
    params = init_params(kw, input_size, output_size, hidden_size,
                         num_layers, par_size)

    out = lstm_seq2seq_forward(x, pars, params, target_len)
    out = jax.block_until_ready(out)

    ref = reference_forward(x, pars, params, target_len)
    # Kernel uses bf16-operand MXU matmuls (f32 accumulate); reference is exact
    # f32, so allow bf16-level accumulated rounding over the recurrence.
    np.testing.assert_allclose(np.asarray(out), np.asarray(ref),
                               rtol=2e-2, atol=2e-2)
    print("KERNEL_OK")
</pallas_src>

<mosaic_0001>
module attributes {stable_mosaic.version = 11 : i64} {
  func.func @kernel(%arg0: memref<8x2x4xf32, #tpu.memory_space<vmem>>, %arg1: memref<2x3xf32, #tpu.memory_space<vmem>>, %arg2: memref<336x256xbf16, #tpu.memory_space<vmem>>, %arg3: memref<8x128xf32, #tpu.memory_space<vmem>>, %arg4: memref<12x4xf32, #tpu.memory_space<vmem>>) attributes {dimension_semantics = [], scalar_prefetch = 0 : i64, scratch_operands = 0 : i64, tpu.core_type = #tpu.core_type<tc>} {
    %c0 = arith.constant 0 : index
    %c0_0 = arith.constant 0 : index
    %0 = vector.load %arg2[%c0, %c0_0] : memref<336x256xbf16, #tpu.memory_space<vmem>>, vector<36x128xbf16>
    %c48 = arith.constant 48 : index
    %c0_1 = arith.constant 0 : index
    %1 = vector.load %arg2[%c48, %c0_1] : memref<336x256xbf16, #tpu.memory_space<vmem>>, vector<64x128xbf16>
    %c0_2 = arith.constant 0 : index
    %c0_3 = arith.constant 0 : index
    %2 = vector.load %arg3[%c0_2, %c0_3] : memref<8x128xf32, #tpu.memory_space<vmem>>, vector<1x128xf32>
    %c1 = arith.constant 1 : index
    %c0_4 = arith.constant 0 : index
    %3 = vector.load %arg3[%c1, %c0_4] : memref<8x128xf32, #tpu.memory_space<vmem>>, vector<1x128xf32>
    %cst = arith.constant 0.000000e+00 : f32
    %4 = vector.broadcast %cst : f32 to vector<2x32xf32>
    %cst_5 = arith.constant 0.000000e+00 : f32
    %5 = vector.broadcast %cst_5 : f32 to vector<2x32xf32>
    %cst_6 = arith.constant 0.000000e+00 : f32
    %6 = vector.broadcast %cst_6 : f32 to vector<2x32xf32>
    %cst_7 = arith.constant 0.000000e+00 : f32
    %7 = vector.broadcast %cst_7 : f32 to vector<2x32xf32>
    %c0_8 = arith.constant 0 : index
    %c0_9 = arith.constant 0 : index
    %c0_10 = arith.constant 0 : index
    %8 = vector.load %arg0[%c0_8, %c0_9, %c0_10] : memref<8x2x4xf32, #tpu.memory_space<vmem>>, vector<1x2x4xf32>
    %9 = vector.shape_cast %8 : vector<1x2x4xf32> to vector<2x4xf32>
    %10 = tpu.concatenate %9, %4 in 1 : vector<2x4xf32>, vector<2x32xf32> -> vector<2x36xf32>
    %11 = arith.truncf %10 : vector<2x36xf32> to vector<2x36xbf16>
    %cst_11 = arith.constant dense<0.000000e+00> : vector<2x128xf32>
    %12 = tpu.matmul %11, %0, %cst_11 {dimension_numbers = #tpu.dot_dimension_numbers<[1], [0], [0], [1], [0, 0, 1, 1], [], []>} : vector<2x36xbf16>, vector<36x128xbf16>, vector<2x128xf32> -> vector<2x128xf32>
    %13 = vector.broadcast %2 : vector<1x128xf32> to vector<2x128xf32>
    %14 = arith.addf %12, %13 : vector<2x128xf32>
    %15 = arith.negf %14 : vector<2x128xf32>
    %16 = math.exp %15 : vector<2x128xf32>
    %cst_12 = arith.constant 1.000000e+00 : f32
    %17 = vector.broadcast %cst_12 : f32 to vector<2x128xf32>
    %18 = arith.addf %17, %16 : vector<2x128xf32>
    %19 = arith.divf %17, %18 : vector<2x128xf32>
    %20 = vector.extract_strided_slice %19 {offsets = [0, 0], sizes = [2, 32], strides = [1, 1]} : vector<2x128xf32> to vector<2x32xf32>
    %21 = vector.extract_strided_slice %19 {offsets = [0, 32], sizes = [2, 32], strides = [1, 1]} : vector<2x128xf32> to vector<2x32xf32>
    %22 = vector.extract_strided_slice %19 {offsets = [0, 96], sizes = [2, 32], strides = [1, 1]} : vector<2x128xf32> to vector<2x32xf32>
    %23 = vector.extract_strided_slice %19 {offsets = [0, 64], sizes = [2, 32], strides = [1, 1]} : vector<2x128xf32> to vector<2x32xf32>
    %cst_13 = arith.constant 2.000000e+00 : f32
    %24 = vector.broadcast %cst_13 : f32 to vector<2x32xf32>
    %25 = arith.mulf %24, %23 : vector<2x32xf32>
    %cst_14 = arith.constant 1.000000e+00 : f32
    %26 = vector.broadcast %cst_14 : f32 to vector<2x32xf32>
    %27 = arith.subf %25, %26 : vector<2x32xf32>
    %28 = arith.mulf %21, %6 : vector<2x32xf32>
    %29 = arith.mulf %20, %27 : vector<2x32xf32>
    %30 = arith.addf %28, %29 : vector<2x32xf32>
    %cst_15 = arith.constant 2.000000e+00 : f32
    %31 = vector.broadcast %cst_15 : f32 to vector<2x32xf32>
    %32 = arith.mulf %31, %30 : vector<2x32xf32>
    %33 = arith.negf %32 : vector<2x32xf32>
    %34 = math.exp %33 : vector<2x32xf32>
    %cst_16 = arith.constant 1.000000e+00 : f32
    %35 = vector.broadcast %cst_16 : f32 to vector<2x32xf32>
    %36 = arith.addf %35, %34 : vector<2x32xf32>
    %37 = arith.divf %35, %36 : vector<2x32xf32>
    %cst_17 = arith.constant 2.000000e+00 : f32
    %38 = vector.broadcast %cst_17 : f32 to vector<2x32xf32>
    %39 = arith.mulf %38, %37 : vector<2x32xf32>
    %cst_18 = arith.constant 1.000000e+00 : f32
    %40 = vector.broadcast %cst_18 : f32 to vector<2x32xf32>
    %41 = arith.subf %39, %40 : vector<2x32xf32>
    %42 = arith.mulf %22, %41 : vector<2x32xf32>
    %43 = tpu.concatenate %42, %5 in 1 : vector<2x32xf32>, vector<2x32xf32> -> vector<2x64xf32>
    %44 = arith.truncf %43 : vector<2x64xf32> to vector<2x64xbf16>
    %cst_19 = arith.constant dense<0.000000e+00> : vector<2x128xf32>
    %45 = tpu.matmul %44, %1, %cst_19 {dimension_numbers = #tpu.dot_dimension_numbers<[1], [0], [0], [1], [0, 0, 1, 1], [], []>} : vector<2x64xbf16>, vector<64x128xbf16>, vector<2x128xf32> -> vector<2x128xf32>
    %46 = vector.broadcast %3 : vector<1x128xf32> to vector<2x128xf32>
    %47 = arith.addf %45, %46 : vector<2x128xf32>
    %48 = arith.negf %47 : vector<2x128xf32>
    %49 = math.exp %48 : vector<2x128xf32>
    %cst_20 = arith.constant 1.000000e+00 : f32
    %50 = vector.broadcast %cst_20 : f32 to vector<2x128xf32>
    %51 = arith.addf %50, %49 : vector<2x128xf32>
    %52 = arith.divf %50, %51 : vector<2x128xf32>
    %53 = vector.extract_strided_slice %52 {offsets = [0, 0], sizes = [2, 32], strides = [1, 1]} : vector<2x128xf32> to vector<2x32xf32>
    %54 = vector.extract_strided_slice %52 {offsets = [0, 32], sizes = [2, 32], strides = [1, 1]} : vector<2x128xf32> to vector<2x32xf32>
    %55 = vector.extract_strided_slice %52 {offsets = [0, 96], sizes = [2, 32], strides = [1, 1]} : vector<2x128xf32> to vector<2x32xf32>
    %56 = vector.extract_strided_slice %52 {offsets = [0, 64], sizes = [2, 32], strides = [1, 1]} : vector<2x128xf32> to vector<2x32xf32>
    %cst_21 = arith.constant 2.000000e+00 : f32
    %57 = vector.broadcast %cst_21 : f32 to vector<2x32xf32>
    %58 = arith.mulf %57, %56 : vector<2x32xf32>
    %cst_22 = arith.constant 1.000000e+00 : f32
    %59 = vector.broadcast %cst_22 : f32 to vector<2x32xf32>
    %60 = arith.subf %58, %59 : vector<2x32xf32>
    %61 = arith.mulf %54, %7 : vector<2x32xf32>
    %62 = arith.mulf %53, %60 : vector<2x32xf32>
    %63 = arith.addf %61, %62 : vector<2x32xf32>
    %cst_23 = arith.constant 2.000000e+00 : f32
    %64 = vector.broadcast %cst_23 : f32 to vector<2x32xf32>
    %65 = arith.mulf %64, %63 : vector<2x32xf32>
    %66 = arith.negf %65 : vector<2x32xf32>
    %67 = math.exp %66 : vector<2x32xf32>
    %cst_24 = arith.constant 1.000000e+00 : f32
    %68 = vector.broadcast %cst_24 : f32 to vector<2x32xf32>
    %69 = arith.addf %68, %67 : vector<2x32xf32>
    %70 = arith.divf %68, %69 : vector<2x32xf32>
    %cst_25 = arith.constant 2.000000e+00 : f32
    %71 = vector.broadcast %cst_25 : f32 to vector<2x32xf32>
    %72 = arith.mulf %71, %70 : vector<2x32xf32>
    %cst_26 = arith.constant 1.000000e+00 : f32
    %73 = vector.broadcast %cst_26 : f32 to vector<2x32xf32>
    %74 = arith.subf %72, %73 : vector<2x32xf32>
    %75 = arith.mulf %55, %74 : vector<2x32xf32>
    %c1_27 = arith.constant 1 : index
    %c0_28 = arith.constant 0 : index
    %c0_29 = arith.constant 0 : index
    %76 = vector.load %arg0[%c1_27, %c0_28, %c0_29] : memref<8x2x4xf32, #tpu.memory_space<vmem>>, vector<1x2x4xf32>
    %77 = vector.shape_cast %76 : vector<1x2x4xf32> to vector<2x4xf32>
    %78 = tpu.concatenate %77, %42 in 1 : vector<2x4xf32>, vector<2x32xf32> -> vector<2x36xf32>
    %79 = arith.truncf %78 : vector<2x36xf32> to vector<2x36xbf16>
    %cst_30 = arith.constant dense<0.000000e+00> : vector<2x128xf32>
    %80 = tpu.matmul %79, %0, %cst_30 {dimension_numbers = #tpu.dot_dimension_numbers<[1], [0], [0], [1], [0, 0, 1, 1], [], []>} : vector<2x36xbf16>, vector<36x128xbf16>, vector<2x128xf32> -> vector<2x128xf32>
    %81 = vector.broadcast %2 : vector<1x128xf32> to vector<2x128xf32>
    %82 = arith.addf %80, %81 : vector<2x128xf32>
    %83 = arith.negf %82 : vector<2x128xf32>
    %84 = math.exp %83 : vector<2x128xf32>
    %cst_31 = arith.constant 1.000000e+00 : f32
    %85 = vector.broadcast %cst_31 : f32 to vector<2x128xf32>
    %86 = arith.addf %85, %84 : vector<2x128xf32>
    %87 = arith.divf %85, %86 : vector<2x128xf32>
    %88 = vector.extract_strided_slice %87 {offsets = [0, 0], sizes = [2, 32], strides = [1, 1]} : vector<2x128xf32> to vector<2x32xf32>
    %89 = vector.extract_strided_slice %87 {offsets = [0, 32], sizes = [2, 32], strides = [1, 1]} : vector<2x128xf32> to vector<2x32xf32>
    %90 = vector.extract_strided_slice %87 {offsets = [0, 96], sizes = [2, 32], strides = [1, 1]} : vector<2x128xf32> to vector<2x32xf32>
    %91 = vector.extract_strided_slice %87 {offsets = [0, 64], sizes = [2, 32], strides = [1, 1]} : vector<2x128xf32> to vector<2x32xf32>
    %cst_32 = arith.constant 2.000000e+00 : f32
    %92 = vector.broadcast %cst_32 : f32 to vector<2x32xf32>
    %93 = arith.mulf %92, %91 : vector<2x32xf32>
    %cst_33 = arith.constant 1.000000e+00 : f32
    %94 = vector.broadcast %cst_33 : f32 to vector<2x32xf32>
    %95 = arith.subf %93, %94 : vector<2x32xf32>
    %96 = arith.mulf %89, %30 : vector<2x32xf32>
    %97 = arith.mulf %88, %95 : vector<2x32xf32>
    %98 = arith.addf %96, %97 : vector<2x32xf32>
    %cst_34 = arith.constant 2.000000e+00 : f32
    %99 = vector.broadcast %cst_34 : f32 to vector<2x32xf32>
    %100 = arith.mulf %99, %98 : vector<2x32xf32>
    %101 = arith.negf %100 : vector<2x32xf32>
    %102 = math.exp %101 : vector<2x32xf32>
    %cst_35 = arith.constant 1.000000e+00 : f32
    %103 = vector.broadcast %cst_35 : f32 to vector<2x32xf32>
    %104 = arith.addf %103, %102 : vector<2x32xf32>
    %105 = arith.divf %103, %104 : vector<2x32xf32>
    %cst_36 = arith.constant 2.000000e+00 : f32
    %106 = vector.broadcast %cst_36 : f32 to vector<2x32xf32>
    %107 = arith.mulf %106, %105 : vector<2x32xf32>
    %cst_37 = arith.constant 1.000000e+00 : f32
    %108 = vector.broadcast %cst_37 : f32 to vector<2x32xf32>
    %109 = arith.subf %107, %108 : vector<2x32xf32>
    %110 = arith.mulf %90, %109 : vector<2x32xf32>
    %111 = tpu.concatenate %110, %75 in 1 : vector<2x32xf32>, vector<2x32xf32> -> vector<2x64xf32>
    %112 = arith.truncf %111 : vector<2x64xf32> to vector<2x64xbf16>
    %cst_38 = arith.constant dense<0.000000e+00> : vector<2x128xf32>
    %113 = tpu.matmul %112, %1, %cst_38 {dimension_numbers = #tpu.dot_dimension_numbers<[1], [0], [0], [1], [0, 0, 1, 1], [], []>} : vector<2x64xbf16>, vector<64x128xbf16>, vector<2x128xf32> -> vector<2x128xf32>
    %114 = vector.broadcast %3 : vector<1x128xf32> to vector<2x128xf32>
    %115 = arith.addf %113, %114 : vector<2x128xf32>
    %116 = arith.negf %115 : vector<2x128xf32>
    %117 = math.exp %116 : vector<2x128xf32>
    %cst_39 = arith.constant 1.000000e+00 : f32
    %118 = vector.broadcast %cst_39 : f32 to vector<2x128xf32>
    %119 = arith.addf %118, %117 : vector<2x128xf32>
    %120 = arith.divf %118, %119 : vector<2x128xf32>
    %121 = vector.extract_strided_slice %120 {offsets = [0, 0], sizes = [2, 32], strides = [1, 1]} : vector<2x128xf32> to vector<2x32xf32>
    %122 = vector.extract_strided_slice %120 {offsets = [0, 32], sizes = [2, 32], strides = [1, 1]} : vector<2x128xf32> to vector<2x32xf32>
    %123 = vector.extract_strided_slice %120 {offsets = [0, 96], sizes = [2, 32], strides = [1, 1]} : vector<2x128xf32> to vector<2x32xf32>
    %124 = vector.extract_strided_slice %120 {offsets = [0, 64], sizes = [2, 32], strides = [1, 1]} : vector<2x128xf32> to vector<2x32xf32>
    %cst_40 = arith.constant 2.000000e+00 : f32
    %125 = vector.broadcast %cst_40 : f32 to vector<2x32xf32>
    %126 = arith.mulf %125, %124 : vector<2x32xf32>
    %cst_41 = arith.constant 1.000000e+00 : f32
    %127 = vector.broadcast %cst_41 : f32 to vector<2x32xf32>
    %128 = arith.subf %126, %127 : vector<2x32xf32>
    %129 = arith.mulf %122, %63 : vector<2x32xf32>
    %130 = arith.mulf %121, %128 : vector<2x32xf32>
    %131 = arith.addf %129, %130 : vector<2x32xf32>
    %cst_42 = arith.constant 2.000000e+00 : f32
    %132 = vector.broadcast %cst_42 : f32 to vector<2x32xf32>
    %133 = arith.mulf %132, %131 : vector<2x32xf32>
    %134 = arith.negf %133 : vector<2x32xf32>
    %135 = math.exp %134 : vector<2x32xf32>
    %cst_43 = arith.constant 1.000000e+00 : f32
    %136 = vector.broadcast %cst_43 : f32 to vector<2x32xf32>
    %137 = arith.addf %136, %135 : vector<2x32xf32>
    %138 = arith.divf %136, %137 : vector<2x32xf32>
    %cst_44 = arith.constant 2.000000e+00 : f32
    %139 = vector.broadcast %cst_44 : f32 to vector<2x32xf32>
    %140 = arith.mulf %139, %138 : vector<2x32xf32>
    %cst_45 = arith.constant 1.000000e+00 : f32
    %141 = vector.broadcast %cst_45 : f32 to vector<2x32xf32>
    %142 = arith.subf %140, %141 : vector<2x32xf32>
    %143 = arith.mulf %123, %142 : vector<2x32xf32>
    %c2 = arith.constant 2 : index
    %c0_46 = arith.constant 0 : index
    %c0_47 = arith.constant 0 : index
    %144 = vector.load %arg0[%c2, %c0_46, %c0_47] : memref<8x2x4xf32, #tpu.memory_space<vmem>>, vector<1x2x4xf32>
    %145 = vector.shape_cast %144 : vector<1x2x4xf32> to vector<2x4xf32>
    %146 = tpu.concatenate %145, %110 in 1 : vector<2x4xf32>, vector<2x32xf32> -> vector<2x36xf32>
    %147 = arith.truncf %146 : vector<2x36xf32> to vector<2x36xbf16>
    %cst_48 = arith.constant dense<0.000000e+00> : vector<2x128xf32>
    %148 = tpu.matmul %147, %0, %cst_48 {dimension_numbers = #tpu.dot_dimension_numbers<[1], [0], [0], [1], [0, 0, 1, 1], [], []>} : vector<2x36xbf16>, vector<36x128xbf16>, vector<2x128xf32> -> vector<2x128xf32>
    %149 = vector.broadcast %2 : vector<1x128xf32> to vector<2x128xf32>
    %150 = arith.addf %148, %149 : vector<2x128xf32>
    %151 = arith.negf %150 : vector<2x128xf32>
    %152 = math.exp %151 : vector<2x128xf32>
    %cst_49 = arith.constant 1.000000e+00 : f32
    %153 = vector.broadcast %cst_49 : f32 to vector<2x128xf32>
    %154 = arith.addf %153, %152 : vector<2x128xf32>
    %155 = arith.divf %153, %154 : vector<2x128xf32>
    %156 = vector.extract_strided_slice %155 {offsets = [0, 0], sizes = [2, 32], strides = [1, 1]} : vector<2x128xf32> to vector<2x32xf32>
    %157 = vector.extract_strided_slice %155 {offsets = [0, 32], sizes = [2, 32], strides = [1, 1]} : vector<2x128xf32> to vector<2x32xf32>
    %158 = vector.extract_strided_slice %155 {offsets = [0, 96], sizes = [2, 32], strides = [1, 1]} : vector<2x128xf32> to vector<2x32xf32>
    %159 = vector.extract_strided_slice %155 {offsets = [0, 64], sizes = [2, 32], strides = [1, 1]} : vector<2x128xf32> to vector<2x32xf32>
    %cst_50 = arith.constant 2.000000e+00 : f32
    %160 = vector.broadcast %cst_50 : f32 to vector<2x32xf32>
    %161 = arith.mulf %160, %159 : vector<2x32xf32>
    %cst_51 = arith.constant 1.000000e+00 : f32
    %162 = vector.broadcast %cst_51 : f32 to vector<2x32xf32>
    %163 = arith.subf %161, %162 : vector<2x32xf32>
    %164 = arith.mulf %157, %98 : vector<2x32xf32>
    %165 = arith.mulf %156, %163 : vector<2x32xf32>
    %166 = arith.addf %164, %165 : vector<2x32xf32>
    %cst_52 = arith.constant 2.000000e+00 : f32
    %167 = vector.broadcast %cst_52 : f32 to vector<2x32xf32>
    %168 = arith.mulf %167, %166 : vector<2x32xf32>
    %169 = arith.negf %168 : vector<2x32xf32>
    %170 = math.exp %169 : vector<2x32xf32>
    %cst_53 = arith.constant 1.000000e+00 : f32
    %171 = vector.broadcast %cst_53 : f32 to vector<2x32xf32>
    %172 = arith.addf %171, %170 : vector<2x32xf32>
    %173 = arith.divf %171, %172 : vector<2x32xf32>
    %cst_54 = arith.constant 2.000000e+00 : f32
    %174 = vector.broadcast %cst_54 : f32 to vector<2x32xf32>
    %175 = arith.mulf %174, %173 : vector<2x32xf32>
    %cst_55 = arith.constant 1.000000e+00 : f32
    %176 = vector.broadcast %cst_55 : f32 to vector<2x32xf32>
    %177 = arith.subf %175, %176 : vector<2x32xf32>
    %178 = arith.mulf %158, %177 : vector<2x32xf32>
    %179 = tpu.concatenate %178, %143 in 1 : vector<2x32xf32>, vector<2x32xf32> -> vector<2x64xf32>
    %180 = arith.truncf %179 : vector<2x64xf32> to vector<2x64xbf16>
    %cst_56 = arith.constant dense<0.000000e+00> : vector<2x128xf32>
    %181 = tpu.matmul %180, %1, %cst_56 {dimension_numbers = #tpu.dot_dimension_numbers<[1], [0], [0], [1], [0, 0, 1, 1], [], []>} : vector<2x64xbf16>, vector<64x128xbf16>, vector<2x128xf32> -> vector<2x128xf32>
    %182 = vector.broadcast %3 : vector<1x128xf32> to vector<2x128xf32>
    %183 = arith.addf %181, %182 : vector<2x128xf32>
    %184 = arith.negf %183 : vector<2x128xf32>
    %185 = math.exp %184 : vector<2x128xf32>
    %cst_57 = arith.constant 1.000000e+00 : f32
    %186 = vector.broadcast %cst_57 : f32 to vector<2x128xf32>
    %187 = arith.addf %186, %185 : vector<2x128xf32>
    %188 = arith.divf %186, %187 : vector<2x128xf32>
    %189 = vector.extract_strided_slice %188 {offsets = [0, 0], sizes = [2, 32], strides = [1, 1]} : vector<2x128xf32> to vector<2x32xf32>
    %190 = vector.extract_strided_slice %188 {offsets = [0, 32], sizes = [2, 32], strides = [1, 1]} : vector<2x128xf32> to vector<2x32xf32>
    %191 = vector.extract_strided_slice %188 {offsets = [0, 96], sizes = [2, 32], strides = [1, 1]} : vector<2x128xf32> to vector<2x32xf32>
    %192 = vector.extract_strided_slice %188 {offsets = [0, 64], sizes = [2, 32], strides = [1, 1]} : vector<2x128xf32> to vector<2x32xf32>
    %cst_58 = arith.constant 2.000000e+00 : f32
    %193 = vector.broadcast %cst_58 : f32 to vector<2x32xf32>
    %194 = arith.mulf %193, %192 : vector<2x32xf32>
    %cst_59 = arith.constant 1.000000e+00 : f32
    %195 = vector.broadcast %cst_59 : f32 to vector<2x32xf32>
    %196 = arith.subf %194, %195 : vector<2x32xf32>
    %197 = arith.mulf %190, %131 : vector<2x32xf32>
    %198 = arith.mulf %189, %196 : vector<2x32xf32>
    %199 = arith.addf %197, %198 : vector<2x32xf32>
    %cst_60 = arith.constant 2.000000e+00 : f32
    %200 = vector.broadcast %cst_60 : f32 to vector<2x32xf32>
    %201 = arith.mulf %200, %199 : vector<2x32xf32>
    %202 = arith.negf %201 : vector<2x32xf32>
    %203 = math.exp %202 : vector<2x32xf32>
    %cst_61 = arith.constant 1.000000e+00 : f32
    %204 = vector.broadcast %cst_61 : f32 to vector<2x32xf32>
    %205 = arith.addf %204, %203 : vector<2x32xf32>
    %206 = arith.divf %204, %205 : vector<2x32xf32>
    %cst_62 = arith.constant 2.000000e+00 : f32
    %207 = vector.broadcast %cst_62 : f32 to vector<2x32xf32>
    %208 = arith.mulf %207, %206 : vector<2x32xf32>
    %cst_63 = arith.constant 1.000000e+00 : f32
    %209 = vector.broadcast %cst_63 : f32 to vector<2x32xf32>
    %210 = arith.subf %208, %209 : vector<2x32xf32>
    %211 = arith.mulf %191, %210 : vector<2x32xf32>
    %c3 = arith.constant 3 : index
    %c0_64 = arith.constant 0 : index
    %c0_65 = arith.constant 0 : index
    %212 = vector.load %arg0[%c3, %c0_64, %c0_65] : memref<8x2x4xf32, #tpu.memory_space<vmem>>, vector<1x2x4xf32>
    %213 = vector.shape_cast %212 : vector<1x2x4xf32> to vector<2x4xf32>
    %214 = tpu.concatenate %213, %178 in 1 : vector<2x4xf32>, vector<2x32xf32> -> vector<2x36xf32>
    %215 = arith.truncf %214 : vector<2x36xf32> to vector<2x36xbf16>
    %cst_66 = arith.constant dense<0.000000e+00> : vector<2x128xf32>
    %216 = tpu.matmul %215, %0, %cst_66 {dimension_numbers = #tpu.dot_dimension_numbers<[1], [0], [0], [1], [0, 0, 1, 1], [], []>} : vector<2x36xbf16>, vector<36x128xbf16>, vector<2x128xf32> -> vector<2x128xf32>
    %217 = vector.broadcast %2 : vector<1x128xf32> to vector<2x128xf32>
    %218 = arith.addf %216, %217 : vector<2x128xf32>
    %219 = arith.negf %218 : vector<2x128xf32>
    %220 = math.exp %219 : vector<2x128xf32>
    %cst_67 = arith.constant 1.000000e+00 : f32
    %221 = vector.broadcast %cst_67 : f32 to vector<2x128xf32>
    %222 = arith.addf %221, %220 : vector<2x128xf32>
    %223 = arith.divf %221, %222 : vector<2x128xf32>
    %224 = vector.extract_strided_slice %223 {offsets = [0, 0], sizes = [2, 32], strides = [1, 1]} : vector<2x128xf32> to vector<2x32xf32>
    %225 = vector.extract_strided_slice %223 {offsets = [0, 32], sizes = [2, 32], strides = [1, 1]} : vector<2x128xf32> to vector<2x32xf32>
    %226 = vector.extract_strided_slice %223 {offsets = [0, 96], sizes = [2, 32], strides = [1, 1]} : vector<2x128xf32> to vector<2x32xf32>
    %227 = vector.extract_strided_slice %223 {offsets = [0, 64], sizes = [2, 32], strides = [1, 1]} : vector<2x128xf32> to vector<2x32xf32>
    %cst_68 = arith.constant 2.000000e+00 : f32
    %228 = vector.broadcast %cst_68 : f32 to vector<2x32xf32>
    %229 = arith.mulf %228, %227 : vector<2x32xf32>
    %cst_69 = arith.constant 1.000000e+00 : f32
    %230 = vector.broadcast %cst_69 : f32 to vector<2x32xf32>
    %231 = arith.subf %229, %230 : vector<2x32xf32>
    %232 = arith.mulf %225, %166 : vector<2x32xf32>
    %233 = arith.mulf %224, %231 : vector<2x32xf32>
    %234 = arith.addf %232, %233 : vector<2x32xf32>
    %cst_70 = arith.constant 2.000000e+00 : f32
    %235 = vector.broadcast %cst_70 : f32 to vector<2x32xf32>
    %236 = arith.mulf %235, %234 : vector<2x32xf32>
    %237 = arith.negf %236 : vector<2x32xf32>
    %238 = math.exp %237 : vector<2x32xf32>
    %cst_71 = arith.constant 1.000000e+00 : f32
    %239 = vector.broadcast %cst_71 : f32 to vector<2x32xf32>
    %240 = arith.addf %239, %238 : vector<2x32xf32>
    %241 = arith.divf %239, %240 : vector<2x32xf32>
    %cst_72 = arith.constant 2.000000e+00 : f32
    %242 = vector.broadcast %cst_72 : f32 to vector<2x32xf32>
    %243 = arith.mulf %242, %241 : vector<2x32xf32>
    %cst_73 = arith.constant 1.000000e+00 : f32
    %244 = vector.broadcast %cst_73 : f32 to vector<2x32xf32>
    %245 = arith.subf %243, %244 : vector<2x32xf32>
    %246 = arith.mulf %226, %245 : vector<2x32xf32>
    %247 = tpu.concatenate %246, %211 in 1 : vector<2x32xf32>, vector<2x32xf32> -> vector<2x64xf32>
    %248 = arith.truncf %247 : vector<2x64xf32> to vector<2x64xbf16>
    %cst_74 = arith.constant dense<0.000000e+00> : vector<2x128xf32>
    %249 = tpu.matmul %248, %1, %cst_74 {dimension_numbers = #tpu.dot_dimension_numbers<[1], [0], [0], [1], [0, 0, 1, 1], [], []>} : vector<2x64xbf16>, vector<64x128xbf16>, vector<2x128xf32> -> vector<2x128xf32>
    %250 = vector.broadcast %3 : vector<1x128xf32> to vector<2x128xf32>
    %251 = arith.addf %249, %250 : vector<2x128xf32>
    %252 = arith.negf %251 : vector<2x128xf32>
    %253 = math.exp %252 : vector<2x128xf32>
    %cst_75 = arith.constant 1.000000e+00 : f32
    %254 = vector.broadcast %cst_75 : f32 to vector<2x128xf32>
    %255 = arith.addf %254, %253 : vector<2x128xf32>
    %256 = arith.divf %254, %255 : vector<2x128xf32>
    %257 = vector.extract_strided_slice %256 {offsets = [0, 0], sizes = [2, 32], strides = [1, 1]} : vector<2x128xf32> to vector<2x32xf32>
    %258 = vector.extract_strided_slice %256 {offsets = [0, 32], sizes = [2, 32], strides = [1, 1]} : vector<2x128xf32> to vector<2x32xf32>
    %259 = vector.extract_strided_slice %256 {offsets = [0, 96], sizes = [2, 32], strides = [1, 1]} : vector<2x128xf32> to vector<2x32xf32>
    %260 = vector.extract_strided_slice %256 {offsets = [0, 64], sizes = [2, 32], strides = [1, 1]} : vector<2x128xf32> to vector<2x32xf32>
    %cst_76 = arith.constant 2.000000e+00 : f32
    %261 = vector.broadcast %cst_76 : f32 to vector<2x32xf32>
    %262 = arith.mulf %261, %260 : vector<2x32xf32>
    %cst_77 = arith.constant 1.000000e+00 : f32
    %263 = vector.broadcast %cst_77 : f32 to vector<2x32xf32>
    %264 = arith.subf %262, %263 : vector<2x32xf32>
    %265 = arith.mulf %258, %199 : vector<2x32xf32>
    %266 = arith.mulf %257, %264 : vector<2x32xf32>
    %267 = arith.addf %265, %266 : vector<2x32xf32>
    %cst_78 = arith.constant 2.000000e+00 : f32
    %268 = vector.broadcast %cst_78 : f32 to vector<2x32xf32>
    %269 = arith.mulf %268, %267 : vector<2x32xf32>
    %270 = arith.negf %269 : vector<2x32xf32>
    %271 = math.exp %270 : vector<2x32xf32>
    %cst_79 = arith.constant 1.000000e+00 : f32
    %272 = vector.broadcast %cst_79 : f32 to vector<2x32xf32>
    %273 = arith.addf %272, %271 : vector<2x32xf32>
    %274 = arith.divf %272, %273 : vector<2x32xf32>
    %cst_80 = arith.constant 2.000000e+00 : f32
    %275 = vector.broadcast %cst_80 : f32 to vector<2x32xf32>
    %276 = arith.mulf %275, %274 : vector<2x32xf32>
    %cst_81 = arith.constant 1.000000e+00 : f32
    %277 = vector.broadcast %cst_81 : f32 to vector<2x32xf32>
    %278 = arith.subf %276, %277 : vector<2x32xf32>
    %279 = arith.mulf %259, %278 : vector<2x32xf32>
    %c4 = arith.constant 4 : index
    %c0_82 = arith.constant 0 : index
    %c0_83 = arith.constant 0 : index
    %280 = vector.load %arg0[%c4, %c0_82, %c0_83] : memref<8x2x4xf32, #tpu.memory_space<vmem>>, vector<1x2x4xf32>
    %281 = vector.shape_cast %280 : vector<1x2x4xf32> to vector<2x4xf32>
    %282 = tpu.concatenate %281, %246 in 1 : vector<2x4xf32>, vector<2x32xf32> -> vector<2x36xf32>
    %283 = arith.truncf %282 : vector<2x36xf32> to vector<2x36xbf16>
    %cst_84 = arith.constant dense<0.000000e+00> : vector<2x128xf32>
    %284 = tpu.matmul %283, %0, %cst_84 {dimension_numbers = #tpu.dot_dimension_numbers<[1], [0], [0], [1], [0, 0, 1, 1], [], []>} : vector<2x36xbf16>, vector<36x128xbf16>, vector<2x128xf32> -> vector<2x128xf32>
    %285 = vector.broadcast %2 : vector<1x128xf32> to vector<2x128xf32>
    %286 = arith.addf %284, %285 : vector<2x128xf32>
    %287 = arith.negf %286 : vector<2x128xf32>
    %288 = math.exp %287 : vector<2x128xf32>
    %cst_85 = arith.constant 1.000000e+00 : f32
    %289 = vector.broadcast %cst_85 : f32 to vector<2x128xf32>
    %290 = arith.addf %289, %288 : vector<2x128xf32>
    %291 = arith.divf %289, %290 : vector<2x128xf32>
    %292 = vector.extract_strided_slice %291 {offsets = [0, 0], sizes = [2, 32], strides = [1, 1]} : vector<2x128xf32> to vector<2x32xf32>
    %293 = vector.extract_strided_slice %291 {offsets = [0, 32], sizes = [2, 32], strides = [1, 1]} : vector<2x128xf32> to vector<2x32xf32>
    %294 = vector.extract_strided_slice %291 {offsets = [0, 96], sizes = [2, 32], strides = [1, 1]} : vector<2x128xf32> to vector<2x32xf32>
    %295 = vector.extract_strided_slice %291 {offsets = [0, 64], sizes = [2, 32], strides = [1, 1]} : vector<2x128xf32> to vector<2x32xf32>
    %cst_86 = arith.constant 2.000000e+00 : f32
    %296 = vector.broadcast %cst_86 : f32 to vector<2x32xf32>
    %297 = arith.mulf %296, %295 : vector<2x32xf32>
    %cst_87 = arith.constant 1.000000e+00 : f32
    %298 = vector.broadcast %cst_87 : f32 to vector<2x32xf32>
    %299 = arith.subf %297, %298 : vector<2x32xf32>
    %300 = arith.mulf %293, %234 : vector<2x32xf32>
    %301 = arith.mulf %292, %299 : vector<2x32xf32>
    %302 = arith.addf %300, %301 : vector<2x32xf32>
    %cst_88 = arith.constant 2.000000e+00 : f32
    %303 = vector.broadcast %cst_88 : f32 to vector<2x32xf32>
    %304 = arith.mulf %303, %302 : vector<2x32xf32>
    %305 = arith.negf %304 : vector<2x32xf32>
    %306 = math.exp %305 : vector<2x32xf32>
    %cst_89 = arith.constant 1.000000e+00 : f32
    %307 = vector.broadcast %cst_89 : f32 to vector<2x32xf32>
    %308 = arith.addf %307, %306 : vector<2x32xf32>
    %309 = arith.divf %307, %308 : vector<2x32xf32>
    %cst_90 = arith.constant 2.000000e+00 : f32
    %310 = vector.broadcast %cst_90 : f32 to vector<2x32xf32>
    %311 = arith.mulf %310, %309 : vector<2x32xf32>
    %cst_91 = arith.constant 1.000000e+00 : f32
    %312 = vector.broadcast %cst_91 : f32 to vector<2x32xf32>
    %313 = arith.subf %311, %312 : vector<2x32xf32>
    %314 = arith.mulf %294, %313 : vector<2x32xf32>
    %315 = tpu.concatenate %314, %279 in 1 : vector<2x32xf32>, vector<2x32xf32> -> vector<2x64xf32>
    %316 = arith.truncf %315 : vector<2x64xf32> to vector<2x64xbf16>
    %cst_92 = arith.constant dense<0.000000e+00> : vector<2x128xf32>
    %317 = tpu.matmul %316, %1, %cst_92 {dimension_numbers = #tpu.dot_dimension_numbers<[1], [0], [0], [1], [0, 0, 1, 1], [], []>} : vector<2x64xbf16>, vector<64x128xbf16>, vector<2x128xf32> -> vector<2x128xf32>
    %318 = vector.broadcast %3 : vector<1x128xf32> to vector<2x128xf32>
    %319 = arith.addf %317, %318 : vector<2x128xf32>
    %320 = arith.negf %319 : vector<2x128xf32>
    %321 = math.exp %320 : vector<2x128xf32>
    %cst_93 = arith.constant 1.000000e+00 : f32
    %322 = vector.broadcast %cst_93 : f32 to vector<2x128xf32>
    %323 = arith.addf %322, %321 : vector<2x128xf32>
    %324 = arith.divf %322, %323 : vector<2x128xf32>
    %325 = vector.extract_strided_slice %324 {offsets = [0, 0], sizes = [2, 32], strides = [1, 1]} : vector<2x128xf32> to vector<2x32xf32>
    %326 = vector.extract_strided_slice %324 {offsets = [0, 32], sizes = [2, 32], strides = [1, 1]} : vector<2x128xf32> to vector<2x32xf32>
    %327 = vector.extract_strided_slice %324 {offsets = [0, 96], sizes = [2, 32], strides = [1, 1]} : vector<2x128xf32> to vector<2x32xf32>
    %328 = vector.extract_strided_slice %324 {offsets = [0, 64], sizes = [2, 32], strides = [1, 1]} : vector<2x128xf32> to vector<2x32xf32>
    %cst_94 = arith.constant 2.000000e+00 : f32
    %329 = vector.broadcast %cst_94 : f32 to vector<2x32xf32>
    %330 = arith.mulf %329, %328 : vector<2x32xf32>
    %cst_95 = arith.constant 1.000000e+00 : f32
    %331 = vector.broadcast %cst_95 : f32 to vector<2x32xf32>
    %332 = arith.subf %330, %331 : vector<2x32xf32>
    %333 = arith.mulf %326, %267 : vector<2x32xf32>
    %334 = arith.mulf %325, %332 : vector<2x32xf32>
    %335 = arith.addf %333, %334 : vector<2x32xf32>
    %cst_96 = arith.constant 2.000000e+00 : f32
    %336 = vector.broadcast %cst_96 : f32 to vector<2x32xf32>
    %337 = arith.mulf %336, %335 : vector<2x32xf32>
    %338 = arith.negf %337 : vector<2x32xf32>
    %339 = math.exp %338 : vector<2x32xf32>
    %cst_97 = arith.constant 1.000000e+00 : f32
    %340 = vector.broadcast %cst_97 : f32 to vector<2x32xf32>
    %341 = arith.addf %340, %339 : vector<2x32xf32>
    %342 = arith.divf %340, %341 : vector<2x32xf32>
    %cst_98 = arith.constant 2.000000e+00 : f32
    %343 = vector.broadcast %cst_98 : f32 to vector<2x32xf32>
    %344 = arith.mulf %343, %342 : vector<2x32xf32>
    %cst_99 = arith.constant 1.000000e+00 : f32
    %345 = vector.broadcast %cst_99 : f32 to vector<2x32xf32>
    %346 = arith.subf %344, %345 : vector<2x32xf32>
    %347 = arith.mulf %327, %346 : vector<2x32xf32>
    %c5 = arith.constant 5 : index
    %c0_100 = arith.constant 0 : index
    %c0_101 = arith.constant 0 : index
    %348 = vector.load %arg0[%c5, %c0_100, %c0_101] : memref<8x2x4xf32, #tpu.memory_space<vmem>>, vector<1x2x4xf32>
    %349 = vector.shape_cast %348 : vector<1x2x4xf32> to vector<2x4xf32>
    %350 = tpu.concatenate %349, %314 in 1 : vector<2x4xf32>, vector<2x32xf32> -> vector<2x36xf32>
    %351 = arith.truncf %350 : vector<2x36xf32> to vector<2x36xbf16>
    %cst_102 = arith.constant dense<0.000000e+00> : vector<2x128xf32>
    %352 = tpu.matmul %351, %0, %cst_102 {dimension_numbers = #tpu.dot_dimension_numbers<[1], [0], [0], [1], [0, 0, 1, 1], [], []>} : vector<2x36xbf16>, vector<36x128xbf16>, vector<2x128xf32> -> vector<2x128xf32>
    %353 = vector.broadcast %2 : vector<1x128xf32> to vector<2x128xf32>
    %354 = arith.addf %352, %353 : vector<2x128xf32>
    %355 = arith.negf %354 : vector<2x128xf32>
    %356 = math.exp %355 : vector<2x128xf32>
    %cst_103 = arith.constant 1.000000e+00 : f32
    %357 = vector.broadcast %cst_103 : f32 to vector<2x128xf32>
    %358 = arith.addf %357, %356 : vector<2x128xf32>
    %359 = arith.divf %357, %358 : vector<2x128xf32>
    %360 = vector.extract_strided_slice %359 {offsets = [0, 0], sizes = [2, 32], strides = [1, 1]} : vector<2x128xf32> to vector<2x32xf32>
    %361 = vector.extract_strided_slice %359 {offsets = [0, 32], sizes = [2, 32], strides = [1, 1]} : vector<2x128xf32> to vector<2x32xf32>
    %362 = vector.extract_strided_slice %359 {offsets = [0, 96], sizes = [2, 32], strides = [1, 1]} : vector<2x128xf32> to vector<2x32xf32>
    %363 = vector.extract_strided_slice %359 {offsets = [0, 64], sizes = [2, 32], strides = [1, 1]} : vector<2x128xf32> to vector<2x32xf32>
    %cst_104 = arith.constant 2.000000e+00 : f32
    %364 = vector.broadcast %cst_104 : f32 to vector<2x32xf32>
    %365 = arith.mulf %364, %363 : vector<2x32xf32>
    %cst_105 = arith.constant 1.000000e+00 : f32
    %366 = vector.broadcast %cst_105 : f32 to vector<2x32xf32>
    %367 = arith.subf %365, %366 : vector<2x32xf32>
    %368 = arith.mulf %361, %302 : vector<2x32xf32>
    %369 = arith.mulf %360, %367 : vector<2x32xf32>
    %370 = arith.addf %368, %369 : vector<2x32xf32>
    %cst_106 = arith.constant 2.000000e+00 : f32
    %371 = vector.broadcast %cst_106 : f32 to vector<2x32xf32>
    %372 = arith.mulf %371, %370 : vector<2x32xf32>
    %373 = arith.negf %372 : vector<2x32xf32>
    %374 = math.exp %373 : vector<2x32xf32>
    %cst_107 = arith.constant 1.000000e+00 : f32
    %375 = vector.broadcast %cst_107 : f32 to vector<2x32xf32>
    %376 = arith.addf %375, %374 : vector<2x32xf32>
    %377 = arith.divf %375, %376 : vector<2x32xf32>
    %cst_108 = arith.constant 2.000000e+00 : f32
    %378 = vector.broadcast %cst_108 : f32 to vector<2x32xf32>
    %379 = arith.mulf %378, %377 : vector<2x32xf32>
    %cst_109 = arith.constant 1.000000e+00 : f32
    %380 = vector.broadcast %cst_109 : f32 to vector<2x32xf32>
    %381 = arith.subf %379, %380 : vector<2x32xf32>
    %382 = arith.mulf %362, %381 : vector<2x32xf32>
    %383 = tpu.concatenate %382, %347 in 1 : vector<2x32xf32>, vector<2x32xf32> -> vector<2x64xf32>
    %384 = arith.truncf %383 : vector<2x64xf32> to vector<2x64xbf16>
    %cst_110 = arith.constant dense<0.000000e+00> : vector<2x128xf32>
    %385 = tpu.matmul %384, %1, %cst_110 {dimension_numbers = #tpu.dot_dimension_numbers<[1], [0], [0], [1], [0, 0, 1, 1], [], []>} : vector<2x64xbf16>, vector<64x128xbf16>, vector<2x128xf32> -> vector<2x128xf32>
    %386 = vector.broadcast %3 : vector<1x128xf32> to vector<2x128xf32>
    %387 = arith.addf %385, %386 : vector<2x128xf32>
    %388 = arith.negf %387 : vector<2x128xf32>
    %389 = math.exp %388 : vector<2x128xf32>
    %cst_111 = arith.constant 1.000000e+00 : f32
    %390 = vector.broadcast %cst_111 : f32 to vector<2x128xf32>
    %391 = arith.addf %390, %389 : vector<2x128xf32>
    %392 = arith.divf %390, %391 : vector<2x128xf32>
    %393 = vector.extract_strided_slice %392 {offsets = [0, 0], sizes = [2, 32], strides = [1, 1]} : vector<2x128xf32> to vector<2x32xf32>
    %394 = vector.extract_strided_slice %392 {offsets = [0, 32], sizes = [2, 32], strides = [1, 1]} : vector<2x128xf32> to vector<2x32xf32>
    %395 = vector.extract_strided_slice %392 {offsets = [0, 96], sizes = [2, 32], strides = [1, 1]} : vector<2x128xf32> to vector<2x32xf32>
    %396 = vector.extract_strided_slice %392 {offsets = [0, 64], sizes = [2, 32], strides = [1, 1]} : vector<2x128xf32> to vector<2x32xf32>
    %cst_112 = arith.constant 2.000000e+00 : f32
    %397 = vector.broadcast %cst_112 : f32 to vector<2x32xf32>
    %398 = arith.mulf %397, %396 : vector<2x32xf32>
    %cst_113 = arith.constant 1.000000e+00 : f32
    %399 = vector.broadcast %cst_113 : f32 to vector<2x32xf32>
    %400 = arith.subf %398, %399 : vector<2x32xf32>
    %401 = arith.mulf %394, %335 : vector<2x32xf32>
    %402 = arith.mulf %393, %400 : vector<2x32xf32>
    %403 = arith.addf %401, %402 : vector<2x32xf32>
    %cst_114 = arith.constant 2.000000e+00 : f32
    %404 = vector.broadcast %cst_114 : f32 to vector<2x32xf32>
    %405 = arith.mulf %404, %403 : vector<2x32xf32>
    %406 = arith.negf %405 : vector<2x32xf32>
    %407 = math.exp %406 : vector<2x32xf32>
    %cst_115 = arith.constant 1.000000e+00 : f32
    %408 = vector.broadcast %cst_115 : f32 to vector<2x32xf32>
    %409 = arith.addf %408, %407 : vector<2x32xf32>
    %410 = arith.divf %408, %409 : vector<2x32xf32>
    %cst_116 = arith.constant 2.000000e+00 : f32
    %411 = vector.broadcast %cst_116 : f32 to vector<2x32xf32>
    %412 = arith.mulf %411, %410 : vector<2x32xf32>
    %cst_117 = arith.constant 1.000000e+00 : f32
    %413 = vector.broadcast %cst_117 : f32 to vector<2x32xf32>
    %414 = arith.subf %412, %413 : vector<2x32xf32>
    %415 = arith.mulf %395, %414 : vector<2x32xf32>
    %c6 = arith.constant 6 : index
    %c0_118 = arith.constant 0 : index
    %c0_119 = arith.constant 0 : index
    %416 = vector.load %arg0[%c6, %c0_118, %c0_119] : memref<8x2x4xf32, #tpu.memory_space<vmem>>, vector<1x2x4xf32>
    %417 = vector.shape_cast %416 : vector<1x2x4xf32> to vector<2x4xf32>
    %418 = tpu.concatenate %417, %382 in 1 : vector<2x4xf32>, vector<2x32xf32> -> vector<2x36xf32>
    %419 = arith.truncf %418 : vector<2x36xf32> to vector<2x36xbf16>
    %cst_120 = arith.constant dense<0.000000e+00> : vector<2x128xf32>
    %420 = tpu.matmul %419, %0, %cst_120 {dimension_numbers = #tpu.dot_dimension_numbers<[1], [0], [0], [1], [0, 0, 1, 1], [], []>} : vector<2x36xbf16>, vector<36x128xbf16>, vector<2x128xf32> -> vector<2x128xf32>
    %421 = vector.broadcast %2 : vector<1x128xf32> to vector<2x128xf32>
    %422 = arith.addf %420, %421 : vector<2x128xf32>
    %423 = arith.negf %422 : vector<2x128xf32>
    %424 = math.exp %423 : vector<2x128xf32>
    %cst_121 = arith.constant 1.000000e+00 : f32
    %425 = vector.broadcast %cst_121 : f32 to vector<2x128xf32>
    %426 = arith.addf %425, %424 : vector<2x128xf32>
    %427 = arith.divf %425, %426 : vector<2x128xf32>
    %428 = vector.extract_strided_slice %427 {offsets = [0, 0], sizes = [2, 32], strides = [1, 1]} : vector<2x128xf32> to vector<2x32xf32>
    %429 = vector.extract_strided_slice %427 {offsets = [0, 32], sizes = [2, 32], strides = [1, 1]} : vector<2x128xf32> to vector<2x32xf32>
    %430 = vector.extract_strided_slice %427 {offsets = [0, 96], sizes = [2, 32], strides = [1, 1]} : vector<2x128xf32> to vector<2x32xf32>
    %431 = vector.extract_strided_slice %427 {offsets = [0, 64], sizes = [2, 32], strides = [1, 1]} : vector<2x128xf32> to vector<2x32xf32>
    %cst_122 = arith.constant 2.000000e+00 : f32
    %432 = vector.broadcast %cst_122 : f32 to vector<2x32xf32>
    %433 = arith.mulf %432, %431 : vector<2x32xf32>
    %cst_123 = arith.constant 1.000000e+00 : f32
    %434 = vector.broadcast %cst_123 : f32 to vector<2x32xf32>
    %435 = arith.subf %433, %434 : vector<2x32xf32>
    %436 = arith.mulf %429, %370 : vector<2x32xf32>
    %437 = arith.mulf %428, %435 : vector<2x32xf32>
    %438 = arith.addf %436, %437 : vector<2x32xf32>
    %cst_124 = arith.constant 2.000000e+00 : f32
    %439 = vector.broadcast %cst_124 : f32 to vector<2x32xf32>
    %440 = arith.mulf %439, %438 : vector<2x32xf32>
    %441 = arith.negf %440 : vector<2x32xf32>
    %442 = math.exp %441 : vector<2x32xf32>
    %cst_125 = arith.constant 1.000000e+00 : f32
    %443 = vector.broadcast %cst_125 : f32 to vector<2x32xf32>
    %444 = arith.addf %443, %442 : vector<2x32xf32>
    %445 = arith.divf %443, %444 : vector<2x32xf32>
    %cst_126 = arith.constant 2.000000e+00 : f32
    %446 = vector.broadcast %cst_126 : f32 to vector<2x32xf32>
    %447 = arith.mulf %446, %445 : vector<2x32xf32>
    %cst_127 = arith.constant 1.000000e+00 : f32
    %448 = vector.broadcast %cst_127 : f32 to vector<2x32xf32>
    %449 = arith.subf %447, %448 : vector<2x32xf32>
    %450 = arith.mulf %430, %449 : vector<2x32xf32>
    %451 = tpu.concatenate %450, %415 in 1 : vector<2x32xf32>, vector<2x32xf32> -> vector<2x64xf32>
    %452 = arith.truncf %451 : vector<2x64xf32> to vector<2x64xbf16>
    %cst_128 = arith.constant dense<0.000000e+00> : vector<2x128xf32>
    %453 = tpu.matmul %452, %1, %cst_128 {dimension_numbers = #tpu.dot_dimension_numbers<[1], [0], [0], [1], [0, 0, 1, 1], [], []>} : vector<2x64xbf16>, vector<64x128xbf16>, vector<2x128xf32> -> vector<2x128xf32>
    %454 = vector.broadcast %3 : vector<1x128xf32> to vector<2x128xf32>
    %455 = arith.addf %453, %454 : vector<2x128xf32>
    %456 = arith.negf %455 : vector<2x128xf32>
    %457 = math.exp %456 : vector<2x128xf32>
    %cst_129 = arith.constant 1.000000e+00 : f32
    %458 = vector.broadcast %cst_129 : f32 to vector<2x128xf32>
    %459 = arith.addf %458, %457 : vector<2x128xf32>
    %460 = arith.divf %458, %459 : vector<2x128xf32>
    %461 = vector.extract_strided_slice %460 {offsets = [0, 0], sizes = [2, 32], strides = [1, 1]} : vector<2x128xf32> to vector<2x32xf32>
    %462 = vector.extract_strided_slice %460 {offsets = [0, 32], sizes = [2, 32], strides = [1, 1]} : vector<2x128xf32> to vector<2x32xf32>
    %463 = vector.extract_strided_slice %460 {offsets = [0, 96], sizes = [2, 32], strides = [1, 1]} : vector<2x128xf32> to vector<2x32xf32>
    %464 = vector.extract_strided_slice %460 {offsets = [0, 64], sizes = [2, 32], strides = [1, 1]} : vector<2x128xf32> to vector<2x32xf32>
    %cst_130 = arith.constant 2.000000e+00 : f32
    %465 = vector.broadcast %cst_130 : f32 to vector<2x32xf32>
    %466 = arith.mulf %465, %464 : vector<2x32xf32>
    %cst_131 = arith.constant 1.000000e+00 : f32
    %467 = vector.broadcast %cst_131 : f32 to vector<2x32xf32>
    %468 = arith.subf %466, %467 : vector<2x32xf32>
    %469 = arith.mulf %462, %403 : vector<2x32xf32>
    %470 = arith.mulf %461, %468 : vector<2x32xf32>
    %471 = arith.addf %469, %470 : vector<2x32xf32>
    %cst_132 = arith.constant 2.000000e+00 : f32
    %472 = vector.broadcast %cst_132 : f32 to vector<2x32xf32>
    %473 = arith.mulf %472, %471 : vector<2x32xf32>
    %474 = arith.negf %473 : vector<2x32xf32>
    %475 = math.exp %474 : vector<2x32xf32>
    %cst_133 = arith.constant 1.000000e+00 : f32
    %476 = vector.broadcast %cst_133 : f32 to vector<2x32xf32>
    %477 = arith.addf %476, %475 : vector<2x32xf32>
    %478 = arith.divf %476, %477 : vector<2x32xf32>
    %cst_134 = arith.constant 2.000000e+00 : f32
    %479 = vector.broadcast %cst_134 : f32 to vector<2x32xf32>
    %480 = arith.mulf %479, %478 : vector<2x32xf32>
    %cst_135 = arith.constant 1.000000e+00 : f32
    %481 = vector.broadcast %cst_135 : f32 to vector<2x32xf32>
    %482 = arith.subf %480, %481 : vector<2x32xf32>
    %483 = arith.mulf %463, %482 : vector<2x32xf32>
    %c7 = arith.constant 7 : index
    %c0_136 = arith.constant 0 : index
    %c0_137 = arith.constant 0 : index
    %484 = vector.load %arg0[%c7, %c0_136, %c0_137] : memref<8x2x4xf32, #tpu.memory_space<vmem>>, vector<1x2x4xf32>
    %485 = vector.shape_cast %484 : vector<1x2x4xf32> to vector<2x4xf32>
    %486 = tpu.concatenate %485, %450 in 1 : vector<2x4xf32>, vector<2x32xf32> -> vector<2x36xf32>
    %487 = arith.truncf %486 : vector<2x36xf32> to vector<2x36xbf16>
    %cst_138 = arith.constant dense<0.000000e+00> : vector<2x128xf32>
    %488 = tpu.matmul %487, %0, %cst_138 {dimension_numbers = #tpu.dot_dimension_numbers<[1], [0], [0], [1], [0, 0, 1, 1], [], []>} : vector<2x36xbf16>, vector<36x128xbf16>, vector<2x128xf32> -> vector<2x128xf32>
    %489 = vector.broadcast %2 : vector<1x128xf32> to vector<2x128xf32>
    %490 = arith.addf %488, %489 : vector<2x128xf32>
    %491 = arith.negf %490 : vector<2x128xf32>
    %492 = math.exp %491 : vector<2x128xf32>
    %cst_139 = arith.constant 1.000000e+00 : f32
    %493 = vector.broadcast %cst_139 : f32 to vector<2x128xf32>
    %494 = arith.addf %493, %492 : vector<2x128xf32>
    %495 = arith.divf %493, %494 : vector<2x128xf32>
    %496 = vector.extract_strided_slice %495 {offsets = [0, 0], sizes = [2, 32], strides = [1, 1]} : vector<2x128xf32> to vector<2x32xf32>
    %497 = vector.extract_strided_slice %495 {offsets = [0, 32], sizes = [2, 32], strides = [1, 1]} : vector<2x128xf32> to vector<2x32xf32>
    %498 = vector.extract_strided_slice %495 {offsets = [0, 96], sizes = [2, 32], strides = [1, 1]} : vector<2x128xf32> to vector<2x32xf32>
    %499 = vector.extract_strided_slice %495 {offsets = [0, 64], sizes = [2, 32], strides = [1, 1]} : vector<2x128xf32> to vector<2x32xf32>
    %cst_140 = arith.constant 2.000000e+00 : f32
    %500 = vector.broadcast %cst_140 : f32 to vector<2x32xf32>
    %501 = arith.mulf %500, %499 : vector<2x32xf32>
    %cst_141 = arith.constant 1.000000e+00 : f32
    %502 = vector.broadcast %cst_141 : f32 to vector<2x32xf32>
    %503 = arith.subf %501, %502 : vector<2x32xf32>
    %504 = arith.mulf %497, %438 : vector<2x32xf32>
    %505 = arith.mulf %496, %503 : vector<2x32xf32>
    %506 = arith.addf %504, %505 : vector<2x32xf32>
    %cst_142 = arith.constant 2.000000e+00 : f32
    %507 = vector.broadcast %cst_142 : f32 to vector<2x32xf32>
    %508 = arith.mulf %507, %506 : vector<2x32xf32>
    %509 = arith.negf %508 : vector<2x32xf32>
    %510 = math.exp %509 : vector<2x32xf32>
    %cst_143 = arith.constant 1.000000e+00 : f32
    %511 = vector.broadcast %cst_143 : f32 to vector<2x32xf32>
    %512 = arith.addf %511, %510 : vector<2x32xf32>
    %513 = arith.divf %511, %512 : vector<2x32xf32>
    %cst_144 = arith.constant 2.000000e+00 : f32
    %514 = vector.broadcast %cst_144 : f32 to vector<2x32xf32>
    %515 = arith.mulf %514, %513 : vector<2x32xf32>
    %cst_145 = arith.constant 1.000000e+00 : f32
    %516 = vector.broadcast %cst_145 : f32 to vector<2x32xf32>
    %517 = arith.subf %515, %516 : vector<2x32xf32>
    %518 = arith.mulf %498, %517 : vector<2x32xf32>
    %519 = tpu.concatenate %518, %483 in 1 : vector<2x32xf32>, vector<2x32xf32> -> vector<2x64xf32>
    %520 = arith.truncf %519 : vector<2x64xf32> to vector<2x64xbf16>
    %cst_146 = arith.constant dense<0.000000e+00> : vector<2x128xf32>
    %521 = tpu.matmul %520, %1, %cst_146 {dimension_numbers = #tpu.dot_dimension_numbers<[1], [0], [0], [1], [0, 0, 1, 1], [], []>} : vector<2x64xbf16>, vector<64x128xbf16>, vector<2x128xf32> -> vector<2x128xf32>
    %522 = vector.broadcast %3 : vector<1x128xf32> to vector<2x128xf32>
    %523 = arith.addf %521, %522 : vector<2x128xf32>
    %524 = arith.negf %523 : vector<2x128xf32>
    %525 = math.exp %524 : vector<2x128xf32>
    %cst_147 = arith.constant 1.000000e+00 : f32
    %526 = vector.broadcast %cst_147 : f32 to vector<2x128xf32>
    %527 = arith.addf %526, %525 : vector<2x128xf32>
    %528 = arith.divf %526, %527 : vector<2x128xf32>
    %529 = vector.extract_strided_slice %528 {offsets = [0, 0], sizes = [2, 32], strides = [1, 1]} : vector<2x128xf32> to vector<2x32xf32>
    %530 = vector.extract_strided_slice %528 {offsets = [0, 32], sizes = [2, 32], strides = [1, 1]} : vector<2x128xf32> to vector<2x32xf32>
    %531 = vector.extract_strided_slice %528 {offsets = [0, 96], sizes = [2, 32], strides = [1, 1]} : vector<2x128xf32> to vector<2x32xf32>
    %532 = vector.extract_strided_slice %528 {offsets = [0, 64], sizes = [2, 32], strides = [1, 1]} : vector<2x128xf32> to vector<2x32xf32>
    %cst_148 = arith.constant 2.000000e+00 : f32
    %533 = vector.broadcast %cst_148 : f32 to vector<2x32xf32>
    %534 = arith.mulf %533, %532 : vector<2x32xf32>
    %cst_149 = arith.constant 1.000000e+00 : f32
    %535 = vector.broadcast %cst_149 : f32 to vector<2x32xf32>
    %536 = arith.subf %534, %535 : vector<2x32xf32>
    %537 = arith.mulf %530, %471 : vector<2x32xf32>
    %538 = arith.mulf %529, %536 : vector<2x32xf32>
    %539 = arith.addf %537, %538 : vector<2x32xf32>
    %cst_150 = arith.constant 2.000000e+00 : f32
    %540 = vector.broadcast %cst_150 : f32 to vector<2x32xf32>
    %541 = arith.mulf %540, %539 : vector<2x32xf32>
    %542 = arith.negf %541 : vector<2x32xf32>
    %543 = math.exp %542 : vector<2x32xf32>
    %cst_151 = arith.constant 1.000000e+00 : f32
    %544 = vector.broadcast %cst_151 : f32 to vector<2x32xf32>
    %545 = arith.addf %544, %543 : vector<2x32xf32>
    %546 = arith.divf %544, %545 : vector<2x32xf32>
    %cst_152 = arith.constant 2.000000e+00 : f32
    %547 = vector.broadcast %cst_152 : f32 to vector<2x32xf32>
    %548 = arith.mulf %547, %546 : vector<2x32xf32>
    %cst_153 = arith.constant 1.000000e+00 : f32
    %549 = vector.broadcast %cst_153 : f32 to vector<2x32xf32>
    %550 = arith.subf %548, %549 : vector<2x32xf32>
    %551 = arith.mulf %531, %550 : vector<2x32xf32>
    %c0_154 = arith.constant 0 : index
    %c0_155 = arith.constant 0 : index
    %552 = vector.load %arg1[%c0_154, %c0_155] : memref<2x3xf32, #tpu.memory_space<vmem>>, vector<2x3xf32>
    %c304 = arith.constant 304 : index
    %c0_156 = arith.constant 0 : index
    %553 = vector.load %arg2[%c304, %c0_156] : memref<336x256xbf16, #tpu.memory_space<vmem>>, vector<3x16xbf16>
    %554 = arith.truncf %552 : vector<2x3xf32> to vector<2x3xbf16>
    %cst_157 = arith.constant dense<0.000000e+00> : vector<2x16xf32>
    %555 = tpu.matmul %554, %553, %cst_157 {dimension_numbers = #tpu.dot_dimension_numbers<[1], [0], [0], [1], [0, 0, 1, 1], [], []>} : vector<2x3xbf16>, vector<3x16xbf16>, vector<2x16xf32> -> vector<2x16xf32>
    %c6_158 = arith.constant 6 : index
    %c0_159 = arith.constant 0 : index
    %556 = vector.load %arg3[%c6_158, %c0_159] : memref<8x128xf32, #tpu.memory_space<vmem>>, vector<1x16xf32>
    %557 = vector.broadcast %556 : vector<1x16xf32> to vector<2x16xf32>
    %558 = arith.addf %555, %557 : vector<2x16xf32>
    %cst_160 = arith.constant 0.000000e+00 : f32
    %559 = vector.broadcast %cst_160 : f32 to vector<2x16xf32>
    %560 = arith.cmpf oge, %558, %559 : vector<2x16xf32>
    %cst_161 = arith.constant 0.00999999977 : f32
    %561 = vector.broadcast %cst_161 : f32 to vector<2x16xf32>
    %562 = arith.mulf %561, %558 : vector<2x16xf32>
    %563 = arith.select %560, %558, %562 : vector<2x16xi1>, vector<2x16xf32>
    %c320 = arith.constant 320 : index
    %c0_162 = arith.constant 0 : index
    %564 = vector.load %arg2[%c320, %c0_162] : memref<336x256xbf16, #tpu.memory_space<vmem>>, vector<16x8xbf16>
    %565 = arith.truncf %563 : vector<2x16xf32> to vector<2x16xbf16>
    %cst_163 = arith.constant dense<0.000000e+00> : vector<2x8xf32>
    %566 = tpu.matmul %565, %564, %cst_163 {dimension_numbers = #tpu.dot_dimension_numbers<[1], [0], [0], [1], [0, 0, 1, 1], [], []>} : vector<2x16xbf16>, vector<16x8xbf16>, vector<2x8xf32> -> vector<2x8xf32>
    %c7_164 = arith.constant 7 : index
    %c0_165 = arith.constant 0 : index
    %567 = vector.load %arg3[%c7_164, %c0_165] : memref<8x128xf32, #tpu.memory_space<vmem>>, vector<1x8xf32>
    %568 = vector.broadcast %567 : vector<1x8xf32> to vector<2x8xf32>
    %569 = arith.addf %566, %568 : vector<2x8xf32>
    %c224 = arith.constant 224 : index
    %c0_166 = arith.constant 0 : index
    %570 = vector.load %arg2[%c224, %c0_166] : memref<336x256xbf16, #tpu.memory_space<vmem>>, vector<8x128xbf16>
    %571 = arith.truncf %569 : vector<2x8xf32> to vector<2x8xbf16>
    %cst_167 = arith.constant dense<0.000000e+00> : vector<2x128xf32>
    %572 = tpu.matmul %571, %570, %cst_167 {dimension_numbers = #tpu.dot_dimension_numbers<[1], [0], [0], [1], [0, 0, 1, 1], [], []>} : vector<2x8xbf16>, vector<8x128xbf16>, vector<2x128xf32> -> vector<2x128xf32>
    %c2_168 = arith.constant 2 : index
    %c0_169 = arith.constant 0 : index
    %573 = vector.load %arg3[%c2_168, %c0_169] : memref<8x128xf32, #tpu.memory_space<vmem>>, vector<1x128xf32>
    %574 = vector.broadcast %573 : vector<1x128xf32> to vector<2x128xf32>
    %575 = arith.addf %572, %574 : vector<2x128xf32>
    %c4_170 = arith.constant 4 : index
    %c0_171 = arith.constant 0 : index
    %576 = vector.load %arg3[%c4_170, %c0_171] : memref<8x128xf32, #tpu.memory_space<vmem>>, vector<1x128xf32>
    %577 = vector.broadcast %576 : vector<1x128xf32> to vector<2x128xf32>
    %578 = arith.addf %575, %577 : vector<2x128xf32>
    %c160 = arith.constant 160 : index
    %c0_172 = arith.constant 0 : index
    %579 = vector.load %arg2[%c160, %c0_172] : memref<336x256xbf16, #tpu.memory_space<vmem>>, vector<64x128xbf16>
    %c3_173 = arith.constant 3 : index
    %c0_174 = arith.constant 0 : index
    %580 = vector.load %arg3[%c3_173, %c0_174] : memref<8x128xf32, #tpu.memory_space<vmem>>, vector<1x128xf32>
    %c240 = arith.constant 240 : index
    %c0_175 = arith.constant 0 : index
    %581 = vector.load %arg2[%c240, %c0_175] : memref<336x256xbf16, #tpu.memory_space<vmem>>, vector<64x132xbf16>
    %c5_176 = arith.constant 5 : index
    %c0_177 = arith.constant 0 : index
    %582 = vector.load %arg3[%c5_176, %c0_177] : memref<8x128xf32, #tpu.memory_space<vmem>>, vector<1x4xf32>
    %c7_178 = arith.constant 7 : index
    %c0_179 = arith.constant 0 : index
    %c0_180 = arith.constant 0 : index
    %583 = vector.load %arg0[%c7_178, %c0_179, %c0_180] : memref<8x2x4xf32, #tpu.memory_space<vmem>>, vector<1x2x4xf32>
    %584 = vector.shape_cast %583 : vector<1x2x4xf32> to vector<2x4xf32>
    %585 = tpu.concatenate %584, %518 in 1 : vector<2x4xf32>, vector<2x32xf32> -> vector<2x36xf32>
    %c112 = arith.constant 112 : index
    %c0_181 = arith.constant 0 : index
    %586 = vector.load %arg2[%c112, %c0_181] : memref<336x256xbf16, #tpu.memory_space<vmem>>, vector<36x128xbf16>
    %587 = arith.truncf %585 : vector<2x36xf32> to vector<2x36xbf16>
    %cst_182 = arith.constant dense<0.000000e+00> : vector<2x128xf32>
    %588 = tpu.matmul %587, %586, %cst_182 {dimension_numbers = #tpu.dot_dimension_numbers<[1], [0], [0], [1], [0, 0, 1, 1], [], []>} : vector<2x36xbf16>, vector<36x128xbf16>, vector<2x128xf32> -> vector<2x128xf32>
    %589 = arith.addf %588, %575 : vector<2x128xf32>
    %590 = arith.negf %589 : vector<2x128xf32>
    %591 = math.exp %590 : vector<2x128xf32>
    %cst_183 = arith.constant 1.000000e+00 : f32
    %592 = vector.broadcast %cst_183 : f32 to vector<2x128xf32>
    %593 = arith.addf %592, %591 : vector<2x128xf32>
    %594 = arith.divf %592, %593 : vector<2x128xf32>
    %595 = vector.extract_strided_slice %594 {offsets = [0, 0], sizes = [2, 32], strides = [1, 1]} : vector<2x128xf32> to vector<2x32xf32>
    %596 = vector.extract_strided_slice %594 {offsets = [0, 32], sizes = [2, 32], strides = [1, 1]} : vector<2x128xf32> to vector<2x32xf32>
    %597 = vector.extract_strided_slice %594 {offsets = [0, 96], sizes = [2, 32], strides = [1, 1]} : vector<2x128xf32> to vector<2x32xf32>
    %598 = vector.extract_strided_slice %594 {offsets = [0, 64], sizes = [2, 32], strides = [1, 1]} : vector<2x128xf32> to vector<2x32xf32>
    %cst_184 = arith.constant 2.000000e+00 : f32
    %599 = vector.broadcast %cst_184 : f32 to vector<2x32xf32>
    %600 = arith.mulf %599, %598 : vector<2x32xf32>
    %cst_185 = arith.constant 1.000000e+00 : f32
    %601 = vector.broadcast %cst_185 : f32 to vector<2x32xf32>
    %602 = arith.subf %600, %601 : vector<2x32xf32>
    %603 = arith.mulf %596, %506 : vector<2x32xf32>
    %604 = arith.mulf %595, %602 : vector<2x32xf32>
    %605 = arith.addf %603, %604 : vector<2x32xf32>
    %cst_186 = arith.constant 2.000000e+00 : f32
    %606 = vector.broadcast %cst_186 : f32 to vector<2x32xf32>
    %607 = arith.mulf %606, %605 : vector<2x32xf32>
    %608 = arith.negf %607 : vector<2x32xf32>
    %609 = math.exp %608 : vector<2x32xf32>
    %cst_187 = arith.constant 1.000000e+00 : f32
    %610 = vector.broadcast %cst_187 : f32 to vector<2x32xf32>
    %611 = arith.addf %610, %609 : vector<2x32xf32>
    %612 = arith.divf %610, %611 : vector<2x32xf32>
    %cst_188 = arith.constant 2.000000e+00 : f32
    %613 = vector.broadcast %cst_188 : f32 to vector<2x32xf32>
    %614 = arith.mulf %613, %612 : vector<2x32xf32>
    %cst_189 = arith.constant 1.000000e+00 : f32
    %615 = vector.broadcast %cst_189 : f32 to vector<2x32xf32>
    %616 = arith.subf %614, %615 : vector<2x32xf32>
    %617 = arith.mulf %597, %616 : vector<2x32xf32>
    %618 = tpu.concatenate %617, %551 in 1 : vector<2x32xf32>, vector<2x32xf32> -> vector<2x64xf32>
    %619 = arith.truncf %618 : vector<2x64xf32> to vector<2x64xbf16>
    %cst_190 = arith.constant dense<0.000000e+00> : vector<2x128xf32>
    %620 = tpu.matmul %619, %579, %cst_190 {dimension_numbers = #tpu.dot_dimension_numbers<[1], [0], [0], [1], [0, 0, 1, 1], [], []>} : vector<2x64xbf16>, vector<64x128xbf16>, vector<2x128xf32> -> vector<2x128xf32>
    %621 = vector.broadcast %580 : vector<1x128xf32> to vector<2x128xf32>
    %622 = arith.addf %620, %621 : vector<2x128xf32>
    %623 = arith.negf %622 : vector<2x128xf32>
    %624 = math.exp %623 : vector<2x128xf32>
    %cst_191 = arith.constant 1.000000e+00 : f32
    %625 = vector.broadcast %cst_191 : f32 to vector<2x128xf32>
    %626 = arith.addf %625, %624 : vector<2x128xf32>
    %627 = arith.divf %625, %626 : vector<2x128xf32>
    %628 = vector.extract_strided_slice %627 {offsets = [0, 0], sizes = [2, 32], strides = [1, 1]} : vector<2x128xf32> to vector<2x32xf32>
    %629 = vector.extract_strided_slice %627 {offsets = [0, 32], sizes = [2, 32], strides = [1, 1]} : vector<2x128xf32> to vector<2x32xf32>
    %630 = vector.extract_strided_slice %627 {offsets = [0, 96], sizes = [2, 32], strides = [1, 1]} : vector<2x128xf32> to vector<2x32xf32>
    %631 = vector.extract_strided_slice %627 {offsets = [0, 64], sizes = [2, 32], strides = [1, 1]} : vector<2x128xf32> to vector<2x32xf32>
    %cst_192 = arith.constant 2.000000e+00 : f32
    %632 = vector.broadcast %cst_192 : f32 to vector<2x32xf32>
    %633 = arith.mulf %632, %631 : vector<2x32xf32>
    %cst_193 = arith.constant 1.000000e+00 : f32
    %634 = vector.broadcast %cst_193 : f32 to vector<2x32xf32>
    %635 = arith.subf %633, %634 : vector<2x32xf32>
    %636 = arith.mulf %629, %539 : vector<2x32xf32>
    %637 = arith.mulf %628, %635 : vector<2x32xf32>
    %638 = arith.addf %636, %637 : vector<2x32xf32>
    %cst_194 = arith.constant 2.000000e+00 : f32
    %639 = vector.broadcast %cst_194 : f32 to vector<2x32xf32>
    %640 = arith.mulf %639, %638 : vector<2x32xf32>
    %641 = arith.negf %640 : vector<2x32xf32>
    %642 = math.exp %641 : vector<2x32xf32>
    %cst_195 = arith.constant 1.000000e+00 : f32
    %643 = vector.broadcast %cst_195 : f32 to vector<2x32xf32>
    %644 = arith.addf %643, %642 : vector<2x32xf32>
    %645 = arith.divf %643, %644 : vector<2x32xf32>
    %cst_196 = arith.constant 2.000000e+00 : f32
    %646 = vector.broadcast %cst_196 : f32 to vector<2x32xf32>
    %647 = arith.mulf %646, %645 : vector<2x32xf32>
    %cst_197 = arith.constant 1.000000e+00 : f32
    %648 = vector.broadcast %cst_197 : f32 to vector<2x32xf32>
    %649 = arith.subf %647, %648 : vector<2x32xf32>
    %650 = arith.mulf %630, %649 : vector<2x32xf32>
    %651 = tpu.concatenate %650, %617 in 1 : vector<2x32xf32>, vector<2x32xf32> -> vector<2x64xf32>
    %652 = arith.truncf %651 : vector<2x64xf32> to vector<2x64xbf16>
    %cst_198 = arith.constant dense<0.000000e+00> : vector<2x132xf32>
    %653 = tpu.matmul %652, %581, %cst_198 {dimension_numbers = #tpu.dot_dimension_numbers<[1], [0], [0], [1], [0, 0, 1, 1], [], []>} : vector<2x64xbf16>, vector<64x132xbf16>, vector<2x132xf32> -> vector<2x132xf32>
    %654 = vector.extract_strided_slice %653 {offsets = [0, 128], sizes = [2, 4], strides = [1, 1]} : vector<2x132xf32> to vector<2x4xf32>
    %655 = vector.broadcast %582 : vector<1x4xf32> to vector<2x4xf32>
    %656 = arith.addf %654, %655 : vector<2x4xf32>
    %657 = vector.extract_strided_slice %653 {offsets = [0, 0], sizes = [2, 128], strides = [1, 1]} : vector<2x132xf32> to vector<2x128xf32>
    %658 = arith.addf %657, %578 : vector<2x128xf32>
    %659 = arith.negf %658 : vector<2x128xf32>
    %660 = math.exp %659 : vector<2x128xf32>
    %cst_199 = arith.constant 1.000000e+00 : f32
    %661 = vector.broadcast %cst_199 : f32 to vector<2x128xf32>
    %662 = arith.addf %661, %660 : vector<2x128xf32>
    %663 = arith.divf %661, %662 : vector<2x128xf32>
    %664 = vector.extract_strided_slice %663 {offsets = [0, 0], sizes = [2, 32], strides = [1, 1]} : vector<2x128xf32> to vector<2x32xf32>
    %665 = vector.extract_strided_slice %663 {offsets = [0, 32], sizes = [2, 32], strides = [1, 1]} : vector<2x128xf32> to vector<2x32xf32>
    %666 = vector.extract_strided_slice %663 {offsets = [0, 96], sizes = [2, 32], strides = [1, 1]} : vector<2x128xf32> to vector<2x32xf32>
    %667 = vector.extract_strided_slice %663 {offsets = [0, 64], sizes = [2, 32], strides = [1, 1]} : vector<2x128xf32> to vector<2x32xf32>
    %cst_200 = arith.constant 2.000000e+00 : f32
    %668 = vector.broadcast %cst_200 : f32 to vector<2x32xf32>
    %669 = arith.mulf %668, %667 : vector<2x32xf32>
    %cst_201 = arith.constant 1.000000e+00 : f32
    %670 = vector.broadcast %cst_201 : f32 to vector<2x32xf32>
    %671 = arith.subf %669, %670 : vector<2x32xf32>
    %672 = arith.mulf %665, %605 : vector<2x32xf32>
    %673 = arith.mulf %664, %671 : vector<2x32xf32>
    %674 = arith.addf %672, %673 : vector<2x32xf32>
    %cst_202 = arith.constant 2.000000e+00 : f32
    %675 = vector.broadcast %cst_202 : f32 to vector<2x32xf32>
    %676 = arith.mulf %675, %674 : vector<2x32xf32>
    %677 = arith.negf %676 : vector<2x32xf32>
    %678 = math.exp %677 : vector<2x32xf32>
    %cst_203 = arith.constant 1.000000e+00 : f32
    %679 = vector.broadcast %cst_203 : f32 to vector<2x32xf32>
    %680 = arith.addf %679, %678 : vector<2x32xf32>
    %681 = arith.divf %679, %680 : vector<2x32xf32>
    %cst_204 = arith.constant 2.000000e+00 : f32
    %682 = vector.broadcast %cst_204 : f32 to vector<2x32xf32>
    %683 = arith.mulf %682, %681 : vector<2x32xf32>
    %cst_205 = arith.constant 1.000000e+00 : f32
    %684 = vector.broadcast %cst_205 : f32 to vector<2x32xf32>
    %685 = arith.subf %683, %684 : vector<2x32xf32>
    %686 = arith.mulf %666, %685 : vector<2x32xf32>
    %687 = tpu.concatenate %686, %650 in 1 : vector<2x32xf32>, vector<2x32xf32> -> vector<2x64xf32>
    %688 = arith.truncf %687 : vector<2x64xf32> to vector<2x64xbf16>
    %cst_206 = arith.constant dense<0.000000e+00> : vector<2x128xf32>
    %689 = tpu.matmul %688, %579, %cst_206 {dimension_numbers = #tpu.dot_dimension_numbers<[1], [0], [0], [1], [0, 0, 1, 1], [], []>} : vector<2x64xbf16>, vector<64x128xbf16>, vector<2x128xf32> -> vector<2x128xf32>
    %690 = vector.broadcast %580 : vector<1x128xf32> to vector<2x128xf32>
    %691 = arith.addf %689, %690 : vector<2x128xf32>
    %692 = arith.negf %691 : vector<2x128xf32>
    %693 = math.exp %692 : vector<2x128xf32>
    %cst_207 = arith.constant 1.000000e+00 : f32
    %694 = vector.broadcast %cst_207 : f32 to vector<2x128xf32>
    %695 = arith.addf %694, %693 : vector<2x128xf32>
    %696 = arith.divf %694, %695 : vector<2x128xf32>
    %697 = vector.extract_strided_slice %696 {offsets = [0, 0], sizes = [2, 32], strides = [1, 1]} : vector<2x128xf32> to vector<2x32xf32>
    %698 = vector.extract_strided_slice %696 {offsets = [0, 32], sizes = [2, 32], strides = [1, 1]} : vector<2x128xf32> to vector<2x32xf32>
    %699 = vector.extract_strided_slice %696 {offsets = [0, 96], sizes = [2, 32], strides = [1, 1]} : vector<2x128xf32> to vector<2x32xf32>
    %700 = vector.extract_strided_slice %696 {offsets = [0, 64], sizes = [2, 32], strides = [1, 1]} : vector<2x128xf32> to vector<2x32xf32>
    %cst_208 = arith.constant 2.000000e+00 : f32
    %701 = vector.broadcast %cst_208 : f32 to vector<2x32xf32>
    %702 = arith.mulf %701, %700 : vector<2x32xf32>
    %cst_209 = arith.constant 1.000000e+00 : f32
    %703 = vector.broadcast %cst_209 : f32 to vector<2x32xf32>
    %704 = arith.subf %702, %703 : vector<2x32xf32>
    %705 = arith.mulf %698, %638 : vector<2x32xf32>
    %706 = arith.mulf %697, %704 : vector<2x32xf32>
    %707 = arith.addf %705, %706 : vector<2x32xf32>
    %cst_210 = arith.constant 2.000000e+00 : f32
    %708 = vector.broadcast %cst_210 : f32 to vector<2x32xf32>
    %709 = arith.mulf %708, %707 : vector<2x32xf32>
    %710 = arith.negf %709 : vector<2x32xf32>
    %711 = math.exp %710 : vector<2x32xf32>
    %cst_211 = arith.constant 1.000000e+00 : f32
    %712 = vector.broadcast %cst_211 : f32 to vector<2x32xf32>
    %713 = arith.addf %712, %711 : vector<2x32xf32>
    %714 = arith.divf %712, %713 : vector<2x32xf32>
    %cst_212 = arith.constant 2.000000e+00 : f32
    %715 = vector.broadcast %cst_212 : f32 to vector<2x32xf32>
    %716 = arith.mulf %715, %714 : vector<2x32xf32>
    %cst_213 = arith.constant 1.000000e+00 : f32
    %717 = vector.broadcast %cst_213 : f32 to vector<2x32xf32>
    %718 = arith.subf %716, %717 : vector<2x32xf32>
    %719 = arith.mulf %699, %718 : vector<2x32xf32>
    %720 = tpu.concatenate %719, %686 in 1 : vector<2x32xf32>, vector<2x32xf32> -> vector<2x64xf32>
    %721 = arith.truncf %720 : vector<2x64xf32> to vector<2x64xbf16>
    %cst_214 = arith.constant dense<0.000000e+00> : vector<2x132xf32>
    %722 = tpu.matmul %721, %581, %cst_214 {dimension_numbers = #tpu.dot_dimension_numbers<[1], [0], [0], [1], [0, 0, 1, 1], [], []>} : vector<2x64xbf16>, vector<64x132xbf16>, vector<2x132xf32> -> vector<2x132xf32>
    %723 = vector.extract_strided_slice %722 {offsets = [0, 128], sizes = [2, 4], strides = [1, 1]} : vector<2x132xf32> to vector<2x4xf32>
    %724 = vector.broadcast %582 : vector<1x4xf32> to vector<2x4xf32>
    %725 = arith.addf %723, %724 : vector<2x4xf32>
    %726 = vector.extract_strided_slice %722 {offsets = [0, 0], sizes = [2, 128], strides = [1, 1]} : vector<2x132xf32> to vector<2x128xf32>
    %727 = arith.addf %726, %578 : vector<2x128xf32>
    %728 = arith.negf %727 : vector<2x128xf32>
    %729 = math.exp %728 : vector<2x128xf32>
    %cst_215 = arith.constant 1.000000e+00 : f32
    %730 = vector.broadcast %cst_215 : f32 to vector<2x128xf32>
    %731 = arith.addf %730, %729 : vector<2x128xf32>
    %732 = arith.divf %730, %731 : vector<2x128xf32>
    %733 = vector.extract_strided_slice %732 {offsets = [0, 0], sizes = [2, 32], strides = [1, 1]} : vector<2x128xf32> to vector<2x32xf32>
    %734 = vector.extract_strided_slice %732 {offsets = [0, 32], sizes = [2, 32], strides = [1, 1]} : vector<2x128xf32> to vector<2x32xf32>
    %735 = vector.extract_strided_slice %732 {offsets = [0, 96], sizes = [2, 32], strides = [1, 1]} : vector<2x128xf32> to vector<2x32xf32>
    %736 = vector.extract_strided_slice %732 {offsets = [0, 64], sizes = [2, 32], strides = [1, 1]} : vector<2x128xf32> to vector<2x32xf32>
    %cst_216 = arith.constant 2.000000e+00 : f32
    %737 = vector.broadcast %cst_216 : f32 to vector<2x32xf32>
    %738 = arith.mulf %737, %736 : vector<2x32xf32>
    %cst_217 = arith.constant 1.000000e+00 : f32
    %739 = vector.broadcast %cst_217 : f32 to vector<2x32xf32>
    %740 = arith.subf %738, %739 : vector<2x32xf32>
    %741 = arith.mulf %734, %674 : vector<2x32xf32>
    %742 = arith.mulf %733, %740 : vector<2x32xf32>
    %743 = arith.addf %741, %742 : vector<2x32xf32>
    %cst_218 = arith.constant 2.000000e+00 : f32
    %744 = vector.broadcast %cst_218 : f32 to vector<2x32xf32>
    %745 = arith.mulf %744, %743 : vector<2x32xf32>
    %746 = arith.negf %745 : vector<2x32xf32>
    %747 = math.exp %746 : vector<2x32xf32>
    %cst_219 = arith.constant 1.000000e+00 : f32
    %748 = vector.broadcast %cst_219 : f32 to vector<2x32xf32>
    %749 = arith.addf %748, %747 : vector<2x32xf32>
    %750 = arith.divf %748, %749 : vector<2x32xf32>
    %cst_220 = arith.constant 2.000000e+00 : f32
    %751 = vector.broadcast %cst_220 : f32 to vector<2x32xf32>
    %752 = arith.mulf %751, %750 : vector<2x32xf32>
    %cst_221 = arith.constant 1.000000e+00 : f32
    %753 = vector.broadcast %cst_221 : f32 to vector<2x32xf32>
    %754 = arith.subf %752, %753 : vector<2x32xf32>
    %755 = arith.mulf %735, %754 : vector<2x32xf32>
    %756 = tpu.concatenate %755, %719 in 1 : vector<2x32xf32>, vector<2x32xf32> -> vector<2x64xf32>
    %757 = arith.truncf %756 : vector<2x64xf32> to vector<2x64xbf16>
    %cst_222 = arith.constant dense<0.000000e+00> : vector<2x128xf32>
    %758 = tpu.matmul %757, %579, %cst_222 {dimension_numbers = #tpu.dot_dimension_numbers<[1], [0], [0], [1], [0, 0, 1, 1], [], []>} : vector<2x64xbf16>, vector<64x128xbf16>, vector<2x128xf32> -> vector<2x128xf32>
    %759 = vector.broadcast %580 : vector<1x128xf32> to vector<2x128xf32>
    %760 = arith.addf %758, %759 : vector<2x128xf32>
    %761 = arith.negf %760 : vector<2x128xf32>
    %762 = math.exp %761 : vector<2x128xf32>
    %cst_223 = arith.constant 1.000000e+00 : f32
    %763 = vector.broadcast %cst_223 : f32 to vector<2x128xf32>
    %764 = arith.addf %763, %762 : vector<2x128xf32>
    %765 = arith.divf %763, %764 : vector<2x128xf32>
    %766 = vector.extract_strided_slice %765 {offsets = [0, 0], sizes = [2, 32], strides = [1, 1]} : vector<2x128xf32> to vector<2x32xf32>
    %767 = vector.extract_strided_slice %765 {offsets = [0, 32], sizes = [2, 32], strides = [1, 1]} : vector<2x128xf32> to vector<2x32xf32>
    %768 = vector.extract_strided_slice %765 {offsets = [0, 96], sizes = [2, 32], strides = [1, 1]} : vector<2x128xf32> to vector<2x32xf32>
    %769 = vector.extract_strided_slice %765 {offsets = [0, 64], sizes = [2, 32], strides = [1, 1]} : vector<2x128xf32> to vector<2x32xf32>
    %cst_224 = arith.constant 2.000000e+00 : f32
    %770 = vector.broadcast %cst_224 : f32 to vector<2x32xf32>
    %771 = arith.mulf %770, %769 : vector<2x32xf32>
    %cst_225 = arith.constant 1.000000e+00 : f32
    %772 = vector.broadcast %cst_225 : f32 to vector<2x32xf32>
    %773 = arith.subf %771, %772 : vector<2x32xf32>
    %774 = arith.mulf %767, %707 : vector<2x32xf32>
    %775 = arith.mulf %766, %773 : vector<2x32xf32>
    %776 = arith.addf %774, %775 : vector<2x32xf32>
    %cst_226 = arith.constant 2.000000e+00 : f32
    %777 = vector.broadcast %cst_226 : f32 to vector<2x32xf32>
    %778 = arith.mulf %777, %776 : vector<2x32xf32>
    %779 = arith.negf %778 : vector<2x32xf32>
    %780 = math.exp %779 : vector<2x32xf32>
    %cst_227 = arith.constant 1.000000e+00 : f32
    %781 = vector.broadcast %cst_227 : f32 to vector<2x32xf32>
    %782 = arith.addf %781, %780 : vector<2x32xf32>
    %783 = arith.divf %781, %782 : vector<2x32xf32>
    %cst_228 = arith.constant 2.000000e+00 : f32
    %784 = vector.broadcast %cst_228 : f32 to vector<2x32xf32>
    %785 = arith.mulf %784, %783 : vector<2x32xf32>
    %cst_229 = arith.constant 1.000000e+00 : f32
    %786 = vector.broadcast %cst_229 : f32 to vector<2x32xf32>
    %787 = arith.subf %785, %786 : vector<2x32xf32>
    %788 = arith.mulf %768, %787 : vector<2x32xf32>
    %789 = tpu.concatenate %788, %755 in 1 : vector<2x32xf32>, vector<2x32xf32> -> vector<2x64xf32>
    %790 = arith.truncf %789 : vector<2x64xf32> to vector<2x64xbf16>
    %cst_230 = arith.constant dense<0.000000e+00> : vector<2x132xf32>
    %791 = tpu.matmul %790, %581, %cst_230 {dimension_numbers = #tpu.dot_dimension_numbers<[1], [0], [0], [1], [0, 0, 1, 1], [], []>} : vector<2x64xbf16>, vector<64x132xbf16>, vector<2x132xf32> -> vector<2x132xf32>
    %792 = vector.extract_strided_slice %791 {offsets = [0, 128], sizes = [2, 4], strides = [1, 1]} : vector<2x132xf32> to vector<2x4xf32>
    %793 = vector.broadcast %582 : vector<1x4xf32> to vector<2x4xf32>
    %794 = arith.addf %792, %793 : vector<2x4xf32>
    %795 = vector.extract_strided_slice %791 {offsets = [0, 0], sizes = [2, 128], strides = [1, 1]} : vector<2x132xf32> to vector<2x128xf32>
    %796 = arith.addf %795, %578 : vector<2x128xf32>
    %797 = arith.negf %796 : vector<2x128xf32>
    %798 = math.exp %797 : vector<2x128xf32>
    %cst_231 = arith.constant 1.000000e+00 : f32
    %799 = vector.broadcast %cst_231 : f32 to vector<2x128xf32>
    %800 = arith.addf %799, %798 : vector<2x128xf32>
    %801 = arith.divf %799, %800 : vector<2x128xf32>
    %802 = vector.extract_strided_slice %801 {offsets = [0, 0], sizes = [2, 32], strides = [1, 1]} : vector<2x128xf32> to vector<2x32xf32>
    %803 = vector.extract_strided_slice %801 {offsets = [0, 32], sizes = [2, 32], strides = [1, 1]} : vector<2x128xf32> to vector<2x32xf32>
    %804 = vector.extract_strided_slice %801 {offsets = [0, 96], sizes = [2, 32], strides = [1, 1]} : vector<2x128xf32> to vector<2x32xf32>
    %805 = vector.extract_strided_slice %801 {offsets = [0, 64], sizes = [2, 32], strides = [1, 1]} : vector<2x128xf32> to vector<2x32xf32>
    %cst_232 = arith.constant 2.000000e+00 : f32
    %806 = vector.broadcast %cst_232 : f32 to vector<2x32xf32>
    %807 = arith.mulf %806, %805 : vector<2x32xf32>
    %cst_233 = arith.constant 1.000000e+00 : f32
    %808 = vector.broadcast %cst_233 : f32 to vector<2x32xf32>
    %809 = arith.subf %807, %808 : vector<2x32xf32>
    %810 = arith.mulf %803, %743 : vector<2x32xf32>
    %811 = arith.mulf %802, %809 : vector<2x32xf32>
    %812 = arith.addf %810, %811 : vector<2x32xf32>
    %cst_234 = arith.constant 2.000000e+00 : f32
    %813 = vector.broadcast %cst_234 : f32 to vector<2x32xf32>
    %814 = arith.mulf %813, %812 : vector<2x32xf32>
    %815 = arith.negf %814 : vector<2x32xf32>
    %816 = math.exp %815 : vector<2x32xf32>
    %cst_235 = arith.constant 1.000000e+00 : f32
    %817 = vector.broadcast %cst_235 : f32 to vector<2x32xf32>
    %818 = arith.addf %817, %816 : vector<2x32xf32>
    %819 = arith.divf %817, %818 : vector<2x32xf32>
    %cst_236 = arith.constant 2.000000e+00 : f32
    %820 = vector.broadcast %cst_236 : f32 to vector<2x32xf32>
    %821 = arith.mulf %820, %819 : vector<2x32xf32>
    %cst_237 = arith.constant 1.000000e+00 : f32
    %822 = vector.broadcast %cst_237 : f32 to vector<2x32xf32>
    %823 = arith.subf %821, %822 : vector<2x32xf32>
    %824 = arith.mulf %804, %823 : vector<2x32xf32>
    %825 = tpu.concatenate %824, %788 in 1 : vector<2x32xf32>, vector<2x32xf32> -> vector<2x64xf32>
    %826 = arith.truncf %825 : vector<2x64xf32> to vector<2x64xbf16>
    %cst_238 = arith.constant dense<0.000000e+00> : vector<2x128xf32>
    %827 = tpu.matmul %826, %579, %cst_238 {dimension_numbers = #tpu.dot_dimension_numbers<[1], [0], [0], [1], [0, 0, 1, 1], [], []>} : vector<2x64xbf16>, vector<64x128xbf16>, vector<2x128xf32> -> vector<2x128xf32>
    %828 = vector.broadcast %580 : vector<1x128xf32> to vector<2x128xf32>
    %829 = arith.addf %827, %828 : vector<2x128xf32>
    %830 = arith.negf %829 : vector<2x128xf32>
    %831 = math.exp %830 : vector<2x128xf32>
    %cst_239 = arith.constant 1.000000e+00 : f32
    %832 = vector.broadcast %cst_239 : f32 to vector<2x128xf32>
    %833 = arith.addf %832, %831 : vector<2x128xf32>
    %834 = arith.divf %832, %833 : vector<2x128xf32>
    %835 = vector.extract_strided_slice %834 {offsets = [0, 0], sizes = [2, 32], strides = [1, 1]} : vector<2x128xf32> to vector<2x32xf32>
    %836 = vector.extract_strided_slice %834 {offsets = [0, 32], sizes = [2, 32], strides = [1, 1]} : vector<2x128xf32> to vector<2x32xf32>
    %837 = vector.extract_strided_slice %834 {offsets = [0, 96], sizes = [2, 32], strides = [1, 1]} : vector<2x128xf32> to vector<2x32xf32>
    %838 = vector.extract_strided_slice %834 {offsets = [0, 64], sizes = [2, 32], strides = [1, 1]} : vector<2x128xf32> to vector<2x32xf32>
    %cst_240 = arith.constant 2.000000e+00 : f32
    %839 = vector.broadcast %cst_240 : f32 to vector<2x32xf32>
    %840 = arith.mulf %839, %838 : vector<2x32xf32>
    %cst_241 = arith.constant 1.000000e+00 : f32
    %841 = vector.broadcast %cst_241 : f32 to vector<2x32xf32>
    %842 = arith.subf %840, %841 : vector<2x32xf32>
    %843 = arith.mulf %836, %776 : vector<2x32xf32>
    %844 = arith.mulf %835, %842 : vector<2x32xf32>
    %845 = arith.addf %843, %844 : vector<2x32xf32>
    %cst_242 = arith.constant 2.000000e+00 : f32
    %846 = vector.broadcast %cst_242 : f32 to vector<2x32xf32>
    %847 = arith.mulf %846, %845 : vector<2x32xf32>
    %848 = arith.negf %847 : vector<2x32xf32>
    %849 = math.exp %848 : vector<2x32xf32>
    %cst_243 = arith.constant 1.000000e+00 : f32
    %850 = vector.broadcast %cst_243 : f32 to vector<2x32xf32>
    %851 = arith.addf %850, %849 : vector<2x32xf32>
    %852 = arith.divf %850, %851 : vector<2x32xf32>
    %cst_244 = arith.constant 2.000000e+00 : f32
    %853 = vector.broadcast %cst_244 : f32 to vector<2x32xf32>
    %854 = arith.mulf %853, %852 : vector<2x32xf32>
    %cst_245 = arith.constant 1.000000e+00 : f32
    %855 = vector.broadcast %cst_245 : f32 to vector<2x32xf32>
    %856 = arith.subf %854, %855 : vector<2x32xf32>
    %857 = arith.mulf %837, %856 : vector<2x32xf32>
    %858 = tpu.concatenate %857, %824 in 1 : vector<2x32xf32>, vector<2x32xf32> -> vector<2x64xf32>
    %859 = arith.truncf %858 : vector<2x64xf32> to vector<2x64xbf16>
    %cst_246 = arith.constant dense<0.000000e+00> : vector<2x132xf32>
    %860 = tpu.matmul %859, %581, %cst_246 {dimension_numbers = #tpu.dot_dimension_numbers<[1], [0], [0], [1], [0, 0, 1, 1], [], []>} : vector<2x64xbf16>, vector<64x132xbf16>, vector<2x132xf32> -> vector<2x132xf32>
    %861 = vector.extract_strided_slice %860 {offsets = [0, 128], sizes = [2, 4], strides = [1, 1]} : vector<2x132xf32> to vector<2x4xf32>
    %862 = vector.broadcast %582 : vector<1x4xf32> to vector<2x4xf32>
    %863 = arith.addf %861, %862 : vector<2x4xf32>
    %864 = vector.extract_strided_slice %860 {offsets = [0, 0], sizes = [2, 128], strides = [1, 1]} : vector<2x132xf32> to vector<2x128xf32>
    %865 = arith.addf %864, %578 : vector<2x128xf32>
    %866 = arith.negf %865 : vector<2x128xf32>
    %867 = math.exp %866 : vector<2x128xf32>
    %cst_247 = arith.constant 1.000000e+00 : f32
    %868 = vector.broadcast %cst_247 : f32 to vector<2x128xf32>
    %869 = arith.addf %868, %867 : vector<2x128xf32>
    %870 = arith.divf %868, %869 : vector<2x128xf32>
    %871 = vector.extract_strided_slice %870 {offsets = [0, 0], sizes = [2, 32], strides = [1, 1]} : vector<2x128xf32> to vector<2x32xf32>
    %872 = vector.extract_strided_slice %870 {offsets = [0, 32], sizes = [2, 32], strides = [1, 1]} : vector<2x128xf32> to vector<2x32xf32>
    %873 = vector.extract_strided_slice %870 {offsets = [0, 96], sizes = [2, 32], strides = [1, 1]} : vector<2x128xf32> to vector<2x32xf32>
    %874 = vector.extract_strided_slice %870 {offsets = [0, 64], sizes = [2, 32], strides = [1, 1]} : vector<2x128xf32> to vector<2x32xf32>
    %cst_248 = arith.constant 2.000000e+00 : f32
    %875 = vector.broadcast %cst_248 : f32 to vector<2x32xf32>
    %876 = arith.mulf %875, %874 : vector<2x32xf32>
    %cst_249 = arith.constant 1.000000e+00 : f32
    %877 = vector.broadcast %cst_249 : f32 to vector<2x32xf32>
    %878 = arith.subf %876, %877 : vector<2x32xf32>
    %879 = arith.mulf %872, %812 : vector<2x32xf32>
    %880 = arith.mulf %871, %878 : vector<2x32xf32>
    %881 = arith.addf %879, %880 : vector<2x32xf32>
    %cst_250 = arith.constant 2.000000e+00 : f32
    %882 = vector.broadcast %cst_250 : f32 to vector<2x32xf32>
    %883 = arith.mulf %882, %881 : vector<2x32xf32>
    %884 = arith.negf %883 : vector<2x32xf32>
    %885 = math.exp %884 : vector<2x32xf32>
    %cst_251 = arith.constant 1.000000e+00 : f32
    %886 = vector.broadcast %cst_251 : f32 to vector<2x32xf32>
    %887 = arith.addf %886, %885 : vector<2x32xf32>
    %888 = arith.divf %886, %887 : vector<2x32xf32>
    %cst_252 = arith.constant 2.000000e+00 : f32
    %889 = vector.broadcast %cst_252 : f32 to vector<2x32xf32>
    %890 = arith.mulf %889, %888 : vector<2x32xf32>
    %cst_253 = arith.constant 1.000000e+00 : f32
    %891 = vector.broadcast %cst_253 : f32 to vector<2x32xf32>
    %892 = arith.subf %890, %891 : vector<2x32xf32>
    %893 = arith.mulf %873, %892 : vector<2x32xf32>
    %894 = tpu.concatenate %893, %857 in 1 : vector<2x32xf32>, vector<2x32xf32> -> vector<2x64xf32>
    %895 = arith.truncf %894 : vector<2x64xf32> to vector<2x64xbf16>
    %cst_254 = arith.constant dense<0.000000e+00> : vector<2x128xf32>
    %896 = tpu.matmul %895, %579, %cst_254 {dimension_numbers = #tpu.dot_dimension_numbers<[1], [0], [0], [1], [0, 0, 1, 1], [], []>} : vector<2x64xbf16>, vector<64x128xbf16>, vector<2x128xf32> -> vector<2x128xf32>
    %897 = vector.broadcast %580 : vector<1x128xf32> to vector<2x128xf32>
    %898 = arith.addf %896, %897 : vector<2x128xf32>
    %899 = arith.negf %898 : vector<2x128xf32>
    %900 = math.exp %899 : vector<2x128xf32>
    %cst_255 = arith.constant 1.000000e+00 : f32
    %901 = vector.broadcast %cst_255 : f32 to vector<2x128xf32>
    %902 = arith.addf %901, %900 : vector<2x128xf32>
    %903 = arith.divf %901, %902 : vector<2x128xf32>
    %904 = vector.extract_strided_slice %903 {offsets = [0, 0], sizes = [2, 32], strides = [1, 1]} : vector<2x128xf32> to vector<2x32xf32>
    %905 = vector.extract_strided_slice %903 {offsets = [0, 32], sizes = [2, 32], strides = [1, 1]} : vector<2x128xf32> to vector<2x32xf32>
    %906 = vector.extract_strided_slice %903 {offsets = [0, 96], sizes = [2, 32], strides = [1, 1]} : vector<2x128xf32> to vector<2x32xf32>
    %907 = vector.extract_strided_slice %903 {offsets = [0, 64], sizes = [2, 32], strides = [1, 1]} : vector<2x128xf32> to vector<2x32xf32>
    %cst_256 = arith.constant 2.000000e+00 : f32
    %908 = vector.broadcast %cst_256 : f32 to vector<2x32xf32>
    %909 = arith.mulf %908, %907 : vector<2x32xf32>
    %cst_257 = arith.constant 1.000000e+00 : f32
    %910 = vector.broadcast %cst_257 : f32 to vector<2x32xf32>
    %911 = arith.subf %909, %910 : vector<2x32xf32>
    %912 = arith.mulf %905, %845 : vector<2x32xf32>
    %913 = arith.mulf %904, %911 : vector<2x32xf32>
    %914 = arith.addf %912, %913 : vector<2x32xf32>
    %cst_258 = arith.constant 2.000000e+00 : f32
    %915 = vector.broadcast %cst_258 : f32 to vector<2x32xf32>
    %916 = arith.mulf %915, %914 : vector<2x32xf32>
    %917 = arith.negf %916 : vector<2x32xf32>
    %918 = math.exp %917 : vector<2x32xf32>
    %cst_259 = arith.constant 1.000000e+00 : f32
    %919 = vector.broadcast %cst_259 : f32 to vector<2x32xf32>
    %920 = arith.addf %919, %918 : vector<2x32xf32>
    %921 = arith.divf %919, %920 : vector<2x32xf32>
    %cst_260 = arith.constant 2.000000e+00 : f32
    %922 = vector.broadcast %cst_260 : f32 to vector<2x32xf32>
    %923 = arith.mulf %922, %921 : vector<2x32xf32>
    %cst_261 = arith.constant 1.000000e+00 : f32
    %924 = vector.broadcast %cst_261 : f32 to vector<2x32xf32>
    %925 = arith.subf %923, %924 : vector<2x32xf32>
    %926 = arith.mulf %906, %925 : vector<2x32xf32>
    %927 = tpu.concatenate %926, %893 in 1 : vector<2x32xf32>, vector<2x32xf32> -> vector<2x64xf32>
    %928 = arith.truncf %927 : vector<2x64xf32> to vector<2x64xbf16>
    %cst_262 = arith.constant dense<0.000000e+00> : vector<2x132xf32>
    %929 = tpu.matmul %928, %581, %cst_262 {dimension_numbers = #tpu.dot_dimension_numbers<[1], [0], [0], [1], [0, 0, 1, 1], [], []>} : vector<2x64xbf16>, vector<64x132xbf16>, vector<2x132xf32> -> vector<2x132xf32>
    %930 = vector.extract_strided_slice %929 {offsets = [0, 128], sizes = [2, 4], strides = [1, 1]} : vector<2x132xf32> to vector<2x4xf32>
    %931 = vector.broadcast %582 : vector<1x4xf32> to vector<2x4xf32>
    %932 = arith.addf %930, %931 : vector<2x4xf32>
    %933 = vector.extract_strided_slice %929 {offsets = [0, 0], sizes = [2, 128], strides = [1, 1]} : vector<2x132xf32> to vector<2x128xf32>
    %934 = arith.addf %933, %578 : vector<2x128xf32>
    %935 = arith.negf %934 : vector<2x128xf32>
    %936 = math.exp %935 : vector<2x128xf32>
    %cst_263 = arith.constant 1.000000e+00 : f32
    %937 = vector.broadcast %cst_263 : f32 to vector<2x128xf32>
    %938 = arith.addf %937, %936 : vector<2x128xf32>
    %939 = arith.divf %937, %938 : vector<2x128xf32>
    %940 = vector.extract_strided_slice %939 {offsets = [0, 0], sizes = [2, 32], strides = [1, 1]} : vector<2x128xf32> to vector<2x32xf32>
    %941 = vector.extract_strided_slice %939 {offsets = [0, 32], sizes = [2, 32], strides = [1, 1]} : vector<2x128xf32> to vector<2x32xf32>
    %942 = vector.extract_strided_slice %939 {offsets = [0, 96], sizes = [2, 32], strides = [1, 1]} : vector<2x128xf32> to vector<2x32xf32>
    %943 = vector.extract_strided_slice %939 {offsets = [0, 64], sizes = [2, 32], strides = [1, 1]} : vector<2x128xf32> to vector<2x32xf32>
    %cst_264 = arith.constant 2.000000e+00 : f32
    %944 = vector.broadcast %cst_264 : f32 to vector<2x32xf32>
    %945 = arith.mulf %944, %943 : vector<2x32xf32>
    %cst_265 = arith.constant 1.000000e+00 : f32
    %946 = vector.broadcast %cst_265 : f32 to vector<2x32xf32>
    %947 = arith.subf %945, %946 : vector<2x32xf32>
    %948 = arith.mulf %941, %881 : vector<2x32xf32>
    %949 = arith.mulf %940, %947 : vector<2x32xf32>
    %950 = arith.addf %948, %949 : vector<2x32xf32>
    %cst_266 = arith.constant 2.000000e+00 : f32
    %951 = vector.broadcast %cst_266 : f32 to vector<2x32xf32>
    %952 = arith.mulf %951, %950 : vector<2x32xf32>
    %953 = arith.negf %952 : vector<2x32xf32>
    %954 = math.exp %953 : vector<2x32xf32>
    %cst_267 = arith.constant 1.000000e+00 : f32
    %955 = vector.broadcast %cst_267 : f32 to vector<2x32xf32>
    %956 = arith.addf %955, %954 : vector<2x32xf32>
    %957 = arith.divf %955, %956 : vector<2x32xf32>
    %cst_268 = arith.constant 2.000000e+00 : f32
    %958 = vector.broadcast %cst_268 : f32 to vector<2x32xf32>
    %959 = arith.mulf %958, %957 : vector<2x32xf32>
    %cst_269 = arith.constant 1.000000e+00 : f32
    %960 = vector.broadcast %cst_269 : f32 to vector<2x32xf32>
    %961 = arith.subf %959, %960 : vector<2x32xf32>
    %962 = arith.mulf %942, %961 : vector<2x32xf32>
    %963 = tpu.concatenate %962, %926 in 1 : vector<2x32xf32>, vector<2x32xf32> -> vector<2x64xf32>
    %964 = arith.truncf %963 : vector<2x64xf32> to vector<2x64xbf16>
    %cst_270 = arith.constant dense<0.000000e+00> : vector<2x128xf32>
    %965 = tpu.matmul %964, %579, %cst_270 {dimension_numbers = #tpu.dot_dimension_numbers<[1], [0], [0], [1], [0, 0, 1, 1], [], []>} : vector<2x64xbf16>, vector<64x128xbf16>, vector<2x128xf32> -> vector<2x128xf32>
    %966 = vector.broadcast %580 : vector<1x128xf32> to vector<2x128xf32>
    %967 = arith.addf %965, %966 : vector<2x128xf32>
    %968 = arith.negf %967 : vector<2x128xf32>
    %969 = math.exp %968 : vector<2x128xf32>
    %cst_271 = arith.constant 1.000000e+00 : f32
    %970 = vector.broadcast %cst_271 : f32 to vector<2x128xf32>
    %971 = arith.addf %970, %969 : vector<2x128xf32>
    %972 = arith.divf %970, %971 : vector<2x128xf32>
    %973 = vector.extract_strided_slice %972 {offsets = [0, 0], sizes = [2, 32], strides = [1, 1]} : vector<2x128xf32> to vector<2x32xf32>
    %974 = vector.extract_strided_slice %972 {offsets = [0, 32], sizes = [2, 32], strides = [1, 1]} : vector<2x128xf32> to vector<2x32xf32>
    %975 = vector.extract_strided_slice %972 {offsets = [0, 96], sizes = [2, 32], strides = [1, 1]} : vector<2x128xf32> to vector<2x32xf32>
    %976 = vector.extract_strided_slice %972 {offsets = [0, 64], sizes = [2, 32], strides = [1, 1]} : vector<2x128xf32> to vector<2x32xf32>
    %cst_272 = arith.constant 2.000000e+00 : f32
    %977 = vector.broadcast %cst_272 : f32 to vector<2x32xf32>
    %978 = arith.mulf %977, %976 : vector<2x32xf32>
    %cst_273 = arith.constant 1.000000e+00 : f32
    %979 = vector.broadcast %cst_273 : f32 to vector<2x32xf32>
    %980 = arith.subf %978, %979 : vector<2x32xf32>
    %981 = arith.mulf %974, %914 : vector<2x32xf32>
    %982 = arith.mulf %973, %980 : vector<2x32xf32>
    %983 = arith.addf %981, %982 : vector<2x32xf32>
    %cst_274 = arith.constant 2.000000e+00 : f32
    %984 = vector.broadcast %cst_274 : f32 to vector<2x32xf32>
    %985 = arith.mulf %984, %983 : vector<2x32xf32>
    %986 = arith.negf %985 : vector<2x32xf32>
    %987 = math.exp %986 : vector<2x32xf32>
    %cst_275 = arith.constant 1.000000e+00 : f32
    %988 = vector.broadcast %cst_275 : f32 to vector<2x32xf32>
    %989 = arith.addf %988, %987 : vector<2x32xf32>
    %990 = arith.divf %988, %989 : vector<2x32xf32>
    %cst_276 = arith.constant 2.000000e+00 : f32
    %991 = vector.broadcast %cst_276 : f32 to vector<2x32xf32>
    %992 = arith.mulf %991, %990 : vector<2x32xf32>
    %cst_277 = arith.constant 1.000000e+00 : f32
    %993 = vector.broadcast %cst_277 : f32 to vector<2x32xf32>
    %994 = arith.subf %992, %993 : vector<2x32xf32>
    %995 = arith.mulf %975, %994 : vector<2x32xf32>
    %996 = tpu.concatenate %995, %962 in 1 : vector<2x32xf32>, vector<2x32xf32> -> vector<2x64xf32>
    %997 = arith.truncf %996 : vector<2x64xf32> to vector<2x64xbf16>
    %cst_278 = arith.constant dense<0.000000e+00> : vector<2x132xf32>
    %998 = tpu.matmul %997, %581, %cst_278 {dimension_numbers = #tpu.dot_dimension_numbers<[1], [0], [0], [1], [0, 0, 1, 1], [], []>} : vector<2x64xbf16>, vector<64x132xbf16>, vector<2x132xf32> -> vector<2x132xf32>
    %999 = vector.extract_strided_slice %998 {offsets = [0, 128], sizes = [2, 4], strides = [1, 1]} : vector<2x132xf32> to vector<2x4xf32>
    %1000 = vector.broadcast %582 : vector<1x4xf32> to vector<2x4xf32>
    %1001 = arith.addf %999, %1000 : vector<2x4xf32>
    %1002 = tpu.concatenate %656, %725, %794, %863, %932, %1001 in 0 : vector<2x4xf32>, vector<2x4xf32>, vector<2x4xf32>, vector<2x4xf32>, vector<2x4xf32>, vector<2x4xf32> -> vector<12x4xf32>
    %c0_279 = arith.constant 0 : index
    %c0_280 = arith.constant 0 : index
    %1003 = vector.load %arg4[%c0_279, %c0_280] : memref<12x4xf32, #tpu.memory_space<vmem>>, vector<12x4xf32>
    tpu.vector_store %arg4[%c0_279, %c0_280], %1002 {strides = array<i32>} : memref<12x4xf32, #tpu.memory_space<vmem>>, vector<12x4xf32>,
    return
  }
}

</mosaic_0001>

<bundles_post_ra>
// kernel: tpu_custom_call.1
= control target key start
LH: loop header
LB: loop body
LE: loop exit
PB: predicated region body
PF: predicated region fallthrough
CT: control target
= control target key end

     0   :  { %9 = vsyncpa [#allocation3], 0  ;;  %s3710_s15 = smov [#allocation2]   ;;  %s4495_s0 = inlined_call_operand.vmem [shape: f32[8,2,4], index: 0, kind: input, shape index: {}]   ;;  %s4496_s1 = inlined_call_operand.vmem [shape: f32[2,3], index: 1, kind: input, shape index: {}]   ;;  %s4497_s2 = inlined_call_operand.hbm [shape: bf16[336,256], index: 2, kind: input, shape index: {}]   ;;  %s4498_s3 = inlined_call_operand.vmem [shape: f32[8,128], index: 3, kind: input, shape index: {}]   ;;  %s4499_s4 = inlined_call_operand.vmem [shape: f32[12,4], index: 4, kind: output, shape index: {}]  }
   0x1   :  { %s19_s16 = sshll.u32 %s3710_s15, 4  ;;  %s20_s16 = int_to_ptr.vmem [resolvable:$true] %s19_s16 }
   0x2   :  { %s3696_s17 = scalar_lea.vmem %s20_s16, 5376  ;;  %p3701_p1 = scmp.lt.s32.totalorder %s20_s16, %s20_s16 }
   0x3   :  { %p3697_p0 = scmp.ne.s32.totalorder %s20_s16, %s3696_s17  ;;  %p3702_p2 = scmp.lt.s32.totalorder %s3696_s17, %s3696_s17 }
   0x5   :  { %p3703_p3 = por %p3702_p2, %p3701_p1 }
   0x7   :  { %p3704_p4 = pnand %p3703_p3, %p3697_p0 }
   0x9   :  { %3707 = shalt.err (!%p3704_p4)
}
   0xa   :  { %s3711_s18 = smov 128   ;;  %s3712_s19 = smov 8  }
   0xb   :  { %25 = dma.hbm_to_vmem [thread:$0]  %s4497_s2, 5376, %s20_s16, [#allocation3], %s3711_s18, %s3711_s18, %s3712_s19  }
   0xc   :  { %3708 = dma.done.wait [#allocation3], 5376  }
   0xd   :  { %3709 = vsyncadd [#allocation3], 4294961920  ;;  %v3713_v0 = vmov 0.0   ;;  %vm3714_vm0 = vmmov 0   ;;  %vm74_vm1 = vcmask 1041408   ;;  %vm48_vm2 = vcmask 31744  }
   0xe   :  { %3143 = vmatprep.subr.bf16.mxu0 %v3713_v0  ;;  %3149 = vmatprep.mubr.msk.bf16.mxu0 %vm3714_vm0, %v3713_v0  ;;  %v3429_v1 = vld [vmem:[#allocation2 + $0x20] ss:$0 sps:$4 sm:$0x33]   ;;  %v3758_v3 = vld [vmem:[#allocation2 + $0x10] ss:$8 sps:$4 sm:$0xff]   ;;  %vm70_vm3 = vcmask 293888  }
   0xf   :  { %3153 = vmatprep.subr.bf16.mxu1 %v3713_v0  ;;  %3161 = vmatprep.mubr.msk.bf16.mxu1 %vm3714_vm0, %v3713_v0  ;;  %v3755_v2 = vsel %vm74_vm1, %v3429_v1, 0  ;;  %v47_v4 = vld [vmem:[%s4495_s0] sm:$0x3]  ;;  %s3715_s25 = smov 64   ;;  %s3716_s26 = smov 32   ;;  %vm155_vm4 = vcmask 261120  }
  0x10   :  { %3144 = vmatpush3.bf16.msra.mxu0 %v3755_v2  ;;  %v49_v5 = vsel %vm48_vm2, %v47_v4, 0.0  ;;  %v3765_v6 = vld [vmem:[#allocation2] ss:$8 sps:$4 sm:$0xff]   ;;  %v3794_v30 = vld [vmem:[#allocation2 + $0x50] ss:$8 sps:$4 sm:$0xff]   ;;  %s3717_s27 = smov 36  }
  0x11   :  { %3145 = vmatprep.subr.bf16.mxu0 %v3713_v0  ;;  %v50_v7 = vpack.c.bf16 %v49_v5, %v49_v5  ;;  %v3783_v8 = vld [vmem:[%s4498_s3] ss:$0 sm:$0xff]  ;;  %v3804_v35 = vld [vmem:[#allocation2 + $0x30] ss:$8 sps:$4 sm:$0xff]   ;;  %v2868_v38 = vld [vmem:[%s4495_s0 + $0x2] sm:$0x3] }
  0x12   :  { %v3791_v29 = vld [vmem:[#allocation2 + $0x60] ss:$8 sps:$4 sm:$0xff]   ;;  %vm186_vm5 = vcmask 523264   ;;  %vm1458_vm6 = vcmask 1040384   ;;  %vm1454_vm7 = vcmask 23552   ;;  %vm1521_vm9 = vcmask 130048  }
  0x13   :  { %3154 = vmatpush3.bf16.msra.mxu1 %v3791_v29  ;;  %v3798_v32 = vld [vmem:[#allocation2 + $0x40] ss:$8 sps:$4 sm:$0xff]   ;;  %vm1576_vm10 = vcmask 1043456   ;;  %vm1572_vm11 = vcmask 64512   ;;  %vm2838_vm12 = vcmask 1045504   ;;  %vm2842_vm13 = vcmask 27648  }
  0x14   :  { %3146 = vmatpush3.bf16.msra.mxu0 %v3758_v3  ;;  %3155 = vmatprep.subr.bf16.mxu1 %v3713_v0  ;;  %v3838_v45 = vld [vmem:[%s4498_s3 + $0x1] ss:$0 sm:$0xff] }
  0x15   :  { %3147 = vmatprep.subr.bf16.mxu0 %v3713_v0 }
  0x17   :  { %3156 = vmatpush3.bf16.msra.mxu1 %v3794_v30 }
  0x18   :  { %3148 = vmatpush3.bf16.msra.mxu0 %v3765_v6  ;;  %3157 = vmatprep.subr.bf16.mxu1 %v3713_v0 }
  0x19   :  { %3165 = vmatprep.subr.bf16.mxu0 %v3713_v0 }
  0x1b   :  { %3150 = vmatmul.mubr.msk.bf16.vlgmr.msra.gmra.mxu0 %vm70_vm3, %v50_v7  ;;  %3158 = vmatpush3.bf16.msra.mxu1 %v3798_v32 }
  0x1c   :  { %3166 = vmatpush3.bf16.msra.mxu0 %v3755_v2  ;;  %3171 = vmatprep.mubr.msk.bf16.mxu0 %vm3714_vm0, %v3713_v0 }
  0x1d   :  { %3167 = vmatprep.subr.bf16.mxu0 %v3713_v0  ;;  %3159 = vmatprep.subr.bf16.mxu1 %v3713_v0 }
  0x1f   :  { %3160 = vmatpush3.bf16.msra.mxu1 %v3804_v35 }
  0x20   :  { %3168 = vmatpush3.bf16.msra.mxu0 %v3758_v3  ;;  %3175 = vmatprep.subr.bf16.mxu1 %v3713_v0 }
  0x21   :  { %3169 = vmatprep.subr.bf16.mxu0 %v3713_v0 }
  0x24   :  { %3170 = vmatpush3.bf16.msra.mxu0 %v3765_v6 }
  0x25   :  { %3187 = vmatprep.subr.bf16.mxu0 %v3713_v0 }
  0xdb   :  { %v112_v9 = vpop.f32.mrf.mxu0 }
  0xdc   :  { %v113_v10 = vadd.f32 %v3783_v8, %v112_v9 }
  0xdd   :  { %v3151_v11 = vpop.f32.mrf.mxu0 }
  0xde   :  { %v2854_v12 = vmul.f32 -1.442695, %v113_v10 }
  0xdf   :  { %v115_v13 = vpop.f32.mrf.mxu0 }
  0xe0   :  { %3456 = vpow2.f32 %v2854_v12 }
  0xe1   :  { %v3152_v14 = vpop.f32.mrf.mxu0 }
  0xed   :  { %v3457_v15 = vpop.eup %3456 }
  0xee   :  { %v121_v16 = vadd.f32 1.0, %v3457_v15 }
  0xf0   :  { %3458 = vrcp.f32 %v121_v16 }
  0xfd   :  { %v3459_v17 = vpop.eup %3458 }
  0xfe   :  { %v124_v18 = vmul.f32 2.0, %v3459_v17  ;;  %v126_v22 = vmul.f32 0.0, %v3459_v17 }
 0x100   :  { %v2855_v19 = vadd.f32 -1.0, %v124_v18 }
 0x102   :  { %128 = vrot.lane.b32.xlu0 %v2855_v19, %s3715_s25 }
 0x174   :  { %v129_v20 = vpop.permute.xlu0 %128 }
 0x175   :  { %v131_v21 = vmul.f32 %v3459_v17, %v129_v20 }
 0x177   :  { %133 = vrot.lane.b32.xlu0 %v131_v21, %s3716_s26 }
 0x1e9   :  { %v134_v23 = vpop.permute.xlu0 %133 }
 0x1ea   :  { %v3788_v24 = vadd.f32 %v134_v23, %v126_v22 }
 0x1ec   :  { %v2856_v25 = vmul.f32 -2.0, %v3788_v24 }
 0x1ee   :  { %v139_v26 = vmul.f32 1.442695, %v2856_v25 }
 0x1f0   :  { %3460 = vpow2.f32 %v139_v26 }
 0x1fd   :  { %v3461_v27 = vpop.eup %3460 }
 0x1fe   :  { %v141_v28 = vadd.f32 1.0, %v3461_v27 }
 0x200   :  { %3462 = vrcp.f32 %v141_v28 }
 0x20d   :  { %v3463_v31 = vpop.eup %3462 }
 0x20e   :  { %v144_v33 = vmul.f32 2.0, %v3463_v31 }
 0x210   :  { %v2857_v34 = vadd.f32 -1.0, %v144_v33 }
 0x212   :  { %147 = vrot.lane.b32.xlu1 %v2857_v34, %s3715_s25 }
 0x284   :  { %v148_v36 = vpop.permute.xlu1 %147 }
 0x285   :  { %v150_v37 = vmul.f32 %v3459_v17, %v148_v36 }
 0x287   :  { %265 = vrot.lane.b32.xlu0 %v150_v37, %s3717_s27  ;;  %152 = vrot.lane.b32.xlu1 %v150_v37, %s3716_s26 }
 0x2f9   :  { %v266_v39 = vpop.permute.xlu0 %265  ;;  %v153_v40 = vpop.permute.xlu1 %152 }
 0x2fa   :  { %v268_v41 = vsel %vm48_vm2, %v2868_v38, %v266_v39  ;;  %v156_v42 = vsel %vm155_vm4, %v153_v40, 0.0 }
 0x2fb   :  { %v269_v43 = vpack.c.bf16 %v268_v41, %v268_v41  ;;  %v157_v44 = vpack.c.bf16 %v156_v42, %v156_v42 }
 0x2fd   :  { %3162 = vmatmul.mubr.msk.bf16.vlgmr.msra.gmra.mxu1 %vm186_vm5, %v157_v44  ;;  %3172 = vmatmul.mubr.msk.bf16.vlgmr.msra.gmra.mxu0 %vm70_vm3, %v269_v43 }
 0x2fe   :  { %3176 = vmatpush3.bf16.msra.mxu1 %v3791_v29  ;;  %3188 = vmatpush3.bf16.msra.mxu0 %v3755_v2 }
 0x2ff   :  { %3177 = vmatprep.subr.bf16.mxu1 %v3713_v0  ;;  %3189 = vmatprep.subr.bf16.mxu0 %v3713_v0 }
 0x300   :  { %3183 = vmatprep.mubr.msk.bf16.mxu1 %vm3714_vm0, %v3713_v0  ;;  %3193 = vmatprep.mubr.msk.bf16.mxu0 %vm3714_vm0, %v3713_v0 }
 0x302   :  { %3178 = vmatpush3.bf16.msra.mxu1 %v3794_v30  ;;  %3190 = vmatpush3.bf16.msra.mxu0 %v3758_v3 }
 0x303   :  { %3179 = vmatprep.subr.bf16.mxu1 %v3713_v0  ;;  %3191 = vmatprep.subr.bf16.mxu0 %v3713_v0 }
 0x306   :  { %3180 = vmatpush3.bf16.msra.mxu1 %v3798_v32  ;;  %3192 = vmatpush3.bf16.msra.mxu0 %v3765_v6 }
 0x307   :  { %3181 = vmatprep.subr.bf16.mxu1 %v3713_v0  ;;  %3209 = vmatprep.subr.bf16.mxu0 %v3713_v0 }
 0x30a   :  { %3182 = vmatpush3.bf16.msra.mxu1 %v3804_v35 }
 0x30b   :  { %3197 = vmatprep.subr.bf16.mxu1 %v3713_v0 }
 0x3bd   :  { %v224_v46 = vpop.f32.mrf.mxu1  ;;  %v307_v47 = vpop.f32.mrf.mxu0 }
 0x3be   :  { %v225_v48 = vadd.f32 %v3838_v45, %v224_v46  ;;  %v308_v49 = vadd.f32 %v3783_v8, %v307_v47  ;;  %v2879_v46 = vld [vmem:[%s4495_s0 + $0x4] sm:$0x3] }
 0x3bf   :  { %v3163_v50 = vpop.f32.mrf.mxu1  ;;  %v3173_v51 = vpop.f32.mrf.mxu0 }
 0x3c0   :  { %v2864_v52 = vmul.f32 -1.442695, %v225_v48  ;;  %v2870_v53 = vmul.f32 -1.442695, %v308_v49 }
 0x3c1   :  { %v227_v54 = vpop.f32.mrf.mxu1  ;;  %v310_v55 = vpop.f32.mrf.mxu0 }
 0x3c2   :  { %3464 = vpow2.f32 %v2864_v52 }
 0x3c3   :  { %3466 = vpow2.f32 %v2870_v53  ;;  %v3164_v56 = vpop.f32.mrf.mxu1  ;;  %v3174_v57 = vpop.f32.mrf.mxu0 }
 0x3cf   :  { %v3465_v58 = vpop.eup %3464 }
 0x3d0   :  { %v3467_v59 = vpop.eup %3466  ;;  %v233_v60 = vadd.f32 1.0, %v3465_v58 }
 0x3d1   :  { %v316_v61 = vadd.f32 1.0, %v3467_v59 }
 0x3d2   :  { %3468 = vrcp.f32 %v233_v60 }
 0x3d3   :  { %3470 = vrcp.f32 %v316_v61 }
 0x3df   :  { %v3469_v62 = vpop.eup %3468 }
 0x3e0   :  { %v3471_v63 = vpop.eup %3470  ;;  %v236_v1 = vmul.f32 2.0, %v3469_v62  ;;  %v238_v13 = vmul.f32 0.0, %v3469_v62 }
 0x3e1   :  { %v319_v4 = vmul.f32 2.0, %v3471_v63  ;;  %v321_v15 = vmul.f32 %v3471_v63, %v3788_v24 }
 0x3e2   :  { %v2865_v5 = vadd.f32 -1.0, %v236_v1 }
 0x3e3   :  { %v2871_v7 = vadd.f32 -1.0, %v319_v4 }
 0x3e4   :  { %240 = vrot.lane.b32.xlu1 %v2865_v5, %s3715_s25 }
 0x3e5   :  { %323 = vrot.lane.b32.xlu0 %v2871_v7, %s3715_s25 }
 0x456   :  { %v241_v9 = vpop.permute.xlu1 %240 }
 0x457   :  { %v243_v10 = vmul.f32 %v3469_v62, %v241_v9  ;;  %v324_v11 = vpop.permute.xlu0 %323 }
 0x458   :  { %v326_v12 = vmul.f32 %v3471_v63, %v324_v11 }
 0x459   :  { %245 = vrot.lane.b32.xlu1 %v243_v10, %s3716_s26 }
 0x45a   :  { %328 = vrot.lane.b32.xlu0 %v326_v12, %s3716_s26 }
 0x4cb   :  { %v246_v14 = vpop.permute.xlu1 %245 }
 0x4cc   :  { %v3847_v16 = vadd.f32 %v246_v14, %v238_v13  ;;  %v329_v17 = vpop.permute.xlu0 %328 }
 0x4cd   :  { %v3849_v18 = vadd.f32 %v329_v17, %v321_v15 }
 0x4ce   :  { %v2866_v19 = vmul.f32 -2.0, %v3847_v16 }
 0x4cf   :  { %v2872_v20 = vmul.f32 -2.0, %v3849_v18 }
 0x4d0   :  { %v251_v21 = vmul.f32 1.442695, %v2866_v19 }
 0x4d1   :  { %v334_v22 = vmul.f32 1.442695, %v2872_v20 }
 0x4d2   :  { %3472 = vpow2.f32 %v251_v21 }
 0x4d3   :  { %3474 = vpow2.f32 %v334_v22 }
 0x4df   :  { %v3473_v23 = vpop.eup %3472 }
 0x4e0   :  { %v3475_v25 = vpop.eup %3474  ;;  %v253_v26 = vadd.f32 1.0, %v3473_v23 }
 0x4e1   :  { %v336_v27 = vadd.f32 1.0, %v3475_v25 }
 0x4e2   :  { %3476 = vrcp.f32 %v253_v26 }
 0x4e3   :  { %3478 = vrcp.f32 %v336_v27 }
 0x4ef   :  { %v3477_v24 = vpop.eup %3476 }
 0x4f0   :  { %v3479_v28 = vpop.eup %3478  ;;  %v256_v31 = vmul.f32 2.0, %v3477_v24 }
 0x4f1   :  { %v339_v33 = vmul.f32 2.0, %v3479_v28 }
 0x4f2   :  { %v2867_v34 = vadd.f32 -1.0, %v256_v31 }
 0x4f3   :  { %v2873_v36 = vadd.f32 -1.0, %v339_v33 }
 0x4f4   :  { %259 = vrot.lane.b32.xlu1 %v2867_v34, %s3715_s25 }
 0x4f5   :  { %342 = vrot.lane.b32.xlu0 %v2873_v36, %s3715_s25 }
 0x566   :  { %v260_v37 = vpop.permute.xlu1 %259 }
 0x567   :  { %v262_v38 = vmul.f32 %v3469_v62, %v260_v37  ;;  %v343_v39 = vpop.permute.xlu0 %342 }
 0x568   :  { %v345_v40 = vmul.f32 %v3471_v63, %v343_v39 }
 0x569   :  { %351 = vrot.lane.b32.xlu0 %v262_v38, %s3715_s25 }
 0x56a   :  { %347 = vrot.lane.b32.xlu1 %v345_v40, %s3716_s26 }
 0x56e   :  { %434 = vrot.lane.b32.xlu1 %v345_v40, %s3717_s27 }
 0x5db   :  { %v352_v41 = vpop.permute.xlu0 %351 }
 0x5dc   :  { %v348_v42 = vpop.permute.xlu1 %347 }
 0x5dd   :  { %v354_v43 = vsel %vm155_vm4, %v348_v42, %v352_v41 }
 0x5de   :  { %v355_v44 = vpack.c.bf16 %v354_v43, %v354_v43 }
 0x5e0   :  { %v435_v47 = vpop.permute.xlu1 %434  ;;  %3184 = vmatmul.mubr.msk.bf16.vlgmr.msra.gmra.mxu1 %vm186_vm5, %v355_v44 }
 0x5e1   :  { %v437_v48 = vsel %vm48_vm2, %v2879_v46, %v435_v47  ;;  %3198 = vmatpush3.bf16.msra.mxu1 %v3791_v29  ;;  %3205 = vmatprep.mubr.msk.bf16.mxu1 %vm3714_vm0, %v3713_v0 }
 0x5e2   :  { %v438_v49 = vpack.c.bf16 %v437_v48, %v437_v48  ;;  %3199 = vmatprep.subr.bf16.mxu1 %v3713_v0 }
 0x5e4   :  { %3194 = vmatmul.mubr.msk.bf16.vlgmr.msra.gmra.mxu0 %vm70_vm3, %v438_v49 }
 0x5e5   :  { %3200 = vmatpush3.bf16.msra.mxu1 %v3794_v30  ;;  %3210 = vmatpush3.bf16.msra.mxu0 %v3755_v2 }
 0x5e6   :  { %3201 = vmatprep.subr.bf16.mxu1 %v3713_v0  ;;  %3211 = vmatprep.subr.bf16.mxu0 %v3713_v0 }
 0x5e7   :  { %3215 = vmatprep.mubr.msk.bf16.mxu0 %vm3714_vm0, %v3713_v0 }
 0x5e9   :  { %3202 = vmatpush3.bf16.msra.mxu1 %v3798_v32  ;;  %3212 = vmatpush3.bf16.msra.mxu0 %v3758_v3 }
 0x5ea   :  { %3203 = vmatprep.subr.bf16.mxu1 %v3713_v0  ;;  %3213 = vmatprep.subr.bf16.mxu0 %v3713_v0 }
 0x5ed   :  { %3204 = vmatpush3.bf16.msra.mxu1 %v3804_v35  ;;  %3214 = vmatpush3.bf16.msra.mxu0 %v3765_v6 }
 0x5ee   :  { %3219 = vmatprep.subr.bf16.mxu0 %v3713_v0  ;;  %3231 = vmatprep.subr.bf16.mxu1 %v3713_v0 }
 0x6a0   :  { %v393_v50 = vpop.f32.mrf.mxu1 }
 0x6a1   :  { %v394_v51 = vadd.f32 %v3838_v45, %v393_v50  ;;  %v2890_v50 = vld [vmem:[%s4495_s0 + $0x6] sm:$0x3] }
 0x6a2   :  { %v3185_v52 = vpop.f32.mrf.mxu1 }
 0x6a3   :  { %v2875_v53 = vmul.f32 -1.442695, %v394_v51 }
 0x6a4   :  { %v396_v54 = vpop.f32.mrf.mxu1  ;;  %v476_v55 = vpop.f32.mrf.mxu0 }
 0x6a5   :  { %3480 = vpow2.f32 %v2875_v53  ;;  %v477_v56 = vadd.f32 %v3783_v8, %v476_v55 }
 0x6a6   :  { %v3186_v57 = vpop.f32.mrf.mxu1  ;;  %v3195_v58 = vpop.f32.mrf.mxu0 }
 0x6a7   :  { %v2881_v59 = vmul.f32 -1.442695, %v477_v56 }
 0x6a8   :  { %v479_v60 = vpop.f32.mrf.mxu0 }
 0x6a9   :  { %3482 = vpow2.f32 %v2881_v59 }
 0x6aa   :  { %v3196_v61 = vpop.f32.mrf.mxu0 }
 0x6b2   :  { %v3481_v62 = vpop.eup %3480 }
 0x6b3   :  { %v402_v63 = vadd.f32 1.0, %v3481_v62 }
 0x6b5   :  { %3484 = vrcp.f32 %v402_v63 }
 0x6b6   :  { %v3483_v1 = vpop.eup %3482 }
 0x6b7   :  { %v485_v4 = vadd.f32 1.0, %v3483_v1 }
 0x6b9   :  { %3486 = vrcp.f32 %v485_v4 }
 0x6c2   :  { %v3485_v5 = vpop.eup %3484 }
 0x6c3   :  { %v405_v7 = vmul.f32 2.0, %v3485_v5  ;;  %v407_v19 = vmul.f32 %v3485_v5, %v3847_v16 }
 0x6c5   :  { %v2876_v9 = vadd.f32 -1.0, %v405_v7 }
 0x6c6   :  { %v3487_v10 = vpop.eup %3486 }
 0x6c7   :  { %409 = vrot.lane.b32.xlu0 %v2876_v9, %s3715_s25  ;;  %v488_v11 = vmul.f32 2.0, %v3487_v10  ;;  %v490_v23 = vmul.f32 %v3487_v10, %v3849_v18 }
 0x6c9   :  { %v2882_v12 = vadd.f32 -1.0, %v488_v11 }
 0x6cb   :  { %492 = vrot.lane.b32.xlu1 %v2882_v12, %s3715_s25 }
 0x739   :  { %v410_v13 = vpop.permute.xlu0 %409 }
 0x73a   :  { %v412_v14 = vmul.f32 %v3485_v5, %v410_v13 }
 0x73c   :  { %414 = vrot.lane.b32.xlu0 %v412_v14, %s3716_s26 }
 0x73d   :  { %v493_v15 = vpop.permute.xlu1 %492 }
 0x73e   :  { %v495_v17 = vmul.f32 %v3487_v10, %v493_v15 }
 0x740   :  { %497 = vrot.lane.b32.xlu1 %v495_v17, %s3716_s26 }
 0x7ae   :  { %v415_v20 = vpop.permute.xlu0 %414 }
 0x7af   :  { %v3890_v21 = vadd.f32 %v415_v20, %v407_v19 }
 0x7b1   :  { %v2877_v22 = vmul.f32 -2.0, %v3890_v21 }
 0x7b2   :  { %v498_v25 = vpop.permute.xlu1 %497 }
 0x7b3   :  { %v420_v26 = vmul.f32 1.442695, %v2877_v22  ;;  %v3894_v27 = vadd.f32 %v498_v25, %v490_v23 }
 0x7b5   :  { %3488 = vpow2.f32 %v420_v26  ;;  %v2883_v24 = vmul.f32 -2.0, %v3894_v27 }
 0x7b7   :  { %v503_v28 = vmul.f32 1.442695, %v2883_v24 }
 0x7b9   :  { %3490 = vpow2.f32 %v503_v28 }
 0x7c2   :  { %v3489_v31 = vpop.eup %3488 }
 0x7c3   :  { %v422_v33 = vadd.f32 1.0, %v3489_v31 }
 0x7c5   :  { %3492 = vrcp.f32 %v422_v33 }
 0x7c6   :  { %v3491_v16 = vpop.eup %3490 }
 0x7c7   :  { %v505_v34 = vadd.f32 1.0, %v3491_v16 }
 0x7c9   :  { %3494 = vrcp.f32 %v505_v34 }
 0x7d2   :  { %v3493_v36 = vpop.eup %3492 }
 0x7d3   :  { %v425_v37 = vmul.f32 2.0, %v3493_v36 }
 0x7d5   :  { %v2878_v38 = vadd.f32 -1.0, %v425_v37 }
 0x7d6   :  { %v3495_v39 = vpop.eup %3494 }
 0x7d7   :  { %428 = vrot.lane.b32.xlu0 %v2878_v38, %s3715_s25  ;;  %v508_v18 = vmul.f32 2.0, %v3495_v39 }
 0x7d9   :  { %v2884_v40 = vadd.f32 -1.0, %v508_v18 }
 0x7db   :  { %511 = vrot.lane.b32.xlu1 %v2884_v40, %s3715_s25 }
 0x849   :  { %v429_v41 = vpop.permute.xlu0 %428 }
 0x84a   :  { %v431_v42 = vmul.f32 %v3485_v5, %v429_v41 }
 0x84c   :  { %520 = vrot.lane.b32.xlu1 %v431_v42, %s3715_s25 }
 0x84d   :  { %v512_v43 = vpop.permute.xlu1 %511 }
 0x84e   :  { %v514_v44 = vmul.f32 %v3487_v10, %v512_v43 }
 0x850   :  { %516 = vrot.lane.b32.xlu0 %v514_v44, %s3716_s26 }
 0x854   :  { %603 = vrot.lane.b32.xlu0 %v514_v44, %s3717_s27 }
 0x8be   :  { %v521_v46 = vpop.permute.xlu1 %520 }
 0x8c2   :  { %v517_v47 = vpop.permute.xlu0 %516 }
 0x8c3   :  { %v523_v48 = vsel %vm155_vm4, %v517_v47, %v521_v46 }
 0x8c4   :  { %v524_v49 = vpack.c.bf16 %v523_v48, %v523_v48 }
 0x8c6   :  { %v604_v51 = vpop.permute.xlu0 %603  ;;  %3206 = vmatmul.mubr.msk.bf16.vlgmr.msra.gmra.mxu1 %vm186_vm5, %v524_v49 }
 0x8c7   :  { %v606_v52 = vsel %vm48_vm2, %v2890_v50, %v604_v51  ;;  %3232 = vmatpush3.bf16.msra.mxu1 %v3755_v2  ;;  %3237 = vmatprep.mubr.msk.bf16.mxu1 %vm3714_vm0, %v3713_v0 }
 0x8c8   :  { %v607_v53 = vpack.c.bf16 %v606_v52, %v606_v52  ;;  %3233 = vmatprep.subr.bf16.mxu1 %v3713_v0 }
 0x8ca   :  { %3216 = vmatmul.mubr.msk.bf16.vlgmr.msra.gmra.mxu0 %vm70_vm3, %v607_v53 }
 0x8cb   :  { %3220 = vmatpush3.bf16.msra.mxu0 %v3791_v29  ;;  %3234 = vmatpush3.bf16.msra.mxu1 %v3758_v3 }
 0x8cc   :  { %3221 = vmatprep.subr.bf16.mxu0 %v3713_v0  ;;  %3227 = vmatprep.mubr.msk.bf16.mxu0 %vm3714_vm0, %v3713_v0 }
 0x8cd   :  { %3235 = vmatprep.subr.bf16.mxu1 %v3713_v0 }
 0x8cf   :  { %3222 = vmatpush3.bf16.msra.mxu0 %v3794_v30  ;;  %3236 = vmatpush3.bf16.msra.mxu1 %v3765_v6 }
 0x8d0   :  { %3223 = vmatprep.subr.bf16.mxu0 %v3713_v0  ;;  %3241 = vmatprep.subr.bf16.mxu1 %v3713_v0 }
 0x8d3   :  { %3224 = vmatpush3.bf16.msra.mxu0 %v3798_v32 }
 0x8d4   :  { %3225 = vmatprep.subr.bf16.mxu0 %v3713_v0 }
 0x8d7   :  { %3226 = vmatpush3.bf16.msra.mxu0 %v3804_v35 }
 0x8d8   :  { %3253 = vmatprep.subr.bf16.mxu0 %v3713_v0 }
 0x986   :  { %v562_v54 = vpop.f32.mrf.mxu1 }
 0x987   :  { %v563_v55 = vadd.f32 %v3838_v45, %v562_v54  ;;  %v2901_v54 = vld [vmem:[%s4495_s0 + $0x8] sm:$0x3] }
 0x988   :  { %v3207_v56 = vpop.f32.mrf.mxu1 }
 0x989   :  { %v2886_v57 = vmul.f32 -1.442695, %v563_v55 }
 0x98a   :  { %v565_v58 = vpop.f32.mrf.mxu1  ;;  %v645_v59 = vpop.f32.mrf.mxu0 }
 0x98b   :  { %3496 = vpow2.f32 %v2886_v57  ;;  %v646_v60 = vadd.f32 %v3783_v8, %v645_v59 }
 0x98c   :  { %v3208_v61 = vpop.f32.mrf.mxu1  ;;  %v3217_v62 = vpop.f32.mrf.mxu0 }
 0x98d   :  { %v2892_v63 = vmul.f32 -1.442695, %v646_v60 }
 0x98e   :  { %v648_v1 = vpop.f32.mrf.mxu0 }
 0x98f   :  { %3498 = vpow2.f32 %v2892_v63 }
 0x990   :  { %v3218_v4 = vpop.f32.mrf.mxu0 }
 0x998   :  { %v3497_v5 = vpop.eup %3496 }
 0x999   :  { %v571_v7 = vadd.f32 1.0, %v3497_v5 }
 0x99b   :  { %3500 = vrcp.f32 %v571_v7 }
 0x99c   :  { %v3499_v9 = vpop.eup %3498 }
 0x99d   :  { %v654_v10 = vadd.f32 1.0, %v3499_v9 }
 0x99f   :  { %3502 = vrcp.f32 %v654_v10 }
 0x9a8   :  { %v3501_v11 = vpop.eup %3500 }
 0x9a9   :  { %v574_v12 = vmul.f32 2.0, %v3501_v11  ;;  %v576_v25 = vmul.f32 %v3501_v11, %v3890_v21 }
 0x9ab   :  { %v2887_v13 = vadd.f32 -1.0, %v574_v12 }
 0x9ac   :  { %v3503_v14 = vpop.eup %3502 }
 0x9ad   :  { %578 = vrot.lane.b32.xlu1 %v2887_v13, %s3715_s25  ;;  %v657_v15 = vmul.f32 2.0, %v3503_v14  ;;  %v659_v31 = vmul.f32 %v3503_v14, %v3894_v27 }
 0x9af   :  { %v2893_v17 = vadd.f32 -1.0, %v657_v15 }
 0x9b1   :  { %661 = vrot.lane.b32.xlu0 %v2893_v17, %s3715_s25 }
 0xa1f   :  { %v579_v19 = vpop.permute.xlu1 %578 }
 0xa20   :  { %v581_v20 = vmul.f32 %v3501_v11, %v579_v19 }
 0xa22   :  { %583 = vrot.lane.b32.xlu1 %v581_v20, %s3716_s26 }
 0xa23   :  { %v662_v22 = vpop.permute.xlu0 %661 }
 0xa24   :  { %v664_v23 = vmul.f32 %v3503_v14, %v662_v22 }
 0xa26   :  { %666 = vrot.lane.b32.xlu0 %v664_v23, %s3716_s26 }
 0xa94   :  { %v584_v26 = vpop.permute.xlu1 %583 }
 0xa95   :  { %v3934_v24 = vadd.f32 %v584_v26, %v576_v25 }
 0xa97   :  { %v2888_v28 = vmul.f32 -2.0, %v3934_v24 }
 0xa98   :  { %v667_v33 = vpop.permute.xlu0 %666 }
 0xa99   :  { %v589_v16 = vmul.f32 1.442695, %v2888_v28  ;;  %v3938_v34 = vadd.f32 %v667_v33, %v659_v31 }
 0xa9b   :  { %3504 = vpow2.f32 %v589_v16  ;;  %v2894_v36 = vmul.f32 -2.0, %v3938_v34 }
 0xa9d   :  { %v672_v37 = vmul.f32 1.442695, %v2894_v36 }
 0xa9f   :  { %3506 = vpow2.f32 %v672_v37 }
 0xaa8   :  { %v3505_v38 = vpop.eup %3504 }
 0xaa9   :  { %v591_v39 = vadd.f32 1.0, %v3505_v38 }
 0xaab   :  { %3508 = vrcp.f32 %v591_v39 }
 0xaac   :  { %v3507_v21 = vpop.eup %3506 }
 0xaad   :  { %v674_v18 = vadd.f32 1.0, %v3507_v21 }
 0xaaf   :  { %3510 = vrcp.f32 %v674_v18 }
 0xab8   :  { %v3509_v40 = vpop.eup %3508 }
 0xab9   :  { %v594_v41 = vmul.f32 2.0, %v3509_v40 }
 0xabb   :  { %v2889_v42 = vadd.f32 -1.0, %v594_v41 }
 0xabc   :  { %v3511_v43 = vpop.eup %3510 }
 0xabd   :  { %597 = vrot.lane.b32.xlu1 %v2889_v42, %s3715_s25  ;;  %v677_v27 = vmul.f32 2.0, %v3511_v43 }
 0xabf   :  { %v2895_v44 = vadd.f32 -1.0, %v677_v27 }
 0xac1   :  { %680 = vrot.lane.b32.xlu0 %v2895_v44, %s3715_s25 }
 0xb2f   :  { %v598_v46 = vpop.permute.xlu1 %597 }
 0xb30   :  { %v600_v47 = vmul.f32 %v3501_v11, %v598_v46 }
 0xb32   :  { %689 = vrot.lane.b32.xlu0 %v600_v47, %s3715_s25 }
 0xb33   :  { %v681_v48 = vpop.permute.xlu0 %680 }
 0xb34   :  { %v683_v49 = vmul.f32 %v3503_v14, %v681_v48 }
 0xb36   :  { %685 = vrot.lane.b32.xlu1 %v683_v49, %s3716_s26 }
 0xb3a   :  { %772 = vrot.lane.b32.xlu1 %v683_v49, %s3717_s27 }
 0xba4   :  { %v690_v50 = vpop.permute.xlu0 %689 }
 0xba8   :  { %v686_v51 = vpop.permute.xlu1 %685 }
 0xba9   :  { %v692_v52 = vsel %vm155_vm4, %v686_v51, %v690_v50 }
 0xbaa   :  { %v693_v53 = vpack.c.bf16 %v692_v52, %v692_v52 }
 0xbac   :  { %v773_v55 = vpop.permute.xlu1 %772  ;;  %3228 = vmatmul.mubr.msk.bf16.vlgmr.msra.gmra.mxu0 %vm186_vm5, %v693_v53 }
 0xbad   :  { %v775_v56 = vsel %vm48_vm2, %v2901_v54, %v773_v55  ;;  %3254 = vmatpush3.bf16.msra.mxu0 %v3755_v2  ;;  %3259 = vmatprep.mubr.msk.bf16.mxu0 %vm3714_vm0, %v3713_v0 }
 0xbae   :  { %v776_v57 = vpack.c.bf16 %v775_v56, %v775_v56  ;;  %3255 = vmatprep.subr.bf16.mxu0 %v3713_v0 }
 0xbb0   :  { %3238 = vmatmul.mubr.msk.bf16.vlgmr.msra.gmra.mxu1 %vm70_vm3, %v776_v57 }
 0xbb1   :  { %3242 = vmatpush3.bf16.msra.mxu1 %v3791_v29  ;;  %3256 = vmatpush3.bf16.msra.mxu0 %v3758_v3 }
 0xbb2   :  { %3243 = vmatprep.subr.bf16.mxu1 %v3713_v0  ;;  %3249 = vmatprep.mubr.msk.bf16.mxu1 %vm3714_vm0, %v3713_v0 }
 0xbb3   :  { %3257 = vmatprep.subr.bf16.mxu0 %v3713_v0 }
 0xbb5   :  { %3244 = vmatpush3.bf16.msra.mxu1 %v3794_v30  ;;  %3258 = vmatpush3.bf16.msra.mxu0 %v3765_v6 }
 0xbb6   :  { %3245 = vmatprep.subr.bf16.mxu1 %v3713_v0  ;;  %3263 = vmatprep.subr.bf16.mxu0 %v3713_v0 }
 0xbb9   :  { %3246 = vmatpush3.bf16.msra.mxu1 %v3798_v32 }
 0xbba   :  { %3247 = vmatprep.subr.bf16.mxu1 %v3713_v0 }
 0xbbd   :  { %3248 = vmatpush3.bf16.msra.mxu1 %v3804_v35 }
 0xbbe   :  { %3275 = vmatprep.subr.bf16.mxu1 %v3713_v0 }
 0xc6c   :  { %v731_v58 = vpop.f32.mrf.mxu0 }
 0xc6d   :  { %v732_v59 = vadd.f32 %v3838_v45, %v731_v58  ;;  %v2912_v58 = vld [vmem:[%s4495_s0 + $0xa] sm:$0x3] }
 0xc6e   :  { %v3229_v60 = vpop.f32.mrf.mxu0 }
 0xc6f   :  { %v2897_v61 = vmul.f32 -1.442695, %v732_v59 }
 0xc70   :  { %v734_v62 = vpop.f32.mrf.mxu0  ;;  %v814_v63 = vpop.f32.mrf.mxu1 }
 0xc71   :  { %3512 = vpow2.f32 %v2897_v61  ;;  %v815_v1 = vadd.f32 %v3783_v8, %v814_v63 }
 0xc72   :  { %v3230_v4 = vpop.f32.mrf.mxu0  ;;  %v3239_v5 = vpop.f32.mrf.mxu1 }
 0xc73   :  { %v2903_v7 = vmul.f32 -1.442695, %v815_v1 }
 0xc74   :  { %v817_v9 = vpop.f32.mrf.mxu1 }
 0xc75   :  { %3514 = vpow2.f32 %v2903_v7 }
 0xc76   :  { %v3240_v10 = vpop.f32.mrf.mxu1 }
 0xc7e   :  { %v3513_v11 = vpop.eup %3512 }
 0xc7f   :  { %v740_v12 = vadd.f32 1.0, %v3513_v11 }
 0xc81   :  { %3516 = vrcp.f32 %v740_v12 }
 0xc82   :  { %v3515_v13 = vpop.eup %3514 }
 0xc83   :  { %v823_v14 = vadd.f32 1.0, %v3515_v13 }
 0xc85   :  { %3518 = vrcp.f32 %v823_v14 }
 0xc8e   :  { %v3517_v15 = vpop.eup %3516 }
 0xc8f   :  { %v743_v17 = vmul.f32 2.0, %v3517_v15  ;;  %v745_v33 = vmul.f32 %v3517_v15, %v3934_v24 }
 0xc91   :  { %v2898_v19 = vadd.f32 -1.0, %v743_v17 }
 0xc92   :  { %v3519_v20 = vpop.eup %3518 }
 0xc93   :  { %747 = vrot.lane.b32.xlu0 %v2898_v19, %s3715_s25  ;;  %v826_v22 = vmul.f32 2.0, %v3519_v20  ;;  %v828_v38 = vmul.f32 %v3519_v20, %v3938_v34 }
 0xc95   :  { %v2904_v23 = vadd.f32 -1.0, %v826_v22 }
 0xc97   :  { %830 = vrot.lane.b32.xlu1 %v2904_v23, %s3715_s25 }
 0xd05   :  { %v748_v25 = vpop.permute.xlu0 %747 }
 0xd06   :  { %v750_v26 = vmul.f32 %v3517_v15, %v748_v25 }
 0xd08   :  { %752 = vrot.lane.b32.xlu0 %v750_v26, %s3716_s26 }
 0xd09   :  { %v831_v28 = vpop.permute.xlu1 %830 }
 0xd0a   :  { %v833_v31 = vmul.f32 %v3519_v20, %v831_v28 }
 0xd0c   :  { %835 = vrot.lane.b32.xlu1 %v833_v31, %s3716_s26 }
 0xd7a   :  { %v753_v16 = vpop.permute.xlu0 %752 }
 0xd7b   :  { %v3978_v36 = vadd.f32 %v753_v16, %v745_v33 }
 0xd7d   :  { %v2899_v37 = vmul.f32 -2.0, %v3978_v36 }
 0xd7e   :  { %v836_v39 = vpop.permute.xlu1 %835 }
 0xd7f   :  { %v758_v21 = vmul.f32 1.442695, %v2899_v37  ;;  %v3982_v18 = vadd.f32 %v836_v39, %v828_v38 }
 0xd81   :  { %3520 = vpow2.f32 %v758_v21  ;;  %v2905_v40 = vmul.f32 -2.0, %v3982_v18 }
 0xd83   :  { %v841_v41 = vmul.f32 1.442695, %v2905_v40 }
 0xd85   :  { %3522 = vpow2.f32 %v841_v41 }
 0xd8e   :  { %v3521_v42 = vpop.eup %3520 }
 0xd8f   :  { %v760_v43 = vadd.f32 1.0, %v3521_v42 }
 0xd91   :  { %3524 = vrcp.f32 %v760_v43 }
 0xd92   :  { %v3523_v24 = vpop.eup %3522 }
 0xd93   :  { %v843_v27 = vadd.f32 1.0, %v3523_v24 }
 0xd95   :  { %3526 = vrcp.f32 %v843_v27 }
 0xd9e   :  { %v3525_v44 = vpop.eup %3524 }
 0xd9f   :  { %v763_v46 = vmul.f32 2.0, %v3525_v44 }
 0xda1   :  { %v2900_v47 = vadd.f32 -1.0, %v763_v46 }
 0xda2   :  { %v3527_v48 = vpop.eup %3526 }
 0xda3   :  { %766 = vrot.lane.b32.xlu0 %v2900_v47, %s3715_s25  ;;  %v846_v34 = vmul.f32 2.0, %v3527_v48 }
 0xda5   :  { %v2906_v49 = vadd.f32 -1.0, %v846_v34 }
 0xda7   :  { %849 = vrot.lane.b32.xlu1 %v2906_v49, %s3715_s25 }
 0xe15   :  { %v767_v50 = vpop.permute.xlu0 %766 }
 0xe16   :  { %v769_v51 = vmul.f32 %v3517_v15, %v767_v50 }
 0xe18   :  { %858 = vrot.lane.b32.xlu1 %v769_v51, %s3715_s25 }
 0xe19   :  { %v850_v52 = vpop.permute.xlu1 %849 }
 0xe1a   :  { %v852_v53 = vmul.f32 %v3519_v20, %v850_v52 }
 0xe1c   :  { %854 = vrot.lane.b32.xlu0 %v852_v53, %s3716_s26 }
 0xe20   :  { %941 = vrot.lane.b32.xlu0 %v852_v53, %s3717_s27 }
 0xe8a   :  { %v859_v54 = vpop.permute.xlu1 %858 }
 0xe8e   :  { %v855_v55 = vpop.permute.xlu0 %854 }
 0xe8f   :  { %v861_v56 = vsel %vm155_vm4, %v855_v55, %v859_v54 }
 0xe90   :  { %v862_v57 = vpack.c.bf16 %v861_v56, %v861_v56 }
 0xe92   :  { %3250 = vmatmul.mubr.msk.bf16.vlgmr.msra.gmra.mxu1 %vm186_vm5, %v862_v57  ;;  %v942_v59 = vpop.permute.xlu0 %941 }
 0xe93   :  { %v944_v60 = vsel %vm48_vm2, %v2912_v58, %v942_v59  ;;  %3276 = vmatpush3.bf16.msra.mxu1 %v3755_v2  ;;  %3281 = vmatprep.mubr.msk.bf16.mxu1 %vm3714_vm0, %v3713_v0  ;;  %v2923_v59 = vld [vmem:[%s4495_s0 + $0xc] sm:$0x3] }
 0xe94   :  { %v945_v61 = vpack.c.bf16 %v944_v60, %v944_v60  ;;  %3277 = vmatprep.subr.bf16.mxu1 %v3713_v0 }
 0xe96   :  { %3260 = vmatmul.mubr.msk.bf16.vlgmr.msra.gmra.mxu0 %vm70_vm3, %v945_v61 }
 0xe97   :  { %3264 = vmatpush3.bf16.msra.mxu0 %v3791_v29  ;;  %3278 = vmatpush3.bf16.msra.mxu1 %v3758_v3 }
 0xe98   :  { %3265 = vmatprep.subr.bf16.mxu0 %v3713_v0  ;;  %3271 = vmatprep.mubr.msk.bf16.mxu0 %vm3714_vm0, %v3713_v0 }
 0xe99   :  { %3279 = vmatprep.subr.bf16.mxu1 %v3713_v0 }
 0xe9b   :  { %3266 = vmatpush3.bf16.msra.mxu0 %v3794_v30  ;;  %3280 = vmatpush3.bf16.msra.mxu1 %v3765_v6 }
 0xe9c   :  { %3267 = vmatprep.subr.bf16.mxu0 %v3713_v0  ;;  %3285 = vmatprep.subr.bf16.mxu1 %v3713_v0 }
 0xe9f   :  { %3268 = vmatpush3.bf16.msra.mxu0 %v3798_v32 }
 0xea0   :  { %3269 = vmatprep.subr.bf16.mxu0 %v3713_v0 }
 0xea3   :  { %3270 = vmatpush3.bf16.msra.mxu0 %v3804_v35 }
 0xea4   :  { %3297 = vmatprep.subr.bf16.mxu0 %v3713_v0 }
 0xf52   :  { %v900_v3 = vpop.f32.mrf.mxu1 }
 0xf53   :  { %v901_v62 = vadd.f32 %v3838_v45, %v900_v3 }
 0xf54   :  { %v3251_v63 = vpop.f32.mrf.mxu1 }
 0xf55   :  { %v2908_v1 = vmul.f32 -1.442695, %v901_v62  ;;  %v3680_v62 = vld [vmem:[#allocation2 + $0x10] ss:$8 sps:$4 sm:$0xff]  }
 0xf56   :  { %v903_v4 = vpop.f32.mrf.mxu1  ;;  %v983_v5 = vpop.f32.mrf.mxu0 }
 0xf57   :  { %3528 = vpow2.f32 %v2908_v1  ;;  %v984_v6 = vadd.f32 %v3783_v8, %v983_v5 }
 0xf58   :  { %v3252_v7 = vpop.f32.mrf.mxu1  ;;  %v3261_v9 = vpop.f32.mrf.mxu0 }
 0xf59   :  { %v2914_v10 = vmul.f32 -1.442695, %v984_v6  ;;  %v4061_v6 = vld [vmem:[%s4498_s3] ss:$0 sm:$0xff] }
 0xf5a   :  { %v986_v11 = vpop.f32.mrf.mxu0 }
 0xf5b   :  { %3530 = vpow2.f32 %v2914_v10 }
 0xf5c   :  { %v3262_v12 = vpop.f32.mrf.mxu0 }
 0xf64   :  { %v3529_v13 = vpop.eup %3528 }
 0xf65   :  { %v909_v14 = vadd.f32 1.0, %v3529_v13 }
 0xf67   :  { %3532 = vrcp.f32 %v909_v14 }
 0xf68   :  { %v3531_v15 = vpop.eup %3530 }
 0xf69   :  { %v992_v17 = vadd.f32 1.0, %v3531_v15 }
 0xf6b   :  { %3534 = vrcp.f32 %v992_v17 }
 0xf74   :  { %v3533_v19 = vpop.eup %3532 }
 0xf75   :  { %v912_v20 = vmul.f32 2.0, %v3533_v19  ;;  %v914_v16 = vmul.f32 %v3533_v19, %v3978_v36 }
 0xf77   :  { %v2909_v22 = vadd.f32 -1.0, %v912_v20 }
 0xf78   :  { %v3535_v23 = vpop.eup %3534 }
 0xf79   :  { %916 = vrot.lane.b32.xlu1 %v2909_v22, %s3715_s25  ;;  %v995_v25 = vmul.f32 2.0, %v3535_v23  ;;  %v997_v21 = vmul.f32 %v3535_v23, %v3982_v18 }
 0xf7b   :  { %v2915_v8 = vadd.f32 -1.0, %v995_v25 }
 0xf7d   :  { %999 = vrot.lane.b32.xlu0 %v2915_v8, %s3715_s25 }
 0xfeb   :  { %v917_v26 = vpop.permute.xlu1 %916 }
 0xfec   :  { %v919_v28 = vmul.f32 %v3533_v19, %v917_v26 }
 0xfee   :  { %921 = vrot.lane.b32.xlu1 %v919_v28, %s3716_s26 }
 0xfef   :  { %v1000_v31 = vpop.permute.xlu0 %999 }
 0xff0   :  { %v1002_v33 = vmul.f32 %v3535_v23, %v1000_v31 }
 0xff2   :  { %1004 = vrot.lane.b32.xlu0 %v1002_v33, %s3716_s26 }
0x1060   :  { %v922_v37 = vpop.permute.xlu1 %921 }
0x1061   :  { %v4022_v38 = vadd.f32 %v922_v37, %v914_v16 }
0x1063   :  { %v2910_v39 = vmul.f32 -2.0, %v4022_v38 }
0x1064   :  { %v1005_v40 = vpop.permute.xlu0 %1004 }
0x1065   :  { %v927_v41 = vmul.f32 1.442695, %v2910_v39  ;;  %v4026_v42 = vadd.f32 %v1005_v40, %v997_v21 }
0x1067   :  { %3536 = vpow2.f32 %v927_v41  ;;  %v2916_v43 = vmul.f32 -2.0, %v4026_v42 }
0x1069   :  { %v1010_v24 = vmul.f32 1.442695, %v2916_v43 }
0x106b   :  { %3538 = vpow2.f32 %v1010_v24 }
0x1074   :  { %v3537_v27 = vpop.eup %3536 }
0x1075   :  { %v929_v44 = vadd.f32 1.0, %v3537_v27 }
0x1077   :  { %3540 = vrcp.f32 %v929_v44 }
0x1078   :  { %v3539_v36 = vpop.eup %3538 }
0x1079   :  { %v1012_v46 = vadd.f32 1.0, %v3539_v36 }
0x107b   :  { %3542 = vrcp.f32 %v1012_v46 }
0x1084   :  { %v3541_v47 = vpop.eup %3540 }
0x1085   :  { %v932_v48 = vmul.f32 2.0, %v3541_v47 }
0x1087   :  { %v2911_v34 = vadd.f32 -1.0, %v932_v48 }
0x1088   :  { %v3543_v49 = vpop.eup %3542 }
0x1089   :  { %935 = vrot.lane.b32.xlu1 %v2911_v34, %s3715_s25  ;;  %v1015_v18 = vmul.f32 2.0, %v3543_v49 }
0x108b   :  { %v2917_v50 = vadd.f32 -1.0, %v1015_v18 }
0x108d   :  { %1018 = vrot.lane.b32.xlu0 %v2917_v50, %s3715_s25 }
0x10fb   :  { %v936_v51 = vpop.permute.xlu1 %935 }
0x10fc   :  { %v938_v52 = vmul.f32 %v3533_v19, %v936_v51 }
0x10fe   :  { %1027 = vrot.lane.b32.xlu0 %v938_v52, %s3715_s25 }
0x10ff   :  { %v1019_v53 = vpop.permute.xlu0 %1018 }
0x1100   :  { %v1021_v54 = vmul.f32 %v3535_v23, %v1019_v53 }
0x1102   :  { %1023 = vrot.lane.b32.xlu1 %v1021_v54, %s3716_s26 }
0x1106   :  { %1110 = vrot.lane.b32.xlu1 %v1021_v54, %s3717_s27 }
0x1170   :  { %v1028_v55 = vpop.permute.xlu0 %1027 }
0x1174   :  { %v1024_v56 = vpop.permute.xlu1 %1023 }
0x1175   :  { %v1030_v57 = vsel %vm155_vm4, %v1024_v56, %v1028_v55 }
0x1176   :  { %v1031_v58 = vpack.c.bf16 %v1030_v57, %v1030_v57  ;;  %v4085_v57 = vld [vmem:[%s4495_s0 + $0xe] sm:$0x3] }
0x1178   :  { %v1111_v60 = vpop.permute.xlu1 %1110  ;;  %3272 = vmatmul.mubr.msk.bf16.vlgmr.msra.gmra.mxu0 %vm186_vm5, %v1031_v58 }
0x1179   :  { %v1113_v61 = vsel %vm48_vm2, %v2923_v59, %v1111_v60  ;;  %3298 = vmatpush3.bf16.msra.mxu0 %v3755_v2  ;;  %3303 = vmatprep.mubr.msk.bf16.mxu0 %vm3714_vm0, %v3713_v0  ;;  %v3681_v2 = vld [vmem:[#allocation2] ss:$8 sps:$4 sm:$0xff]  }
0x117a   :  { %v1114_v3 = vpack.c.bf16 %v1113_v61, %v1113_v61  ;;  %3299 = vmatprep.subr.bf16.mxu0 %v3713_v0  ;;  %v3683_v61 = vld [vmem:[#allocation2 + $0x60] ss:$8 sps:$4 sm:$0xff]  }
0x117c   :  { %3282 = vmatmul.mubr.msk.bf16.vlgmr.msra.gmra.mxu1 %vm70_vm3, %v1114_v3  ;;  %v3684_v3 = vld [vmem:[#allocation2 + $0x50] ss:$8 sps:$4 sm:$0xff]  }
0x117d   :  { %3286 = vmatpush3.bf16.msra.mxu1 %v3791_v29  ;;  %3300 = vmatpush3.bf16.msra.mxu0 %v3680_v62  ;;  %v3685_v62 = vld [vmem:[#allocation2 + $0x40] ss:$8 sps:$4 sm:$0xff]  }
0x117e   :  { %3287 = vmatprep.subr.bf16.mxu1 %v3713_v0  ;;  %3293 = vmatprep.mubr.msk.bf16.mxu1 %vm3714_vm0, %v3713_v0 }
0x117f   :  { %3301 = vmatprep.subr.bf16.mxu0 %v3713_v0 }
0x1181   :  { %3288 = vmatpush3.bf16.msra.mxu1 %v3794_v30  ;;  %3302 = vmatpush3.bf16.msra.mxu0 %v3681_v2  ;;  %v3686_v2 = vld [vmem:[#allocation2 + $0x30] ss:$8 sps:$4 sm:$0xff]  }
0x1182   :  { %3289 = vmatprep.subr.bf16.mxu1 %v3713_v0  ;;  %3307 = vmatprep.subr.bf16.mxu0 %v3713_v0 }
0x1185   :  { %3290 = vmatpush3.bf16.msra.mxu1 %v3798_v32 }
0x1186   :  { %3291 = vmatprep.subr.bf16.mxu1 %v3713_v0 }
0x1189   :  { %3292 = vmatpush3.bf16.msra.mxu1 %v3804_v35 }
0x118a   :  { %3319 = vmatprep.subr.bf16.mxu1 %v3713_v0 }
0x1238   :  { %v1069_v29 = vpop.f32.mrf.mxu0 }
0x1239   :  { %v1070_v63 = vadd.f32 %v3838_v45, %v1069_v29  ;;  %v1447_v29 = vld [vmem:[#allocation2 + $0x130] sm:$0x3] }
0x123a   :  { %v3273_v1 = vpop.f32.mrf.mxu0 }
0x123b   :  { %v2919_v4 = vmul.f32 -1.442695, %v1070_v63  ;;  %v3718_v63 = vmov 65535  }
0x123c   :  { %v1072_v30 = vpop.f32.mrf.mxu0  ;;  %v1152_v5 = vpop.f32.mrf.mxu1  ;;  %v1459_v1 = vsel %vm1458_vm6, 4294967295, %v3718_v63 }
0x123d   :  { %3544 = vpow2.f32 %v2919_v4  ;;  %v1153_v32 = vadd.f32 %v4061_v6, %v1152_v5  ;;  %v1446_v4 = vld [vmem:[%s4496_s1] sm:$0x3]  ;;  %v1460_v30 = vsel %vm74_vm1, %v1459_v1, 0  ;;  %v3437_v1 = vld [vmem:[#allocation2 + $0x90] ss:$0 sps:$4 sm:$0x33]  }
0x123e   :  { %v3274_v7 = vpop.f32.mrf.mxu0  ;;  %v3283_v9 = vpop.f32.mrf.mxu1  ;;  %v1462_v5 = vand.u32 %v1460_v30, %v1447_v29 }
0x123f   :  { %v2925_v35 = vmul.f32 -1.442695, %v1153_v32  ;;  %v1448_v32 = vpack.c.bf16 %v1446_v4, %v1446_v4  ;;  %v4109_v9 = vld [vmem:[%s4498_s3 + $0x1] ss:$0 sm:$0xff]  ;;  %v1673_v4 = vsel %vm74_vm1, %v3437_v1, 0 }
0x1240   :  { %v1155_v10 = vpop.f32.mrf.mxu1 }
0x1241   :  { %3546 = vpow2.f32 %v2925_v35 }
0x1242   :  { %v3284_v11 = vpop.f32.mrf.mxu1 }
0x124a   :  { %v3545_v12 = vpop.eup %3544 }
0x124b   :  { %v1078_v45 = vadd.f32 1.0, %v3545_v12 }
0x124d   :  { %3548 = vrcp.f32 %v1078_v45 }
0x124e   :  { %v3547_v13 = vpop.eup %3546 }
0x124f   :  { %v1161_v14 = vadd.f32 1.0, %v3547_v13 }
0x1251   :  { %3550 = vrcp.f32 %v1161_v14 }
0x125a   :  { %v3549_v15 = vpop.eup %3548 }
0x125b   :  { %v1081_v17 = vmul.f32 2.0, %v3549_v15  ;;  %v1083_v31 = vmul.f32 %v3549_v15, %v4022_v38 }
0x125d   :  { %v2920_v19 = vadd.f32 -1.0, %v1081_v17 }
0x125e   :  { %v3551_v20 = vpop.eup %3550 }
0x125f   :  { %1085 = vrot.lane.b32.xlu0 %v2920_v19, %s3715_s25  ;;  %v1164_v22 = vmul.f32 2.0, %v3551_v20  ;;  %v1166_v39 = vmul.f32 %v3551_v20, %v4026_v42 }
0x1261   :  { %v2926_v23 = vadd.f32 -1.0, %v1164_v22 }
0x1263   :  { %1168 = vrot.lane.b32.xlu1 %v2926_v23, %s3715_s25 }
0x12d1   :  { %v1086_v25 = vpop.permute.xlu0 %1085 }
0x12d2   :  { %v1088_v8 = vmul.f32 %v3549_v15, %v1086_v25 }
0x12d4   :  { %1090 = vrot.lane.b32.xlu0 %v1088_v8, %s3716_s26 }
0x12d5   :  { %v1169_v26 = vpop.permute.xlu1 %1168 }
0x12d6   :  { %v1171_v28 = vmul.f32 %v3551_v20, %v1169_v26 }
0x12d8   :  { %1173 = vrot.lane.b32.xlu1 %v1171_v28, %s3716_s26 }
0x1346   :  { %v1091_v33 = vpop.permute.xlu0 %1090 }
0x1347   :  { %v4069_v16 = vadd.f32 %v1091_v33, %v1083_v31 }
0x1349   :  { %v2921_v37 = vmul.f32 -2.0, %v4069_v16 }
0x134a   :  { %v1174_v21 = vpop.permute.xlu1 %1173 }
0x134b   :  { %v1096_v40 = vmul.f32 1.442695, %v2921_v37  ;;  %v4073_v41 = vadd.f32 %v1174_v21, %v1166_v39 }
0x134d   :  { %3552 = vpow2.f32 %v1096_v40  ;;  %v2927_v43 = vmul.f32 -2.0, %v4073_v41 }
0x134f   :  { %v1179_v24 = vmul.f32 1.442695, %v2927_v43 }
0x1351   :  { %3554 = vpow2.f32 %v1179_v24  ;;  %v2945_v24 = vld [vmem:[%s4498_s3 + $0x6] ss:$0 sm:$0xff] }
0x135a   :  { %v3553_v27 = vpop.eup %3552 }
0x135b   :  { %v1098_v44 = vadd.f32 1.0, %v3553_v27 }
0x135d   :  { %3556 = vrcp.f32 %v1098_v44  ;;  %v3436_v44 = vld [vmem:[#allocation2 + $0x140] ss:$8 sps:$4 sm:$0xff]  }
0x135e   :  { %v3555_v38 = vpop.eup %3554 }
0x135f   :  { %v1181_v36 = vadd.f32 1.0, %v3555_v38 }
0x1361   :  { %3558 = vrcp.f32 %v1181_v36 }
0x136a   :  { %v3557_v46 = vpop.eup %3556 }
0x136b   :  { %v1101_v47 = vmul.f32 2.0, %v3557_v46 }
0x136d   :  { %v2922_v48 = vadd.f32 -1.0, %v1101_v47 }
0x136e   :  { %v3559_v34 = vpop.eup %3558 }
0x136f   :  { %1104 = vrot.lane.b32.xlu0 %v2922_v48, %s3715_s25  ;;  %v1184_v42 = vmul.f32 2.0, %v3559_v34 }
0x1371   :  { %v2928_v49 = vadd.f32 -1.0, %v1184_v42 }
0x1373   :  { %1187 = vrot.lane.b32.xlu1 %v2928_v49, %s3715_s25 }
0x13e1   :  { %v1105_v18 = vpop.permute.xlu0 %1104 }
0x13e2   :  { %v1107_v50 = vmul.f32 %v3549_v15, %v1105_v18 }
0x13e4   :  { %1196 = vrot.lane.b32.xlu1 %v1107_v50, %s3715_s25 }
0x13e5   :  { %v1188_v51 = vpop.permute.xlu1 %1187 }
0x13e6   :  { %v1190_v52 = vmul.f32 %v3551_v20, %v1188_v51 }
0x13e8   :  { %1192 = vrot.lane.b32.xlu0 %v1190_v52, %s3716_s26 }
0x13ec   :  { %1279 = vrot.lane.b32.xlu0 %v1190_v52, %s3717_s27 }
0x1456   :  { %v1197_v53 = vpop.permute.xlu1 %1196 }
0x145a   :  { %v1193_v54 = vpop.permute.xlu0 %1192 }
0x145b   :  { %v1199_v55 = vsel %vm155_vm4, %v1193_v54, %v1197_v53 }
0x145c   :  { %v1200_v56 = vpack.c.bf16 %v1199_v55, %v1199_v55 }
0x145e   :  { %3294 = vmatmul.mubr.msk.bf16.vlgmr.msra.gmra.mxu1 %vm186_vm5, %v1200_v56  ;;  %v1280_v58 = vpop.permute.xlu0 %1279 }
0x145f   :  { %v1282_v59 = vsel %vm48_vm2, %v4085_v57, %v1280_v58  ;;  %3321 = vmatprep.mubr.msk.bf16.mxu1 %vm3714_vm0, %v3713_v0  ;;  %3320 = vmatpush3.bf16.msra.mxu1 %v1462_v5 }
0x1460   :  { %v1283_v60 = vpack.c.bf16 %v1282_v59, %v1282_v59  ;;  %3325 = vmatprep.subr.bf16.mxu1 %v3713_v0 }
0x1462   :  { %3304 = vmatmul.mubr.msk.bf16.vlgmr.msra.gmra.mxu0 %vm70_vm3, %v1283_v60 }
0x1463   :  { %3308 = vmatpush3.bf16.msra.mxu0 %v3683_v61  ;;  %3315 = vmatprep.mubr.msk.bf16.mxu0 %vm3714_vm0, %v3713_v0 }
0x1464   :  { %3309 = vmatprep.subr.bf16.mxu0 %v3713_v0 }
0x1466   :  { %3322 = vmatmul.mubr.msk.bf16.vlgmr.msra.gmra.mxu1 %vm1454_vm7, %v1448_v32  ;;  %v3438_v32 = vld [vmem:[#allocation2 + $0x80] ss:$8 sps:$4 sm:$0xff]  }
0x1467   :  { %3310 = vmatpush3.bf16.msra.mxu0 %v3684_v3  ;;  %3327 = vmatprep.mubr.msk.bf16.mxu1 %vm3714_vm0, %v3713_v0 }
0x1468   :  { %3311 = vmatprep.subr.bf16.mxu0 %v3713_v0  ;;  %3326 = vmatpush3.bf16.msra.mxu1 %v3436_v44 }
0x1469   :  { %3337 = vmatprep.subr.bf16.mxu1 %v3713_v0 }
0x146b   :  { %3312 = vmatpush3.bf16.msra.mxu0 %v3685_v62 }
0x146c   :  { %3313 = vmatprep.subr.bf16.mxu0 %v3713_v0 }
0x146f   :  { %3314 = vmatpush3.bf16.msra.mxu0 %v3686_v2 }
0x1470   :  { %3331 = vmatprep.subr.bf16.mxu0 %v3713_v0 }
0x151e   :  { %v1238_v7 = vpop.f32.mrf.mxu1 }
0x151f   :  { %v1239_v35 = vadd.f32 %v4109_v9, %v1238_v7 }
0x1520   :  { %v3295_v10 = vpop.f32.mrf.mxu1 }
0x1521   :  { %v2930_v11 = vmul.f32 -1.442695, %v1239_v35  ;;  %v3439_v10 = vld [vmem:[#allocation2 + $0x70] ss:$8 sps:$4 sm:$0xff]  }
0x1522   :  { %v1241_v12 = vpop.f32.mrf.mxu1  ;;  %v1321_v45 = vpop.f32.mrf.mxu0 }
0x1523   :  { %3560 = vpow2.f32 %v2930_v11  ;;  %v1322_v13 = vadd.f32 %v4061_v6, %v1321_v45 }
0x1524   :  { %v3296_v14 = vpop.f32.mrf.mxu1  ;;  %v3305_v15 = vpop.f32.mrf.mxu0 }
0x1525   :  { %v2936_v17 = vmul.f32 -1.442695, %v1322_v13  ;;  %v1565_v14 = vld [vmem:[#allocation2 + $0xe0] sm:$0xf] }
0x1526   :  { %v1324_v19 = vpop.f32.mrf.mxu0  ;;  %v1498_v27 = vpop.f32.mrf.mxu1 }
0x1527   :  { %3562 = vpow2.f32 %v2936_v17  ;;  %v1499_v38 = vadd.f32 %v2945_v24, %v1498_v27  ;;  %v2950_v24 = vld [vmem:[%s4498_s3 + $0x2] ss:$0 sm:$0xff] }
0x1528   :  { %v3306_v20 = vpop.f32.mrf.mxu0  ;;  %v3323_v36 = vpop.f32.mrf.mxu1 }
0x1529   :  { %vm1504_vm8 = vcmp.ge.f32.partialorder %v1499_v38, 0.0  ;;  %v1505_v46 = vmul.f32 0.01, %v1499_v38 }
0x152a   :  { %v1501_v47 = vpop.f32.mrf.mxu1 }
0x152b   :  { %v1506_v48 = vsel %vm1504_vm8, %v1499_v38, %v1505_v46 }
0x152c   :  { %v1509_v34 = vpack.c.bf16 %v1506_v48, %v1506_v48  ;;  %v3324_v42 = vpop.f32.mrf.mxu1 }
0x152e   :  { %3328 = vmatmul.mubr.msk.bf16.vlgmr.msra.gmra.mxu1 %vm1521_vm9, %v1509_v34 }
0x152f   :  { %3343 = vmatprep.mubr.msk.bf16.mxu1 %vm3714_vm0, %v3713_v0  ;;  %3338 = vmatpush3.bf16.msra.mxu1 %v1673_v4 }
0x1530   :  { %v3561_v22 = vpop.eup %3560  ;;  %3339 = vmatprep.subr.bf16.mxu1 %v3713_v0 }
0x1531   :  { %v1247_v23 = vadd.f32 1.0, %v3561_v22  ;;  %v1578_v22 = vsel %vm1576_vm10, %v1565_v14, 0 }
0x1533   :  { %3564 = vrcp.f32 %v1247_v23  ;;  %3340 = vmatpush3.bf16.msra.mxu1 %v3438_v32  ;;  %v2947_v23 = vld [vmem:[%s4498_s3 + $0x7] ss:$0 sm:$0xff] }
0x1534   :  { %v3563_v25 = vpop.eup %3562  ;;  %3341 = vmatprep.subr.bf16.mxu1 %v3713_v0 }
0x1535   :  { %v1330_v8 = vadd.f32 1.0, %v3563_v25 }
0x1537   :  { %3566 = vrcp.f32 %v1330_v8  ;;  %3342 = vmatpush3.bf16.msra.mxu1 %v3439_v10 }
0x1540   :  { %v4113_v26 = vpop.eup %3564 }
0x1541   :  { %v1250_v28 = vmul.f32 2.0, %v4113_v26  ;;  %v1252_v49 = vmul.f32 %v4113_v26, %v4069_v16 }
0x1543   :  { %v2931_v31 = vadd.f32 -1.0, %v1250_v28 }
0x1544   :  { %v4116_v33 = vpop.eup %3566 }
0x1545   :  { %1254 = vrot.lane.b32.xlu1 %v2931_v31, %s3715_s25  ;;  %v1333_v6 = vmul.f32 2.0, %v4116_v33  ;;  %v1335_v52 = vmul.f32 %v4116_v33, %v4073_v41 }
0x1547   :  { %v2937_v37 = vadd.f32 -1.0, %v1333_v6 }
0x1549   :  { %1337 = vrot.lane.b32.xlu0 %v2937_v37, %s3715_s25 }
0x15b7   :  { %v1255_v39 = vpop.permute.xlu1 %1254 }
0x15b8   :  { %v1257_v21 = vmul.f32 %v4113_v26, %v1255_v39 }
0x15ba   :  { %1259 = vrot.lane.b32.xlu1 %v1257_v21, %s3716_s26 }
0x15bb   :  { %v1338_v40 = vpop.permute.xlu0 %1337 }
0x15bc   :  { %v1340_v43 = vmul.f32 %v4116_v33, %v1338_v40 }
0x15be   :  { %1342 = vrot.lane.b32.xlu0 %v1340_v43, %s3716_s26 }
0x15ee   :  { %v1559_v30 = vpop.f32.mrf.mxu1 }
0x15f0   :  { %v3329_v5 = vpop.f32.mrf.mxu1 }
0x15f2   :  { %v1562_v7 = vpop.f32.mrf.mxu1 }
0x15f4   :  { %v3330_v35 = vpop.f32.mrf.mxu1 }
0x162c   :  { %v1260_v18 = vpop.permute.xlu1 %1259 }
0x162d   :  { %v4133_v50 = vadd.f32 %v1260_v18, %v1252_v49 }
0x162f   :  { %v2932_v51 = vmul.f32 -2.0, %v4133_v50 }
0x1630   :  { %v1343_v53 = vpop.permute.xlu0 %1342 }
0x1631   :  { %v1265_v54 = vmul.f32 1.442695, %v2932_v51  ;;  %v4138_v55 = vadd.f32 %v1343_v53, %v1335_v52 }
0x1633   :  { %3568 = vpow2.f32 %v1265_v54  ;;  %v2938_v56 = vmul.f32 -2.0, %v4138_v55 }
0x1635   :  { %v1348_v58 = vmul.f32 1.442695, %v2938_v56 }
0x1637   :  { %3570 = vpow2.f32 %v1348_v58 }
0x1640   :  { %v3569_v59 = vpop.eup %3568 }
0x1641   :  { %v1267_v60 = vadd.f32 1.0, %v3569_v59 }
0x1643   :  { %3572 = vrcp.f32 %v1267_v60 }
0x1644   :  { %v3571_v16 = vpop.eup %3570 }
0x1645   :  { %v1350_v61 = vadd.f32 1.0, %v3571_v16 }
0x1647   :  { %3574 = vrcp.f32 %v1350_v61 }
0x1650   :  { %v3573_v3 = vpop.eup %3572 }
0x1651   :  { %v1270_v62 = vmul.f32 2.0, %v3573_v3 }
0x1653   :  { %v2933_v2 = vadd.f32 -1.0, %v1270_v62 }
0x1654   :  { %v3575_v29 = vpop.eup %3574 }
0x1655   :  { %1273 = vrot.lane.b32.xlu1 %v2933_v2, %s3715_s25  ;;  %v1353_v41 = vmul.f32 2.0, %v3575_v29 }
0x1657   :  { %v2939_v63 = vadd.f32 -1.0, %v1353_v41 }
0x1659   :  { %1356 = vrot.lane.b32.xlu0 %v2939_v63, %s3715_s25 }
0x16c7   :  { %v1274_v11 = vpop.permute.xlu1 %1273 }
0x16c8   :  { %v1276_v12 = vmul.f32 %v4113_v26, %v1274_v11  ;;  %v1560_v26 = vadd.f32 %v2947_v23, %v1559_v30 }
0x16ca   :  { %1365 = vrot.lane.b32.xlu0 %v1276_v12, %s3715_s25  ;;  %v1566_v31 = vpack.c.bf16 %v1560_v26, %v1560_v26 }
0x16cb   :  { %v1357_v45 = vpop.permute.xlu0 %1356 }
0x16cc   :  { %v1359_v13 = vmul.f32 %v4116_v33, %v1357_v45 }
0x16ce   :  { %1361 = vrot.lane.b32.xlu1 %v1359_v13, %s3716_s26 }
0x16d2   :  { %1644 = vrot.lane.b32.xlu1 %v1359_v13, %s3717_s27  ;;  %v4184_v13 = vld [vmem:[#allocation2 + $0xd0] ss:$8 sps:$4 sm:$0xff]  }
0x173c   :  { %v1366_v15 = vpop.permute.xlu0 %1365 }
0x1740   :  { %v1362_v17 = vpop.permute.xlu1 %1361 }
0x1741   :  { %v1368_v19 = vsel %vm155_vm4, %v1362_v17, %v1366_v15  ;;  %v4190_v17 = vld [vmem:[#allocation2 + $0xc0] ss:$8 sps:$4 sm:$0xff]  }
0x1742   :  { %v1369_v20 = vpack.c.bf16 %v1368_v19, %v1368_v19  ;;  %v4193_v19 = vld [vmem:[#allocation2 + $0xb0] ss:$8 sps:$4 sm:$0xff]  }
0x1744   :  { %v1645_v25 = vpop.permute.xlu1 %1644  ;;  %3316 = vmatmul.mubr.msk.bf16.vlgmr.msra.gmra.mxu0 %vm186_vm5, %v1369_v20  ;;  %v4198_v20 = vld [vmem:[#allocation2 + $0xa0] ss:$8 sps:$4 sm:$0xff]  }
0x1745   :  { %v1647_v8 = vsel %vm48_vm2, %v4085_v57, %v1645_v25  ;;  %3332 = vmatpush3.bf16.msra.mxu0 %v1578_v22  ;;  %3333 = vmatprep.mubr.msk.bf16.mxu0 %vm3714_vm0, %v3713_v0 }
0x1746   :  { %v1653_v28 = vpack.c.bf16 %v1647_v8, %v1647_v8  ;;  %3347 = vmatprep.subr.bf16.mxu0 %v3713_v0 }
0x1748   :  { %3344 = vmatmul.mubr.msk.bf16.vlgmr.msra.gmra.mxu1 %vm70_vm3, %v1653_v28 }
0x174c   :  { %3334 = vmatmul.mubr.msk.bf16.vlgmr.msra.gmra.mxu0 %vm1572_vm11, %v1566_v31 }
0x174d   :  { %3355 = vmatprep.mubr.msk.bf16.mxu0 %vm3714_vm0, %v3713_v0  ;;  %3348 = vmatpush3.bf16.msra.mxu0 %v4184_v13 }
0x174e   :  { %3349 = vmatprep.subr.bf16.mxu0 %v3713_v0 }
0x1751   :  { %3350 = vmatpush3.bf16.msra.mxu0 %v4190_v17 }
0x1752   :  { %3351 = vmatprep.subr.bf16.mxu0 %v3713_v0 }
0x1755   :  { %3352 = vmatpush3.bf16.msra.mxu0 %v4193_v19 }
0x1756   :  { %3353 = vmatprep.subr.bf16.mxu0 %v3713_v0 }
0x1759   :  { %3354 = vmatpush3.bf16.msra.mxu0 %v4198_v20 }
0x175a   :  { %3359 = vmatprep.subr.bf16.mxu0 %v3713_v0 }
0x1804   :  { %v1407_v33 = vpop.f32.mrf.mxu0 }
0x1805   :  { %v1408_v6 = vadd.f32 %v4109_v9, %v1407_v33 }
0x1806   :  { %v3317_v57 = vpop.f32.mrf.mxu0 }
0x1807   :  { %v2941_v37 = vmul.f32 -1.442695, %v1408_v6  ;;  %v4219_v6 = vld [vmem:[%s4498_s3 + $0x3] ss:$0 sm:$0xff] }
0x1808   :  { %v1410_v39 = vpop.f32.mrf.mxu0  ;;  %v1709_v21 = vpop.f32.mrf.mxu1 }
0x1809   :  { %3576 = vpow2.f32 %v2941_v37 }
0x180a   :  { %v3318_v40 = vpop.f32.mrf.mxu0  ;;  %v3345_v43 = vpop.f32.mrf.mxu1 }
0x180c   :  { %v1614_v27 = vpop.f32.mrf.mxu0  ;;  %v1712_v44 = vpop.f32.mrf.mxu1 }
0x180d   :  { %v4169_v38 = vadd.f32 %v2950_v24, %v1614_v27 }
0x180e   :  { %v3335_v36 = vpop.f32.mrf.mxu0  ;;  %v3346_v46 = vpop.f32.mrf.mxu1 }
0x180f   :  { %v1710_v47 = vadd.f32 %v1709_v21, %v4169_v38 }
0x1810   :  { %v1617_v9 = vpop.f32.mrf.mxu0 }
0x1811   :  { %v2957_v48 = vmul.f32 -1.442695, %v1710_v47 }
0x1812   :  { %v3336_v34 = vpop.f32.mrf.mxu0 }
0x1813   :  { %3578 = vpow2.f32 %v2957_v48 }
0x1816   :  { %v3577_v42 = vpop.eup %3576 }
0x1817   :  { %v1416_v49 = vadd.f32 1.0, %v3577_v42 }
0x1819   :  { %3580 = vrcp.f32 %v1416_v49 }
0x1820   :  { %v3579_v18 = vpop.eup %3578 }
0x1821   :  { %v1718_v51 = vadd.f32 1.0, %v3579_v18 }
0x1823   :  { %3582 = vrcp.f32 %v1718_v51 }
0x1826   :  { %v3581_v52 = vpop.eup %3580 }
0x1827   :  { %v1419_v53 = vmul.f32 2.0, %v3581_v52  ;;  %v1421_v62 = vmul.f32 %v3581_v52, %v4133_v50 }
0x1829   :  { %v2942_v54 = vadd.f32 -1.0, %v1419_v53  ;;  %v4228_v53 = vld [vmem:[#allocation2 + $0x124] ss:$8 sps:$4 sm:$0xff]  }
0x182a   :  { %1922 = vmatprep.subr.bf16.mxu1 %v4228_v53 }
0x182b   :  { %1423 = vrot.lane.b32.xlu0 %v2942_v54, %s3715_s25  ;;  %v4230_v54 = vld [vmem:[#allocation2 + $0x120] ss:$8 sps:$4 sm:$0xff]  }
0x182c   :  { %1923 = vmatpush1.bf16.msra.mxu1 %v4230_v54 }
0x1830   :  { %v3583_v56 = vpop.eup %3582 }
0x1831   :  { %v1721_v58 = vmul.f32 2.0, %v3583_v56  ;;  %v1723_v1 = vmul.f32 %v3583_v56, %v4138_v55 }
0x1833   :  { %v2958_v59 = vadd.f32 -1.0, %v1721_v58  ;;  %v4236_v58 = vld [vmem:[#allocation2 + $0x110] ss:$8 sps:$4 sm:$0xff]  }
0x1835   :  { %1725 = vrot.lane.b32.xlu1 %v2958_v59, %s3715_s25  ;;  %v4239_v59 = vld [vmem:[#allocation2 + $0x104] ss:$8 sps:$4 sm:$0xff]  }
0x189d   :  { %v1424_v60 = vpop.permute.xlu0 %1423 }
0x189e   :  { %v1426_v16 = vmul.f32 %v3581_v52, %v1424_v60 }
0x18a0   :  { %1428 = vrot.lane.b32.xlu0 %v1426_v16, %s3716_s26 }
0x18a7   :  { %v1726_v61 = vpop.permute.xlu1 %1725 }
0x18a8   :  { %v1728_v3 = vmul.f32 %v3583_v56, %v1726_v61  ;;  %v4242_v61 = vld [vmem:[#allocation2 + $0x100] ss:$8 sps:$4 sm:$0xff]  }
0x18aa   :  { %1730 = vrot.lane.b32.xlu1 %v1728_v3, %s3716_s26 }
0x1912   :  { %v1429_v2 = vpop.permute.xlu0 %1428 }
0x1913   :  { %v4177_v29 = vadd.f32 %v1429_v2, %v1421_v62  ;;  %v4245_v62 = vld [vmem:[#allocation2 + $0xf4] ss:$8 sps:$4 sm:$0xff]   ;;  %v4251_v2 = vld [vmem:[#allocation2 + $0xf0] ss:$8 sps:$4 sm:$0xff]  }
0x1915   :  { %v2943_v41 = vmul.f32 -2.0, %v4177_v29 }
0x1917   :  { %v1434_v63 = vmul.f32 1.442695, %v2943_v41 }
0x1919   :  { %3584 = vpow2.f32 %v1434_v63 }
0x191c   :  { %v1731_v4 = vpop.permute.xlu1 %1730 }
0x191d   :  { %v4181_v30 = vadd.f32 %v1731_v4, %v1723_v1 }
0x191f   :  { %v2959_v5 = vmul.f32 -2.0, %v4181_v30 }
0x1921   :  { %v1736_v32 = vmul.f32 1.442695, %v2959_v5 }
0x1923   :  { %3586 = vpow2.f32 %v1736_v32 }
0x1926   :  { %v3585_v7 = vpop.eup %3584 }
0x1927   :  { %v1436_v35 = vadd.f32 1.0, %v3585_v7  ;;  %v2952_v7 = vld [vmem:[%s4498_s3 + $0x4] ss:$0 sm:$0xff] }
0x1929   :  { %3588 = vrcp.f32 %v1436_v35  ;;  %v4272_v35 = vadd.f32 %v2952_v7, %v4169_v38 }
0x1930   :  { %v3587_v50 = vpop.eup %3586 }
0x1931   :  { %v1738_v10 = vadd.f32 1.0, %v3587_v50 }
0x1933   :  { %3590 = vrcp.f32 %v1738_v10 }
0x1936   :  { %v3589_v11 = vpop.eup %3588 }
0x1937   :  { %v1439_v12 = vmul.f32 2.0, %v3589_v11 }
0x1939   :  { %v2944_v45 = vadd.f32 -1.0, %v1439_v12 }
0x193b   :  { %1442 = vrot.lane.b32.xlu0 %v2944_v45, %s3715_s25 }
0x1940   :  { %v3591_v55 = vpop.eup %3590 }
0x1941   :  { %v1741_v14 = vmul.f32 2.0, %v3591_v55 }
0x1943   :  { %v2960_v15 = vadd.f32 -1.0, %v1741_v14 }
0x1945   :  { %1744 = vrot.lane.b32.xlu1 %v2960_v15, %s3715_s25 }
0x19ad   :  { %v1443_v22 = vpop.permute.xlu0 %1442 }
0x19ae   :  { %v1445_v23 = vmul.f32 %v3581_v52, %v1443_v22 }
0x19b0   :  { %1753 = vrot.lane.b32.xlu1 %v1445_v23, %s3715_s25 }
0x19b7   :  { %v1745_v25 = vpop.permute.xlu1 %1744 }
0x19b8   :  { %v1747_v8 = vmul.f32 %v3583_v56, %v1745_v25  ;;  %v4232_v56 = vld [vmem:[#allocation2 + $0x114] ss:$8 sps:$4 sm:$0xff]  }
0x19b9   :  { %1924 = vmatprep.subr.bf16.mxu1 %v4232_v56 }
0x19ba   :  { %1749 = vrot.lane.b32.xlu0 %v1747_v8, %s3716_s26  ;;  %1925 = vmatpush1.bf16.msra.mxu1 %v4236_v58 }
0x19bb   :  { %1926 = vmatprep.subr.bf16.mxu1 %v4239_v59 }
0x19be   :  { %1927 = vmatpush1.bf16.msra.mxu1 %v4242_v61 }
0x19bf   :  { %1928 = vmatprep.subr.bf16.mxu1 %v4245_v62 }
0x19c2   :  { %1929 = vmatpush1.bf16.msra.mxu1 %v4251_v2 }
0x19c3   :  { %2099 = vmatprep.subr.bf16.mxu1 %v4228_v53 }
0x1a22   :  { %v1754_v26 = vpop.permute.xlu1 %1753 }
0x1a2c   :  { %v1750_v28 = vpop.permute.xlu0 %1749 }
0x1a2d   :  { %v1756_v31 = vsel %vm155_vm4, %v1750_v28, %v1754_v26 }
0x1a2e   :  { %v1757_v33 = vpack.c.bf16 %v1756_v31, %v1756_v31 }
0x1a30   :  { %3356 = vmatmul.mubr.msk.bf16.vlgmr.msra.gmra.mxu0 %vm186_vm5, %v1757_v33 }
0x1a31   :  { %3360 = vmatpush3.bf16.msra.mxu0 %v4184_v13  ;;  %3367 = vmatprep.mubr.msk.bf16.mxu0 %vm3714_vm0, %v3713_v0 }
0x1a32   :  { %3361 = vmatprep.subr.bf16.mxu0 %v3713_v0 }
0x1a35   :  { %3362 = vmatpush3.bf16.msra.mxu0 %v4190_v17 }
0x1a36   :  { %3363 = vmatprep.subr.bf16.mxu0 %v3713_v0 }
0x1a39   :  { %3364 = vmatpush3.bf16.msra.mxu0 %v4193_v19 }
0x1a3a   :  { %3365 = vmatprep.subr.bf16.mxu0 %v3713_v0 }
0x1a3d   :  { %3366 = vmatpush3.bf16.msra.mxu0 %v4198_v20 }
0x1a3e   :  { %3371 = vmatprep.subr.bf16.mxu0 %v3713_v0 }
0x1af0   :  { %v1823_v57 = vpop.f32.mrf.mxu0 }
0x1af1   :  { %v1824_v37 = vadd.f32 %v4219_v6, %v1823_v57 }
0x1af2   :  { %v3357_v39 = vpop.f32.mrf.mxu0 }
0x1af3   :  { %v2967_v21 = vmul.f32 -1.442695, %v1824_v37 }
0x1af4   :  { %v1826_v40 = vpop.f32.mrf.mxu0 }
0x1af5   :  { %3592 = vpow2.f32 %v2967_v21 }
0x1af6   :  { %v3358_v43 = vpop.f32.mrf.mxu0 }
0x1b02   :  { %v3593_v24 = vpop.eup %3592 }
0x1b03   :  { %v1832_v27 = vadd.f32 1.0, %v3593_v24 }
0x1b05   :  { %3594 = vrcp.f32 %v1832_v27 }
0x1b12   :  { %v3595_v44 = vpop.eup %3594 }
0x1b13   :  { %v1835_v36 = vmul.f32 2.0, %v3595_v44  ;;  %v1837_v48 = vmul.f32 %v3595_v44, %v4177_v29  ;;  %v3719_v29 = vmov 0  }
0x1b14   :  { %1946 = vmatprep.mubr.bf16.mxu1 %v3719_v29 }
0x1b15   :  { %v2968_v46 = vadd.f32 -1.0, %v1835_v36 }
0x1b17   :  { %1839 = vrot.lane.b32.xlu0 %v2968_v46, %s3715_s25 }
0x1b89   :  { %v1840_v47 = vpop.permute.xlu0 %1839 }
0x1b8a   :  { %v1842_v9 = vmul.f32 %v3595_v44, %v1840_v47 }
0x1b8c   :  { %1844 = vrot.lane.b32.xlu1 %v1842_v9, %s3716_s26 }
0x1bfe   :  { %v1845_v34 = vpop.permute.xlu1 %1844 }
0x1bff   :  { %v4225_v42 = vadd.f32 %v1845_v34, %v1837_v48 }
0x1c01   :  { %v2969_v49 = vmul.f32 -2.0, %v4225_v42 }
0x1c03   :  { %v1850_v18 = vmul.f32 1.442695, %v2969_v49 }
0x1c05   :  { %3596 = vpow2.f32 %v1850_v18 }
0x1c12   :  { %v3597_v51 = vpop.eup %3596 }
0x1c13   :  { %v1852_v52 = vadd.f32 1.0, %v3597_v51 }
0x1c15   :  { %3598 = vrcp.f32 %v1852_v52 }
0x1c22   :  { %v3599_v60 = vpop.eup %3598 }
0x1c23   :  { %v1855_v16 = vmul.f32 2.0, %v3599_v60 }
0x1c25   :  { %v2970_v3 = vadd.f32 -1.0, %v1855_v16 }
0x1c27   :  { %1858 = vrot.lane.b32.xlu0 %v2970_v3, %s3715_s25 }
0x1c2b   :  { %1866 = vrot.lane.b32.xlu0 %v1747_v8, %s3715_s25 }
0x1c99   :  { %v1859_v41 = vpop.permute.xlu0 %1858 }
0x1c9a   :  { %v1861_v63 = vmul.f32 %v3595_v44, %v1859_v41 }
0x1c9c   :  { %1863 = vrot.lane.b32.xlu1 %v1861_v63, %s3716_s26 }
0x1c9d   :  { %v1867_v1 = vpop.permute.xlu0 %1866 }
0x1d0e   :  { %v1864_v4 = vpop.permute.xlu1 %1863 }
0x1d0f   :  { %v1869_v5 = vsel %vm155_vm4, %v1864_v4, %v1867_v1 }
0x1d10   :  { %v1870_v32 = vpack.c.bf16 %v1869_v5, %v1869_v5 }
0x1d12   :  { %2979 = vmatmul.mubr.msk.bf16.vlgmr.msra.gmra.mxu1 %vm186_vm5, %v1870_v32 }
0x1d13   :  { %2100 = vmatpush1.bf16.msra.mxu1 %v4230_v54  ;;  %2123 = vmatprep.mubr.bf16.mxu1 %v3719_v29 }
0x1d14   :  { %2101 = vmatprep.subr.bf16.mxu1 %v4232_v56 }
0x1d17   :  { %2102 = vmatpush1.bf16.msra.mxu1 %v4236_v58 }
0x1d18   :  { %2103 = vmatprep.subr.bf16.mxu1 %v4239_v59 }
0x1d1b   :  { %2104 = vmatpush1.bf16.msra.mxu1 %v4242_v61 }
0x1d1c   :  { %2105 = vmatprep.subr.bf16.mxu1 %v4245_v62 }
0x1d1f   :  { %2106 = vmatpush1.bf16.msra.mxu1 %v4251_v2 }
0x1d20   :  { %2272 = vmatprep.subr.bf16.mxu1 %v4228_v53 }
0x1dd2   :  { %v1948_v50 = vpop.f32.mrf.mxu1 }
0x1dd3   :  { %v1960_v10 = vadd.f32 %v1948_v50, %v4272_v35 }
0x1dd4   :  { %v4275_v11 = vpop.f32.mrf.mxu1 }
0x1dd5   :  { %v2981_v12 = vmul.f32 -1.442695, %v1960_v10 }
0x1dd6   :  { %v1952_v45 = vpop.f32.mrf.mxu1 }
0x1dd7   :  { %3600 = vpow2.f32 %v2981_v12 }
0x1dd8   :  { %v1953_v55 = vpop.f32.mrf.mxu1 }
0x1de4   :  { %v3601_v14 = vpop.eup %3600 }
0x1de5   :  { %v1964_v15 = vadd.f32 1.0, %v3601_v14 }
0x1de7   :  { %3602 = vrcp.f32 %v1964_v15 }
0x1df4   :  { %v3603_v22 = vpop.eup %3602 }
0x1df5   :  { %v1967_v23 = vmul.f32 2.0, %v3603_v22  ;;  %v1969_v26 = vmul.f32 %v3603_v22, %v4181_v30 }
0x1df7   :  { %v2982_v25 = vadd.f32 -1.0, %v1967_v23 }
0x1df9   :  { %1971 = vrot.lane.b32.xlu1 %v2982_v25, %s3715_s25 }
0x1e6b   :  { %v1972_v8 = vpop.permute.xlu1 %1971 }
0x1e6c   :  { %v1974_v38 = vmul.f32 %v3603_v22, %v1972_v8 }
0x1e6e   :  { %1976 = vrot.lane.b32.xlu0 %v1974_v38, %s3716_s26 }
0x1ee0   :  { %v1977_v28 = vpop.permute.xlu0 %1976 }
0x1ee1   :  { %v4280_v31 = vadd.f32 %v1977_v28, %v1969_v26  ;;  %v4323_v26 = vld [vmem:[%s4498_s3 + $0x5] ss:$0 sm:$0xff] }
0x1ee3   :  { %v2983_v33 = vmul.f32 -2.0, %v4280_v31 }
0x1ee5   :  { %v1982_v57 = vmul.f32 1.442695, %v2983_v33 }
0x1ee7   :  { %3604 = vpow2.f32 %v1982_v57 }
0x1ef4   :  { %v3605_v37 = vpop.eup %3604 }
0x1ef5   :  { %v1984_v39 = vadd.f32 1.0, %v3605_v37 }
0x1ef7   :  { %3606 = vrcp.f32 %v1984_v39  ;;  %v1959_v39 = vadd.f32 %v4323_v26, %v4275_v11 }
0x1f04   :  { %v3607_v21 = vpop.eup %3606 }
0x1f05   :  { %v1987_v40 = vmul.f32 2.0, %v3607_v21 }
0x1f07   :  { %v2984_v43 = vadd.f32 -1.0, %v1987_v40 }
0x1f09   :  { %1990 = vrot.lane.b32.xlu1 %v2984_v43, %s3715_s25 }
0x1f0d   :  { %1998 = vrot.lane.b32.xlu1 %v1861_v63, %s3715_s25 }
0x1f7b   :  { %v1991_v24 = vpop.permute.xlu1 %1990 }
0x1f7c   :  { %v1993_v27 = vmul.f32 %v3603_v22, %v1991_v24 }
0x1f7e   :  { %1995 = vrot.lane.b32.xlu0 %v1993_v27, %s3716_s26 }
0x1f7f   :  { %v1999_v30 = vpop.permute.xlu1 %1998 }
0x1ff0   :  { %v1996_v44 = vpop.permute.xlu0 %1995 }
0x1ff1   :  { %v2001_v36 = vsel %vm155_vm4, %v1996_v44, %v1999_v30 }
0x1ff2   :  { %v2002_v46 = vpack.c.bf16 %v2001_v36, %v2001_v36 }
0x1ff4   :  { %3368 = vmatmul.mubr.msk.bf16.vlgmr.msra.gmra.mxu0 %vm186_vm5, %v2002_v46 }
0x1ff5   :  { %3372 = vmatpush3.bf16.msra.mxu0 %v4184_v13  ;;  %3379 = vmatprep.mubr.msk.bf16.mxu0 %vm3714_vm0, %v3713_v0 }
0x1ff6   :  { %3373 = vmatprep.subr.bf16.mxu0 %v3713_v0 }
0x1ff9   :  { %3374 = vmatpush3.bf16.msra.mxu0 %v4190_v17 }
0x1ffa   :  { %3375 = vmatprep.subr.bf16.mxu0 %v3713_v0 }
0x1ffd   :  { %3376 = vmatpush3.bf16.msra.mxu0 %v4193_v19 }
0x1ffe   :  { %3377 = vmatprep.subr.bf16.mxu0 %v3713_v0 }
0x2001   :  { %3378 = vmatpush3.bf16.msra.mxu0 %v4198_v20 }
0x2002   :  { %3383 = vmatprep.subr.bf16.mxu0 %v3713_v0 }
0x20b4   :  { %v2040_v47 = vpop.f32.mrf.mxu0 }
0x20b5   :  { %v2041_v9 = vadd.f32 %v4219_v6, %v2040_v47 }
0x20b6   :  { %v3369_v48 = vpop.f32.mrf.mxu0 }
0x20b7   :  { %v2986_v34 = vmul.f32 -1.442695, %v2041_v9 }
0x20b8   :  { %v2043_v49 = vpop.f32.mrf.mxu0 }
0x20b9   :  { %3608 = vpow2.f32 %v2986_v34 }
0x20ba   :  { %v3370_v18 = vpop.f32.mrf.mxu0 }
0x20c6   :  { %v3609_v51 = vpop.eup %3608 }
0x20c7   :  { %v2049_v52 = vadd.f32 1.0, %v3609_v51 }
0x20c9   :  { %3610 = vrcp.f32 %v2049_v52 }
0x20d6   :  { %v3611_v60 = vpop.eup %3610 }
0x20d7   :  { %v2052_v16 = vmul.f32 2.0, %v3611_v60  ;;  %v2054_v1 = vmul.f32 %v3611_v60, %v4225_v42 }
0x20d9   :  { %v2987_v3 = vadd.f32 -1.0, %v2052_v16 }
0x20db   :  { %2056 = vrot.lane.b32.xlu0 %v2987_v3, %s3715_s25 }
0x214d   :  { %v2057_v41 = vpop.permute.xlu0 %2056 }
0x214e   :  { %v2059_v63 = vmul.f32 %v3611_v60, %v2057_v41 }
0x2150   :  { %2061 = vrot.lane.b32.xlu1 %v2059_v63, %s3716_s26 }
0x21c2   :  { %v2062_v4 = vpop.permute.xlu1 %2061 }
0x21c3   :  { %v4302_v5 = vadd.f32 %v2062_v4, %v2054_v1 }
0x21c5   :  { %v2988_v32 = vmul.f32 -2.0, %v4302_v5 }
0x21c7   :  { %v2067_v7 = vmul.f32 1.442695, %v2988_v32 }
0x21c9   :  { %3612 = vpow2.f32 %v2067_v7 }
0x21d6   :  { %v3613_v50 = vpop.eup %3612 }
0x21d7   :  { %v2069_v10 = vadd.f32 1.0, %v3613_v50 }
0x21d9   :  { %3614 = vrcp.f32 %v2069_v10 }
0x21e6   :  { %v3615_v12 = vpop.eup %3614 }
0x21e7   :  { %v2072_v45 = vmul.f32 2.0, %v3615_v12 }
0x21e9   :  { %v2989_v55 = vadd.f32 -1.0, %v2072_v45 }
0x21eb   :  { %2075 = vrot.lane.b32.xlu0 %v2989_v55, %s3715_s25 }
0x21ef   :  { %2083 = vrot.lane.b32.xlu0 %v1993_v27, %s3715_s25 }
0x225d   :  { %v2076_v14 = vpop.permute.xlu0 %2075 }
0x225e   :  { %v2078_v15 = vmul.f32 %v3611_v60, %v2076_v14 }
0x2260   :  { %2080 = vrot.lane.b32.xlu1 %v2078_v15, %s3716_s26 }
0x2261   :  { %v2084_v42 = vpop.permute.xlu0 %2083 }
0x22d2   :  { %v2081_v22 = vpop.permute.xlu1 %2080 }
0x22d3   :  { %v2086_v23 = vsel %vm155_vm4, %v2081_v22, %v2084_v42 }
0x22d4   :  { %v2087_v25 = vpack.c.bf16 %v2086_v23, %v2086_v23 }
0x22d6   :  { %2990 = vmatmul.mubr.msk.bf16.vlgmr.msra.gmra.mxu1 %vm186_vm5, %v2087_v25 }
0x22d7   :  { %2273 = vmatpush1.bf16.msra.mxu1 %v4230_v54  ;;  %2296 = vmatprep.mubr.bf16.mxu1 %v3719_v29 }
0x22d8   :  { %2274 = vmatprep.subr.bf16.mxu1 %v4232_v56 }
0x22db   :  { %2275 = vmatpush1.bf16.msra.mxu1 %v4236_v58 }
0x22dc   :  { %2276 = vmatprep.subr.bf16.mxu1 %v4239_v59 }
0x22df   :  { %2277 = vmatpush1.bf16.msra.mxu1 %v4242_v61 }
0x22e0   :  { %2278 = vmatprep.subr.bf16.mxu1 %v4245_v62 }
0x22e3   :  { %2279 = vmatpush1.bf16.msra.mxu1 %v4251_v2 }
0x22e4   :  { %2445 = vmatprep.subr.bf16.mxu1 %v4228_v53 }
0x2396   :  { %v2125_v8 = vpop.f32.mrf.mxu1 }
0x2397   :  { %v2133_v38 = vadd.f32 %v2125_v8, %v4272_v35 }
0x2398   :  { %v2127_v28 = vpop.f32.mrf.mxu1 }
0x2399   :  { %v2991_v33 = vmul.f32 -1.442695, %v2133_v38  ;;  %v2132_v57 = vadd.f32 %v4323_v26, %v2127_v28 }
0x239a   :  { %v2129_v37 = vpop.f32.mrf.mxu1 }
0x239b   :  { %3616 = vpow2.f32 %v2991_v33  ;;  %v2825_v21 = vrot.slane %v2132_v57, 6 }
0x239c   :  { %v2130_v40 = vpop.f32.mrf.mxu1 }
0x239d   :  { %v4329_v43 = vsel %vm74_vm1, %v1959_v39, %v2825_v21 }
0x23a8   :  { %v3617_v24 = vpop.eup %3616 }
0x23a9   :  { %v2137_v27 = vadd.f32 1.0, %v3617_v24 }
0x23ab   :  { %3618 = vrcp.f32 %v2137_v27 }
0x23b8   :  { %v3619_v30 = vpop.eup %3618 }
0x23b9   :  { %v2140_v44 = vmul.f32 2.0, %v3619_v30  ;;  %v2142_v11 = vmul.f32 %v3619_v30, %v4280_v31 }
0x23bb   :  { %v2992_v36 = vadd.f32 -1.0, %v2140_v44 }
0x23bd   :  { %2144 = vrot.lane.b32.xlu1 %v2992_v36, %s3715_s25 }
0x242f   :  { %v2145_v46 = vpop.permute.xlu1 %2144 }
0x2430   :  { %v2147_v47 = vmul.f32 %v3619_v30, %v2145_v46 }
0x2432   :  { %2149 = vrot.lane.b32.xlu0 %v2147_v47, %s3716_s26 }
0x24a4   :  { %v2150_v9 = vpop.permute.xlu0 %2149 }
0x24a5   :  { %v4334_v48 = vadd.f32 %v2150_v9, %v2142_v11 }
0x24a7   :  { %v2993_v34 = vmul.f32 -2.0, %v4334_v48 }
0x24a9   :  { %v2155_v49 = vmul.f32 1.442695, %v2993_v34 }
0x24ab   :  { %3620 = vpow2.f32 %v2155_v49 }
0x24b8   :  { %v3621_v18 = vpop.eup %3620 }
0x24b9   :  { %v2157_v51 = vadd.f32 1.0, %v3621_v18 }
0x24bb   :  { %3622 = vrcp.f32 %v2157_v51 }
0x24c8   :  { %v3623_v52 = vpop.eup %3622 }
0x24c9   :  { %v2160_v60 = vmul.f32 2.0, %v3623_v52 }
0x24cb   :  { %v2994_v16 = vadd.f32 -1.0, %v2160_v60 }
0x24cd   :  { %2163 = vrot.lane.b32.xlu1 %v2994_v16, %s3715_s25 }
0x24d1   :  { %2171 = vrot.lane.b32.xlu1 %v2078_v15, %s3715_s25 }
0x253f   :  { %v2164_v3 = vpop.permute.xlu1 %2163 }
0x2540   :  { %v2166_v41 = vmul.f32 %v3619_v30, %v2164_v3 }
0x2542   :  { %2168 = vrot.lane.b32.xlu0 %v2166_v41, %s3716_s26 }
0x2543   :  { %v2172_v31 = vpop.permute.xlu1 %2171 }
0x25b4   :  { %v2169_v63 = vpop.permute.xlu0 %2168 }
0x25b5   :  { %v2174_v1 = vsel %vm155_vm4, %v2169_v63, %v2172_v31 }
0x25b6   :  { %v2175_v4 = vpack.c.bf16 %v2174_v1, %v2174_v1 }
0x25b8   :  { %3380 = vmatmul.mubr.msk.bf16.vlgmr.msra.gmra.mxu0 %vm186_vm5, %v2175_v4 }
0x25b9   :  { %3384 = vmatpush3.bf16.msra.mxu0 %v4184_v13  ;;  %3391 = vmatprep.mubr.msk.bf16.mxu0 %vm3714_vm0, %v3713_v0 }
0x25ba   :  { %3385 = vmatprep.subr.bf16.mxu0 %v3713_v0 }
0x25bd   :  { %3386 = vmatpush3.bf16.msra.mxu0 %v4190_v17 }
0x25be   :  { %3387 = vmatprep.subr.bf16.mxu0 %v3713_v0 }
0x25c1   :  { %3388 = vmatpush3.bf16.msra.mxu0 %v4193_v19 }
0x25c2   :  { %3389 = vmatprep.subr.bf16.mxu0 %v3713_v0 }
0x25c5   :  { %3390 = vmatpush3.bf16.msra.mxu0 %v4198_v20 }
0x25c6   :  { %3395 = vmatprep.subr.bf16.mxu0 %v3713_v0 }
0x2678   :  { %v2213_v32 = vpop.f32.mrf.mxu0 }
0x2679   :  { %v2214_v7 = vadd.f32 %v4219_v6, %v2213_v32 }
0x267a   :  { %v3381_v50 = vpop.f32.mrf.mxu0 }
0x267b   :  { %v2996_v10 = vmul.f32 -1.442695, %v2214_v7 }
0x267c   :  { %v2216_v12 = vpop.f32.mrf.mxu0 }
0x267d   :  { %3624 = vpow2.f32 %v2996_v10 }
0x267e   :  { %v3382_v45 = vpop.f32.mrf.mxu0 }
0x268a   :  { %v3625_v55 = vpop.eup %3624 }
0x268b   :  { %v2222_v14 = vadd.f32 1.0, %v3625_v55 }
0x268d   :  { %3626 = vrcp.f32 %v2222_v14 }
0x269a   :  { %v3627_v15 = vpop.eup %3626 }
0x269b   :  { %v2225_v42 = vmul.f32 2.0, %v3627_v15  ;;  %v2227_v8 = vmul.f32 %v3627_v15, %v4302_v5 }
0x269d   :  { %v2997_v22 = vadd.f32 -1.0, %v2225_v42 }
0x269f   :  { %2229 = vrot.lane.b32.xlu0 %v2997_v22, %s3715_s25 }
0x2711   :  { %v2230_v23 = vpop.permute.xlu0 %2229 }
0x2712   :  { %v2232_v25 = vmul.f32 %v3627_v15, %v2230_v23 }
0x2714   :  { %2234 = vrot.lane.b32.xlu1 %v2232_v25, %s3716_s26 }
0x2786   :  { %v2235_v38 = vpop.permute.xlu1 %2234 }
0x2787   :  { %v4356_v28 = vadd.f32 %v2235_v38, %v2227_v8 }
0x2789   :  { %v2998_v33 = vmul.f32 -2.0, %v4356_v28 }
0x278b   :  { %v2240_v57 = vmul.f32 1.442695, %v2998_v33 }
0x278d   :  { %3628 = vpow2.f32 %v2240_v57 }
0x279a   :  { %v3629_v37 = vpop.eup %3628 }
0x279b   :  { %v2242_v39 = vadd.f32 1.0, %v3629_v37 }
0x279d   :  { %3630 = vrcp.f32 %v2242_v39 }
0x27aa   :  { %v3631_v21 = vpop.eup %3630 }
0x27ab   :  { %v2245_v40 = vmul.f32 2.0, %v3631_v21 }
0x27ad   :  { %v2999_v24 = vadd.f32 -1.0, %v2245_v40 }
0x27af   :  { %2248 = vrot.lane.b32.xlu0 %v2999_v24, %s3715_s25 }
0x27b3   :  { %2256 = vrot.lane.b32.xlu0 %v2166_v41, %s3715_s25 }
0x2821   :  { %v2249_v27 = vpop.permute.xlu0 %2248 }
0x2822   :  { %v2251_v30 = vmul.f32 %v3627_v15, %v2249_v27 }
0x2824   :  { %2253 = vrot.lane.b32.xlu1 %v2251_v30, %s3716_s26 }
0x2825   :  { %v2257_v5 = vpop.permute.xlu0 %2256 }
0x2896   :  { %v2254_v44 = vpop.permute.xlu1 %2253 }
0x2897   :  { %v2259_v36 = vsel %vm155_vm4, %v2254_v44, %v2257_v5 }
0x2898   :  { %v2260_v46 = vpack.c.bf16 %v2259_v36, %v2259_v36 }
0x289a   :  { %3000 = vmatmul.mubr.msk.bf16.vlgmr.msra.gmra.mxu1 %vm186_vm5, %v2260_v46 }
0x289b   :  { %2446 = vmatpush1.bf16.msra.mxu1 %v4230_v54  ;;  %2469 = vmatprep.mubr.bf16.mxu1 %v3719_v29 }
0x289c   :  { %2447 = vmatprep.subr.bf16.mxu1 %v4232_v56 }
0x289f   :  { %2448 = vmatpush1.bf16.msra.mxu1 %v4236_v58 }
0x28a0   :  { %2449 = vmatprep.subr.bf16.mxu1 %v4239_v59 }
0x28a3   :  { %2450 = vmatpush1.bf16.msra.mxu1 %v4242_v61 }
0x28a4   :  { %2451 = vmatprep.subr.bf16.mxu1 %v4245_v62 }
0x28a7   :  { %2452 = vmatpush1.bf16.msra.mxu1 %v4251_v2 }
0x28a8   :  { %2618 = vmatprep.subr.bf16.mxu1 %v4228_v53 }
0x295a   :  { %v2298_v47 = vpop.f32.mrf.mxu1 }
0x295b   :  { %v2306_v11 = vadd.f32 %v2298_v47, %v4272_v35 }
0x295c   :  { %v2300_v9 = vpop.f32.mrf.mxu1 }
0x295d   :  { %v3001_v34 = vmul.f32 -1.442695, %v2306_v11  ;;  %v2305_v49 = vadd.f32 %v4323_v26, %v2300_v9 }
0x295e   :  { %v2302_v18 = vpop.f32.mrf.mxu1 }
0x295f   :  { %3632 = vpow2.f32 %v3001_v34  ;;  %v2828_v51 = vrot.slane %v2305_v49, 4 }
0x2960   :  { %v2303_v52 = vpop.f32.mrf.mxu1 }
0x2961   :  { %v4377_v60 = vsel %vm1576_vm10, %v4329_v43, %v2828_v51 }
0x296c   :  { %v3633_v16 = vpop.eup %3632 }
0x296d   :  { %v2310_v3 = vadd.f32 1.0, %v3633_v16 }
0x296f   :  { %3634 = vrcp.f32 %v2310_v3 }
0x297c   :  { %v3635_v41 = vpop.eup %3634 }
0x297d   :  { %v2313_v31 = vmul.f32 2.0, %v3635_v41  ;;  %v2315_v32 = vmul.f32 %v3635_v41, %v4334_v48 }
0x297f   :  { %v3002_v63 = vadd.f32 -1.0, %v2313_v31 }
0x2981   :  { %2317 = vrot.lane.b32.xlu1 %v3002_v63, %s3715_s25 }
0x29f3   :  { %v2318_v1 = vpop.permute.xlu1 %2317 }
0x29f4   :  { %v2320_v4 = vmul.f32 %v3635_v41, %v2318_v1 }
0x29f6   :  { %2322 = vrot.lane.b32.xlu0 %v2320_v4, %s3716_s26 }
0x2a68   :  { %v2323_v7 = vpop.permute.xlu0 %2322 }
0x2a69   :  { %v4382_v50 = vadd.f32 %v2323_v7, %v2315_v32 }
0x2a6b   :  { %v3003_v43 = vmul.f32 -2.0, %v4382_v50 }
0x2a6d   :  { %v2328_v10 = vmul.f32 1.442695, %v3003_v43 }
0x2a6f   :  { %3636 = vpow2.f32 %v2328_v10 }
0x2a7c   :  { %v3637_v12 = vpop.eup %3636 }
0x2a7d   :  { %v2330_v45 = vadd.f32 1.0, %v3637_v12 }
0x2a7f   :  { %3638 = vrcp.f32 %v2330_v45 }
0x2a8c   :  { %v3639_v55 = vpop.eup %3638 }
0x2a8d   :  { %v2333_v14 = vmul.f32 2.0, %v3639_v55 }
0x2a8f   :  { %v3004_v15 = vadd.f32 -1.0, %v2333_v14 }
0x2a91   :  { %2336 = vrot.lane.b32.xlu1 %v3004_v15, %s3715_s25 }
0x2a95   :  { %2344 = vrot.lane.b32.xlu1 %v2251_v30, %s3715_s25 }
0x2b03   :  { %v2337_v42 = vpop.permute.xlu1 %2336 }
0x2b04   :  { %v2339_v22 = vmul.f32 %v3635_v41, %v2337_v42 }
0x2b06   :  { %2341 = vrot.lane.b32.xlu0 %v2339_v22, %s3716_s26 }
0x2b07   :  { %v2345_v48 = vpop.permute.xlu1 %2344 }
0x2b78   :  { %v2342_v23 = vpop.permute.xlu0 %2341 }
0x2b79   :  { %v2347_v25 = vsel %vm155_vm4, %v2342_v23, %v2345_v48 }
0x2b7a   :  { %v2348_v8 = vpack.c.bf16 %v2347_v25, %v2347_v25 }
0x2b7c   :  { %3392 = vmatmul.mubr.msk.bf16.vlgmr.msra.gmra.mxu0 %vm186_vm5, %v2348_v8 }
0x2b7d   :  { %3396 = vmatpush3.bf16.msra.mxu0 %v4184_v13  ;;  %3403 = vmatprep.mubr.msk.bf16.mxu0 %vm3714_vm0, %v3713_v0 }
0x2b7e   :  { %3397 = vmatprep.subr.bf16.mxu0 %v3713_v0 }
0x2b81   :  { %3398 = vmatpush3.bf16.msra.mxu0 %v4190_v17 }
0x2b82   :  { %3399 = vmatprep.subr.bf16.mxu0 %v3713_v0 }
0x2b85   :  { %3400 = vmatpush3.bf16.msra.mxu0 %v4193_v19 }
0x2b86   :  { %3401 = vmatprep.subr.bf16.mxu0 %v3713_v0 }
0x2b89   :  { %3402 = vmatpush3.bf16.msra.mxu0 %v4198_v20 }
0x2b8a   :  { %3407 = vmatprep.subr.bf16.mxu0 %v3713_v0 }
0x2c3c   :  { %v2386_v38 = vpop.f32.mrf.mxu0 }
0x2c3d   :  { %v2387_v33 = vadd.f32 %v4219_v6, %v2386_v38 }
0x2c3e   :  { %v3393_v57 = vpop.f32.mrf.mxu0 }
0x2c3f   :  { %v3006_v37 = vmul.f32 -1.442695, %v2387_v33 }
0x2c40   :  { %v2389_v39 = vpop.f32.mrf.mxu0 }
0x2c41   :  { %3640 = vpow2.f32 %v3006_v37 }
0x2c42   :  { %v3394_v21 = vpop.f32.mrf.mxu0 }
0x2c4e   :  { %v3641_v40 = vpop.eup %3640 }
0x2c4f   :  { %v2395_v24 = vadd.f32 1.0, %v3641_v40 }
0x2c51   :  { %3642 = vrcp.f32 %v2395_v24 }
0x2c5e   :  { %v3643_v27 = vpop.eup %3642 }
0x2c5f   :  { %v2398_v30 = vmul.f32 2.0, %v3643_v27  ;;  %v2400_v46 = vmul.f32 %v3643_v27, %v4356_v28 }
0x2c61   :  { %v3007_v5 = vadd.f32 -1.0, %v2398_v30 }
0x2c63   :  { %2402 = vrot.lane.b32.xlu0 %v3007_v5, %s3715_s25 }
0x2cd5   :  { %v2403_v44 = vpop.permute.xlu0 %2402 }
0x2cd6   :  { %v2405_v36 = vmul.f32 %v3643_v27, %v2403_v44 }
0x2cd8   :  { %2407 = vrot.lane.b32.xlu1 %v2405_v36, %s3716_s26 }
0x2d4a   :  { %v2408_v47 = vpop.permute.xlu1 %2407 }
0x2d4b   :  { %v4404_v11 = vadd.f32 %v2408_v47, %v2400_v46 }
0x2d4d   :  { %v3008_v9 = vmul.f32 -2.0, %v4404_v11 }
0x2d4f   :  { %v2413_v34 = vmul.f32 1.442695, %v3008_v9 }
0x2d51   :  { %3644 = vpow2.f32 %v2413_v34 }
0x2d5e   :  { %v3645_v49 = vpop.eup %3644 }
0x2d5f   :  { %v2415_v18 = vadd.f32 1.0, %v3645_v49 }
0x2d61   :  { %3646 = vrcp.f32 %v2415_v18 }
0x2d6e   :  { %v3647_v51 = vpop.eup %3646 }
0x2d6f   :  { %v2418_v52 = vmul.f32 2.0, %v3647_v51 }
0x2d71   :  { %v3009_v16 = vadd.f32 -1.0, %v2418_v52 }
0x2d73   :  { %2421 = vrot.lane.b32.xlu0 %v3009_v16, %s3715_s25 }
0x2d77   :  { %2429 = vrot.lane.b32.xlu0 %v2339_v22, %s3715_s25 }
0x2de5   :  { %v2422_v3 = vpop.permute.xlu0 %2421 }
0x2de6   :  { %v2424_v41 = vmul.f32 %v3643_v27, %v2422_v3 }
0x2de8   :  { %2426 = vrot.lane.b32.xlu1 %v2424_v41, %s3716_s26 }
0x2de9   :  { %v2430_v28 = vpop.permute.xlu0 %2429 }
0x2e5a   :  { %v2427_v31 = vpop.permute.xlu1 %2426 }
0x2e5b   :  { %v2432_v63 = vsel %vm155_vm4, %v2427_v31, %v2430_v28 }
0x2e5c   :  { %v2433_v1 = vpack.c.bf16 %v2432_v63, %v2432_v63 }
0x2e5e   :  { %3010 = vmatmul.mubr.msk.bf16.vlgmr.msra.gmra.mxu1 %vm186_vm5, %v2433_v1 }
0x2e5f   :  { %2619 = vmatpush1.bf16.msra.mxu1 %v4230_v54  ;;  %2642 = vmatprep.mubr.bf16.mxu1 %v3719_v29 }
0x2e60   :  { %2620 = vmatprep.subr.bf16.mxu1 %v4232_v56 }
0x2e63   :  { %2621 = vmatpush1.bf16.msra.mxu1 %v4236_v58 }
0x2e64   :  { %2622 = vmatprep.subr.bf16.mxu1 %v4239_v59 }
0x2e67   :  { %2623 = vmatpush1.bf16.msra.mxu1 %v4242_v61 }
0x2e68   :  { %2624 = vmatprep.subr.bf16.mxu1 %v4245_v62 }
0x2e6b   :  { %2625 = vmatpush1.bf16.msra.mxu1 %v4251_v2 }
0x2e6c   :  { %2791 = vmatprep.subr.bf16.mxu1 %v4228_v53 }
0x2f1e   :  { %v2471_v4 = vpop.f32.mrf.mxu1 }
0x2f1f   :  { %v2479_v32 = vadd.f32 %v2471_v4, %v4272_v35 }
0x2f20   :  { %v2473_v7 = vpop.f32.mrf.mxu1 }
0x2f21   :  { %v3011_v43 = vmul.f32 -1.442695, %v2479_v32  ;;  %v2478_v10 = vadd.f32 %v4323_v26, %v2473_v7 }
0x2f22   :  { %v2475_v12 = vpop.f32.mrf.mxu1 }
0x2f23   :  { %3648 = vpow2.f32 %v3011_v43  ;;  %v2831_v45 = vrot.slane %v2478_v10, 2 }
0x2f24   :  { %v2476_v55 = vpop.f32.mrf.mxu1 }
0x2f25   :  { %v2839_v14 = vsel %vm2838_vm12, %v4377_v60, %v2831_v45 }
0x2f26   :  { %2841 = vst.msk [vmem:[%s4499_s4] sm:$0xff] %vm48_vm2, %v2839_v14 }
0x2f30   :  { %v3649_v53 = vpop.eup %3648 }
0x2f31   :  { %v2483_v15 = vadd.f32 1.0, %v3649_v53 }
0x2f33   :  { %3650 = vrcp.f32 %v2483_v15 }
0x2f40   :  { %v3651_v42 = vpop.eup %3650 }
0x2f41   :  { %v2486_v22 = vmul.f32 2.0, %v3651_v42  ;;  %v2488_v8 = vmul.f32 %v3651_v42, %v4382_v50 }
0x2f43   :  { %v3012_v48 = vadd.f32 -1.0, %v2486_v22 }
0x2f45   :  { %2490 = vrot.lane.b32.xlu1 %v3012_v48, %s3715_s25 }
0x2fb7   :  { %v2491_v23 = vpop.permute.xlu1 %2490 }
0x2fb8   :  { %v2493_v25 = vmul.f32 %v3651_v42, %v2491_v23 }
0x2fba   :  { %2495 = vrot.lane.b32.xlu0 %v2493_v25, %s3716_s26 }
0x302c   :  { %v2496_v60 = vpop.permute.xlu0 %2495 }
0x302d   :  { %v4431_v38 = vadd.f32 %v2496_v60, %v2488_v8 }
0x302f   :  { %v3013_v33 = vmul.f32 -2.0, %v4431_v38 }
0x3031   :  { %v2501_v57 = vmul.f32 1.442695, %v3013_v33 }
0x3033   :  { %3652 = vpow2.f32 %v2501_v57 }
0x3040   :  { %v3653_v37 = vpop.eup %3652 }
0x3041   :  { %v2503_v39 = vadd.f32 1.0, %v3653_v37 }
0x3043   :  { %3654 = vrcp.f32 %v2503_v39 }
0x3050   :  { %v3655_v21 = vpop.eup %3654 }
0x3051   :  { %v2506_v40 = vmul.f32 2.0, %v3655_v21 }
0x3053   :  { %v3014_v24 = vadd.f32 -1.0, %v2506_v40 }
0x3055   :  { %2509 = vrot.lane.b32.xlu1 %v3014_v24, %s3715_s25 }
0x3059   :  { %2517 = vrot.lane.b32.xlu1 %v2424_v41, %s3715_s25 }
0x30c7   :  { %v2510_v27 = vpop.permute.xlu1 %2509 }
0x30c8   :  { %v2512_v30 = vmul.f32 %v3651_v42, %v2510_v27 }
0x30ca   :  { %2514 = vrot.lane.b32.xlu0 %v2512_v30, %s3716_s26 }
0x30cb   :  { %v2518_v50 = vpop.permute.xlu1 %2517 }
0x313c   :  { %v2515_v5 = vpop.permute.xlu0 %2514 }
0x313d   :  { %v2520_v44 = vsel %vm155_vm4, %v2515_v5, %v2518_v50 }
0x313e   :  { %v2521_v36 = vpack.c.bf16 %v2520_v44, %v2520_v44 }
0x3140   :  { %3404 = vmatmul.mubr.msk.bf16.vlgmr.msra.gmra.mxu0 %vm186_vm5, %v2521_v36 }
0x3141   :  { %3408 = vmatpush3.bf16.msra.mxu0 %v4184_v13  ;;  %3415 = vmatprep.mubr.msk.bf16.mxu0 %vm3714_vm0, %v3713_v0 }
0x3142   :  { %3409 = vmatprep.subr.bf16.mxu0 %v3713_v0 }
0x3145   :  { %3410 = vmatpush3.bf16.msra.mxu0 %v4190_v17 }
0x3146   :  { %3411 = vmatprep.subr.bf16.mxu0 %v3713_v0 }
0x3149   :  { %3412 = vmatpush3.bf16.msra.mxu0 %v4193_v19 }
0x314a   :  { %3413 = vmatprep.subr.bf16.mxu0 %v3713_v0 }
0x314d   :  { %3414 = vmatpush3.bf16.msra.mxu0 %v4198_v20 }
0x3200   :  { %v2559_v46 = vpop.f32.mrf.mxu0 }
0x3201   :  { %v2560_v47 = vadd.f32 %v4219_v6, %v2559_v46 }
0x3202   :  { %v3405_v9 = vpop.f32.mrf.mxu0 }
0x3203   :  { %v3016_v13 = vmul.f32 -1.442695, %v2560_v47 }
0x3204   :  { %v2562_v34 = vpop.f32.mrf.mxu0 }
0x3205   :  { %3656 = vpow2.f32 %v3016_v13 }
0x3206   :  { %v3406_v49 = vpop.f32.mrf.mxu0 }
0x3212   :  { %v3657_v18 = vpop.eup %3656 }
0x3213   :  { %v2568_v51 = vadd.f32 1.0, %v3657_v18 }
0x3215   :  { %3658 = vrcp.f32 %v2568_v51 }
0x3222   :  { %v3659_v17 = vpop.eup %3658 }
0x3223   :  { %v2571_v52 = vmul.f32 2.0, %v3659_v17  ;;  %v2573_v20 = vmul.f32 %v3659_v17, %v4404_v11 }
0x3225   :  { %v3017_v16 = vadd.f32 -1.0, %v2571_v52 }
0x3227   :  { %2575 = vrot.lane.b32.xlu0 %v3017_v16, %s3715_s25 }
0x3299   :  { %v2576_v19 = vpop.permute.xlu0 %2575 }
0x329a   :  { %v2578_v0 = vmul.f32 %v3659_v17, %v2576_v19 }
0x329c   :  { %2580 = vrot.lane.b32.xlu1 %v2578_v0, %s3716_s26 }
0x330e   :  { %v2581_v3 = vpop.permute.xlu1 %2580 }
0x330f   :  { %v4452_v41 = vadd.f32 %v2581_v3, %v2573_v20 }
0x3311   :  { %v3018_v28 = vmul.f32 -2.0, %v4452_v41 }
0x3313   :  { %v2586_v31 = vmul.f32 1.442695, %v3018_v28 }
0x3315   :  { %3660 = vpow2.f32 %v2586_v31 }
0x3322   :  { %v3661_v63 = vpop.eup %3660 }
0x3323   :  { %v2588_v1 = vadd.f32 1.0, %v3661_v63 }
0x3325   :  { %3662 = vrcp.f32 %v2588_v1 }
0x3332   :  { %v3663_v4 = vpop.eup %3662 }
0x3333   :  { %v2591_v32 = vmul.f32 2.0, %v3663_v4 }
0x3335   :  { %v3019_v7 = vadd.f32 -1.0, %v2591_v32 }
0x3337   :  { %2594 = vrot.lane.b32.xlu0 %v3019_v7, %s3715_s25 }
0x333b   :  { %2602 = vrot.lane.b32.xlu0 %v2512_v30, %s3715_s25 }
0x33a9   :  { %v2595_v43 = vpop.permute.xlu0 %2594 }
0x33aa   :  { %v2597_v10 = vmul.f32 %v3659_v17, %v2595_v43 }
0x33ac   :  { %2599 = vrot.lane.b32.xlu1 %v2597_v10, %s3716_s26 }
0x33ad   :  { %v2603_v11 = vpop.permute.xlu0 %2602 }
0x341e   :  { %v2600_v12 = vpop.permute.xlu1 %2599 }
0x341f   :  { %v2605_v45 = vsel %vm155_vm4, %v2600_v12, %v2603_v11 }
0x3420   :  { %v2606_v55 = vpack.c.bf16 %v2605_v45, %v2605_v45 }
0x3422   :  { %3020 = vmatmul.mubr.msk.bf16.vlgmr.msra.gmra.mxu1 %vm186_vm5, %v2606_v55 }
0x3423   :  { %2792 = vmatpush1.bf16.msra.mxu1 %v4230_v54  ;;  %2815 = vmatprep.mubr.bf16.mxu1 %v3719_v29 }
0x3424   :  { %2793 = vmatprep.subr.bf16.mxu1 %v4232_v56 }
0x3427   :  { %2794 = vmatpush1.bf16.msra.mxu1 %v4236_v58 }
0x3428   :  { %2795 = vmatprep.subr.bf16.mxu1 %v4239_v59 }
0x342b   :  { %2796 = vmatpush1.bf16.msra.mxu1 %v4242_v61 }
0x342c   :  { %2797 = vmatprep.subr.bf16.mxu1 %v4245_v62 }
0x342f   :  { %2798 = vmatpush1.bf16.msra.mxu1 %v4251_v2 }
0x34e2   :  { %v2644_v14 = vpop.f32.mrf.mxu1 }
0x34e3   :  { %v2652_v53 = vadd.f32 %v2644_v14, %v4272_v35 }
0x34e4   :  { %v4469_v15 = vpop.f32.mrf.mxu1 }
0x34e5   :  { %v3021_v54 = vmul.f32 -1.442695, %v2652_v53  ;;  %v2651_v55 = vadd.f32 %v4323_v26, %v4469_v15 }
0x34e6   :  { %v2648_v42 = vpop.f32.mrf.mxu1 }
0x34e7   :  { %3664 = vpow2.f32 %v3021_v54 }
0x34e8   :  { %v2649_v29 = vpop.f32.mrf.mxu1 }
0x34f4   :  { %v3665_v56 = vpop.eup %3664 }
0x34f5   :  { %v2656_v22 = vadd.f32 1.0, %v3665_v56 }
0x34f7   :  { %3666 = vrcp.f32 %v2656_v22 }
0x3504   :  { %v3667_v58 = vpop.eup %3666 }
0x3505   :  { %v2659_v59 = vmul.f32 2.0, %v3667_v58  ;;  %v2661_v2 = vmul.f32 %v3667_v58, %v4431_v38 }
0x3507   :  { %v3022_v48 = vadd.f32 -1.0, %v2659_v59 }
0x3509   :  { %2663 = vrot.lane.b32.xlu1 %v3022_v48, %s3715_s25 }
0x357b   :  { %v2664_v61 = vpop.permute.xlu1 %2663 }
0x357c   :  { %v2666_v62 = vmul.f32 %v3667_v58, %v2664_v61 }
0x357e   :  { %2668 = vrot.lane.b32.xlu0 %v2666_v62, %s3716_s26 }
0x35f0   :  { %v2669_v35 = vpop.permute.xlu0 %2668 }
0x35f1   :  { %v2671_v23 = vadd.f32 %v2669_v35, %v2661_v2 }
0x35f3   :  { %v3023_v25 = vmul.f32 -2.0, %v2671_v23 }
0x35f5   :  { %v2674_v8 = vmul.f32 1.442695, %v3023_v25 }
0x35f7   :  { %3668 = vpow2.f32 %v2674_v8 }
0x3604   :  { %v3669_v60 = vpop.eup %3668 }
0x3605   :  { %v2676_v33 = vadd.f32 1.0, %v3669_v60 }
0x3607   :  { %3670 = vrcp.f32 %v2676_v33 }
0x3614   :  { %v3671_v57 = vpop.eup %3670 }
0x3615   :  { %v2679_v37 = vmul.f32 2.0, %v3671_v57 }
0x3617   :  { %v3024_v39 = vadd.f32 -1.0, %v2679_v37 }
0x3619   :  { %2682 = vrot.lane.b32.xlu1 %v3024_v39, %s3715_s25 }
0x361d   :  { %2690 = vrot.lane.b32.xlu1 %v2597_v10, %s3715_s25 }
0x368b   :  { %v2683_v21 = vpop.permute.xlu1 %2682 }
0x368c   :  { %v2685_v40 = vmul.f32 %v3667_v58, %v2683_v21 }
0x368e   :  { %2687 = vrot.lane.b32.xlu0 %v2685_v40, %s3716_s26 }
0x368f   :  { %v2691_v38 = vpop.permute.xlu1 %2690 }
0x3700   :  { %v2688_v24 = vpop.permute.xlu0 %2687 }
0x3701   :  { %v2693_v27 = vsel %vm155_vm4, %v2688_v24, %v2691_v38 }
0x3702   :  { %v2694_v30 = vpack.c.bf16 %v2693_v27, %v2693_v27 }
0x3704   :  { %3416 = vmatmul.mubr.msk.bf16.vlgmr.msra.gmra.mxu0 %vm186_vm5, %v2694_v30 }
0x37c4   :  { %v2732_v50 = vpop.f32.mrf.mxu0 }
0x37c5   :  { %v2733_v5 = vadd.f32 %v4219_v6, %v2732_v50 }
0x37c6   :  { %v3417_v44 = vpop.f32.mrf.mxu0 }
0x37c7   :  { %v3026_v36 = vmul.f32 -1.442695, %v2733_v5 }
0x37c8   :  { %v2735_v46 = vpop.f32.mrf.mxu0 }
0x37c9   :  { %3672 = vpow2.f32 %v3026_v36 }
0x37ca   :  { %v3418_v47 = vpop.f32.mrf.mxu0 }
0x37d6   :  { %v3673_v9 = vpop.eup %3672 }
0x37d7   :  { %v2741_v13 = vadd.f32 1.0, %v3673_v9 }
0x37d9   :  { %3674 = vrcp.f32 %v2741_v13 }
0x37e6   :  { %v3675_v34 = vpop.eup %3674 }
0x37e7   :  { %v2744_v49 = vmul.f32 2.0, %v3675_v34  ;;  %v2746_v52 = vmul.f32 %v3675_v34, %v4452_v41 }
0x37e9   :  { %v3027_v18 = vadd.f32 -1.0, %v2744_v49 }
0x37eb   :  { %2748 = vrot.lane.b32.xlu0 %v3027_v18, %s3715_s25 }
0x385d   :  { %v2749_v51 = vpop.permute.xlu0 %2748 }
0x385e   :  { %v2751_v17 = vmul.f32 %v3675_v34, %v2749_v51 }
0x3860   :  { %2753 = vrot.lane.b32.xlu1 %v2751_v17, %s3716_s26 }
0x38d2   :  { %v2754_v6 = vpop.permute.xlu1 %2753 }
0x38d3   :  { %v2756_v16 = vadd.f32 %v2754_v6, %v2746_v52 }
0x38d5   :  { %v3028_v19 = vmul.f32 -2.0, %v2756_v16 }
0x38d7   :  { %v2759_v0 = vmul.f32 1.442695, %v3028_v19 }
0x38d9   :  { %3676 = vpow2.f32 %v2759_v0 }
0x38e6   :  { %v3677_v20 = vpop.eup %3676 }
0x38e7   :  { %v2761_v3 = vadd.f32 1.0, %v3677_v20 }
0x38e9   :  { %3678 = vrcp.f32 %v2761_v3 }
0x38f6   :  { %v3679_v28 = vpop.eup %3678 }
0x38f7   :  { %v2764_v31 = vmul.f32 2.0, %v3679_v28 }
0x38f9   :  { %v3029_v63 = vadd.f32 -1.0, %v2764_v31 }
0x38fb   :  { %2767 = vrot.lane.b32.xlu0 %v3029_v63, %s3715_s25 }
0x38ff   :  { %2775 = vrot.lane.b32.xlu0 %v2685_v40, %s3715_s25 }
0x396d   :  { %v2768_v1 = vpop.permute.xlu0 %2767 }
0x396e   :  { %v2770_v4 = vmul.f32 %v3675_v34, %v2768_v1 }
0x3970   :  { %2772 = vrot.lane.b32.xlu1 %v2770_v4, %s3716_s26 }
0x3971   :  { %v2776_v41 = vpop.permute.xlu0 %2775 }
0x39e2   :  { %v2773_v32 = vpop.permute.xlu1 %2772 }
0x39e3   :  { %v2778_v7 = vsel %vm155_vm4, %v2773_v32, %v2776_v41 }
0x39e4   :  { %v2779_v43 = vpack.c.bf16 %v2778_v7, %v2778_v7 }
0x39e6   :  { %3030 = vmatmul.mubr.msk.bf16.vlgmr.msra.gmra.mxu1 %vm186_vm5, %v2779_v43 }
0x3aa6   :  { %v2817_v10 = vpop.f32.mrf.mxu1 }
0x3aa8   :  { %v2818_v11 = vpop.f32.mrf.mxu1 }
0x3aa9   :  { %v2823_v12 = vadd.f32 %v4323_v26, %v2818_v11 }
0x3aaa   :  { %v2820_v45 = vpop.f32.mrf.mxu1 }
0x3aab   :  { %v2834_v14 = vrot.slane %v2823_v12, 6 }
0x3aac   :  { %v2821_v53 = vpop.f32.mrf.mxu1 }
0x3aad   :  { %v2840_v54 = vsel %vm74_vm1, %v2651_v55, %v2834_v14 }
0x3aae   :  { %2843 = vst.msk [vmem:[%s4499_s4 + $0x8] sm:$0xf] %vm2842_vm13, %v2840_v54 }
0x3aaf   :  { %2848 = vsyncpa [#allocation3], 1 }

</bundles_post_ra>
